<compile_context>
chip_gen: v5e
topology: v5e:2x2
jax: 0.10.0
libtpu: 0.0.40
codegen_flags: <defaults>
</compile_context>

<pallas_src>
import jax
import jax.numpy as jnp
from jax.experimental import pallas as pl
from jax.experimental.pallas import tpu as pltpu

# ----- small hyperparameters consistent with the module -----
B = 2          # batch
T = 32         # timesamples        = input_shape[0]
C = 4          # nb_channels        = input_shape[1]
K = 8          # kernel_size (even)
F = 16         # nb_filters
DEPTH = 6
OUT_CH = 5     # nb_outlayer_channels
O = 2          # output_shape[1]
EPS = 1e-5

CH = F                     # uniform channel width inside the fused kernel
PAD_L = K // 2 - 1         # Pad_Conv left padding
PAD_R = K // 2             # Pad_Conv right padding
NSC = DEPTH // 3           # number of residual shortcuts
KCH = K * CH               # im2col contraction width = 128

# padded-time scratch layout (8-sublane aligned interior)
OFF = 8                    # interior rows start at aligned row 8 (>= PAD_L)
START = OFF - PAD_L        # read offset of tap k=0 (5)
TPAD = OFF + T + 8         # 48 rows: 8 left halo + T interior + 8 right halo

# batch tiling for the pallas grid: one tile = whole batch here; the axis is
# "parallel" so larger batches can shard across TensorCores (v7x has 2 TCs).
BT = B
NT = BT * T                # rows of the flattened (batch*time, channel) tile


# ---------------- fused Pallas kernel ----------------

def _xception_kernel(x_ref, wb_ref, wr_ref, shb_ref, shs_ref,
                     wo_ref, sho_ref, wl_ref, bl_ref, o_ref, pad_ref):
    """Whole Xception forward for one batch tile; activations stay in VMEM."""
    f32 = jnp.float32
    bf16 = jnp.bfloat16

    # Zero ONLY the halo rows of the padded scratch once; the interior rows are
    # fully overwritten before every read, so the zero halo implements the
    # Pad_Conv zero padding for the whole kernel.
    pad_ref[:, :OFF, :] = jnp.zeros((BT, OFF, CH), f32)
    pad_ref[:, OFF + T:, :] = jnp.zeros((BT, TPAD - OFF - T, CH), f32)

    def im2col(x2d):
        # x2d: (NT, CH) f32 -> (NT, K*CH) bf16 im2col matrix for a "same" conv.
        # The interior write starts at row OFF=8 (sublane aligned, no masked
        # partial stores); the K shifted tap reads are cheap realigned loads.
        rows = []
        for b in range(BT):
            pad_ref[b, OFF:OFF + T, :] = x2d[b * T:(b + 1) * T, :]
            taps = [pad_ref[b, START + k:START + k + T, :] for k in range(K)]
            rows.append(jnp.concatenate(taps, axis=-1))          # (T, K*CH)
        return jnp.concatenate(rows, axis=0).astype(bf16)        # (NT, K*CH)

    x = x_ref[...]                       # (NT, CH) f32; channels >= C are zero
    input_res = x
    sc = 0
    for d in range(DEPTH):
        if d % 3 == 2:
            # Residual depth: fuse block conv + shortcut conv into one MXU
            # matmul: rows [im2col(x); im2col(input_res)], cols [Wb | Wsc].
            lhs = jnp.concatenate([im2col(x), im2col(input_res)], axis=0)
            both = jnp.dot(lhs, wr_ref[sc], preferred_element_type=f32)
            blk = jnp.maximum(both[:NT, :F] + shb_ref[d], 0.0)   # sep-conv+BN+ReLU
            res = both[NT:, F:] + shs_ref[sc]                    # shortcut conv+BN
            x = jnp.maximum(blk + res, 0.0)
            input_res = x
            sc += 1
        else:
            y = jnp.dot(im2col(x), wb_ref[d], preferred_element_type=f32)
            x = jnp.maximum(y + shb_ref[d], 0.0)                 # sep-conv+BN+ReLU

    def shift_up(v):
        # next-timestep neighbour within one example, zero after the last step
        # (= Pad_Pool(left=0, right=1, value=0) for the k=2, s=1 pools).
        return jnp.concatenate([v[1:], jnp.zeros((1, v.shape[1]), v.dtype)], 0)

    wo = wo_ref[...]                     # (F, F) bf16, cols >= OUT_CH are zero
    wl = wl_ref[...]                     # (T, 1) f32
    outs = []
    for b in range(BT):
        xb = x[b * T:(b + 1) * T, :]                              # (T, F)
        xb = 0.5 * (xb + shift_up(xb))                            # Pad_Pool+AvgPool
        yb = jnp.dot(xb.astype(bf16), wo,
                     preferred_element_type=f32) + sho_ref[...]
        yb = jnp.maximum(yb, 0.0)                                 # 1x1 conv+BN+ReLU
        yb = jnp.maximum(yb, shift_up(yb))                        # Pad_Pool+MaxPool
        # out_linear: Linear(T -> O); forward() keeps only output column 0.
        outs.append(jnp.sum(yb * wl, axis=0, keepdims=True))      # (1, F)
    out = jnp.concatenate(outs, axis=0) + bl_ref[...]             # (BT, F)
    o_ref[...] = out[:, :OUT_CH]


# ---------------- parameters (deterministic) ----------------

def _bn_fold(key, nf):
    k1, k2, k3, k4 = jax.random.split(key, 4)
    gamma = jax.random.uniform(k1, (nf,), minval=0.5, maxval=1.5)
    beta = 0.1 * jax.random.normal(k2, (nf,))
    mean = 0.1 * jax.random.normal(k3, (nf,))
    var = jax.random.uniform(k4, (nf,), minval=0.5, maxval=1.5)
    scale = gamma / jnp.sqrt(var + EPS)
    shift = beta - mean * scale
    return scale, shift


def init_params(key):
    params = {"blocks": [], "shortcuts": []}
    for d in range(DEPTH):
        cin = C if d == 0 else F
        key, k1, k2, kb = jax.random.split(key, 4)
        dw = jax.random.normal(k1, (K, cin)) / jnp.sqrt(K)        # depthwise (bias=False)
        pw = jax.random.normal(k2, (cin, F)) / jnp.sqrt(cin)      # pointwise (bias=False)
        scale, shift = _bn_fold(kb, F)
        params["blocks"].append(dict(dw=dw, pw=pw,
                                     scale=scale.reshape(1, F),
                                     shift=shift.reshape(1, F)))
    for s in range(NSC):
        cin = C if s == 0 else F
        key, k1, k2, kb = jax.random.split(key, 4)
        w = jax.random.normal(k1, (K, cin, F)) / jnp.sqrt(K * cin)
        bconv = 0.1 * jax.random.normal(k2, (F,))
        scale, shift = _bn_fold(kb, F)
        shift = shift + scale * bconv                             # fold conv bias into BN shift
        params["shortcuts"].append(dict(w=w, scale=scale.reshape(1, F),
                                        shift=shift.reshape(1, F)))
    # output layer: Conv1d(F -> OUT_CH, k=1, bias) + BN(OUT_CH) + ReLU
    key, k1, k2, kb = jax.random.split(key, 4)
    wout = jax.random.normal(k1, (F, OUT_CH)) / jnp.sqrt(F)
    bout = 0.1 * jax.random.normal(k2, (OUT_CH,))
    scale, shift = _bn_fold(kb, OUT_CH)
    params["out_conv"] = dict(w=wout, scale=scale.reshape(1, OUT_CH),
                              shift=(shift + scale * bout).reshape(1, OUT_CH))
    # final linear: Linear(T -> O), stored pre-transposed as (T, O)
    key, k1, k2 = jax.random.split(key, 3)
    wl = jax.random.normal(k1, (T, O)) / jnp.sqrt(T)
    bl = 0.1 * jax.random.normal(k2, (O,))
    params["linear"] = dict(w=wl, b=bl)
    return params


def _pack_params(params):
    """Fold BN scales into conv weights, reshape to im2col (K*CH, F) layout,
    pre-fuse [block | shortcut] weights for the residual depths and cast the
    MXU weight operands to bfloat16 (accumulation stays f32 in the kernel)."""
    wb_list, shb_list = [], []
    for d in range(DEPTH):
        p = params["blocks"][d]
        cin = C if d == 0 else F
        scale = p["scale"].reshape(F)
        wc = p["dw"][:, :, None] * p["pw"][None, :, :] * scale[None, None, :]
        if cin < CH:                                   # zero-pad channel dim to CH
            wc = jnp.pad(wc, ((0, 0), (0, CH - cin), (0, 0)))
        wb_list.append(wc.reshape(KCH, F))             # (K*CH, F)
        shb_list.append(p["shift"])                    # (1, F)
    wb = jnp.stack(wb_list).astype(jnp.bfloat16)       # (DEPTH, K*CH, F)
    shb = jnp.stack(shb_list)                          # (DEPTH, 1, F) f32

    ws_list, shs_list = [], []
    for s in range(NSC):
        sp = params["shortcuts"][s]
        cin = C if s == 0 else F
        scale = sp["scale"].reshape(F)
        w = sp["w"] * scale[None, None, :]
        if cin < CH:
            w = jnp.pad(w, ((0, 0), (0, CH - cin), (0, 0)))
        ws_list.append(w.reshape(KCH, F))              # (K*CH, F)
        shs_list.append(sp["shift"])                   # conv bias already folded
    shs = jnp.stack(shs_list)                          # (NSC, 1, F) f32
    # fused residual-depth weights: [W_block(d=3s+2) | W_shortcut(s)]
    wr = jnp.stack([jnp.concatenate([wb_list[3 * s + 2], ws_list[s]], axis=1)
                    for s in range(NSC)]).astype(jnp.bfloat16)   # (NSC, K*CH, 2F)

    oc = params["out_conv"]
    wo = jnp.zeros((F, F), jnp.float32).at[:, :OUT_CH].set(oc["w"] * oc["scale"])
    sho = jnp.zeros((1, F), jnp.float32).at[:, :OUT_CH].set(oc["shift"])
    wo = wo.astype(jnp.bfloat16)                       # (F, F), cols >= OUT_CH zero

    lp = params["linear"]
    wl = lp["w"][:, 0:1]                               # (T, 1)  (only used column)
    bl = lp["b"][0:1].reshape(1, 1)                    # (1, 1)
    return wb, wr, shb, shs, wo, sho, wl, bl


# ---------------- forward pass (single fused Pallas call) ----------------

def _full_spec(shape):
    n = len(shape)
    return pl.BlockSpec(shape, lambda i: (0,) * n)     # resident, not batch-tiled


@jax.jit
def xception_forward(x4d, params):
    # one-time layout prep (tiny, fused by XLA): (B, C, 1, T) -> (B*T, CH)
    x = x4d[:, :, 0, :]
    x = jnp.transpose(x, (0, 2, 1)).astype(jnp.float32)            # (B, T, C)
    x = jnp.pad(x, ((0, 0), (0, 0), (0, CH - C)))                  # (B, T, CH)
    x = x.reshape(B * T, CH)                                       # (B*T, CH)

    wb, wr, shb, shs, wo, sho, wl, bl = _pack_params(params)

    return pl.pallas_call(
        _xception_kernel,
        out_shape=jax.ShapeDtypeStruct((B, OUT_CH), jnp.float32),
        grid=(B // BT,),
        in_specs=[
            pl.BlockSpec((NT, CH), lambda i: (i, 0)),   # activations, batch-tiled
            _full_spec((DEPTH, KCH, F)),                # block conv weights (bf16)
            _full_spec((NSC, KCH, 2 * F)),              # fused residual weights (bf16)
            _full_spec((DEPTH, 1, F)),                  # block BN shifts
            _full_spec((NSC, 1, F)),                    # shortcut BN shifts
            _full_spec((F, F)),                         # 1x1 output conv (bf16)
            _full_spec((1, F)),                         # output conv shift
            _full_spec((T, 1)),                         # final linear column 0
            _full_spec((1, 1)),                         # final linear bias
        ],
        out_specs=pl.BlockSpec((BT, OUT_CH), lambda i: (i, 0)),
        scratch_shapes=[pltpu.VMEM((BT, TPAD, CH), jnp.float32)],
        compiler_params=pltpu.CompilerParams(
            dimension_semantics=("parallel",)),
    )(x, wb, wr, shb, shs, wo, sho, wl, bl)


# ---------------- pure-JAX reference (for correctness check) ----------------

def _pad_conv(x):   # Pad_Conv: "same" padding for even K
    return jnp.pad(x, ((0, 0), (PAD_L, PAD_R), (0, 0)))


def _pad_pool(x):   # Pad_Pool(left=0, right=1)
    return jnp.pad(x, ((0, 0), (0, 1), (0, 0)))


def ref_forward(x4d, params):
    x = jnp.transpose(x4d[:, :, 0, :], (0, 2, 1)).astype(jnp.float32)
    input_res = x
    cnt = 0
    for d in range(DEPTH):
        p = params["blocks"][d]
        cin = x.shape[-1]
        xp = _pad_conv(x)
        xd = sum(xp[:, k:k + T, :] * p["dw"][k].reshape(1, 1, cin) for k in range(K))
        y = jnp.einsum("btc,cf->btf", xd, p["pw"])
        x = jnp.maximum(y * p["scale"].reshape(1, 1, F) + p["shift"].reshape(1, 1, F), 0.0)
        if d % 3 == 2:
            sp = params["shortcuts"][cnt]; cnt += 1
            rp = _pad_conv(input_res)
            r = sum(jnp.einsum("btc,cf->btf", rp[:, k:k + T, :], sp["w"][k]) for k in range(K))
            r = r * sp["scale"].reshape(1, 1, F) + sp["shift"].reshape(1, 1, F)
            x = jnp.maximum(x + r, 0.0)
            input_res = x
    xp = _pad_pool(x)
    x = 0.5 * (xp[:, :T, :] + xp[:, 1:, :])
    oc = params["out_conv"]
    x = jnp.maximum(jnp.einsum("btf,fo->bto", x, oc["w"]) * oc["scale"].reshape(1, 1, OUT_CH)
                    + oc["shift"].reshape(1, 1, OUT_CH), 0.0)
    xp = _pad_pool(x)
    x = jnp.maximum(xp[:, :T, :], xp[:, 1:, :])
    lp = params["linear"]
    out = jnp.einsum("bct,to->bco", jnp.transpose(x, (0, 2, 1)), lp["w"]) \
        + lp["b"].reshape(1, 1, O)
    return out[:, :, 0]


if __name__ == "__main__":
    key = jax.random.PRNGKey(0)
    kx, kp = jax.random.split(key)
    x = jax.random.normal(kx, (B, C, 1, T), dtype=jnp.float32)
    params = init_params(kp)

    out = jax.block_until_ready(xception_forward(x, params))
    ref = ref_forward(x, params)

    assert out.shape == (B, OUT_CH), out.shape
    assert bool(jnp.all(jnp.isfinite(out)))
    # bf16 MXU operands (f32 accumulation) through 9 matmul layers -> compare
    # with a scale-relative max-abs-error bound.
    err = float(jnp.max(jnp.abs(out - ref)))
    tol = 5e-2 * (1.0 + float(jnp.max(jnp.abs(ref))))
    assert err <= tol, (err, tol, out, ref)
    print("KERNEL_OK")
</pallas_src>

<mosaic_0001>
module attributes {stable_mosaic.version = 11 : i64} {
  func.func @_xception_kernel(%arg0: i32, %arg1: memref<64x16xf32, #tpu.memory_space<vmem>>, %arg2: memref<6x128x16xbf16, #tpu.memory_space<vmem>>, %arg3: memref<2x128x32xbf16, #tpu.memory_space<vmem>>, %arg4: memref<6x1x16xf32, #tpu.memory_space<vmem>>, %arg5: memref<2x1x16xf32, #tpu.memory_space<vmem>>, %arg6: memref<16x16xbf16, #tpu.memory_space<vmem>>, %arg7: memref<1x16xf32, #tpu.memory_space<vmem>>, %arg8: memref<32x1xf32, #tpu.memory_space<vmem>>, %arg9: memref<1x1xf32, #tpu.memory_space<vmem>>, %arg10: memref<2x5xf32, #tpu.memory_space<vmem>>, %arg11: memref<2x48x16xf32, #tpu.memory_space<vmem>>) attributes {dimension_semantics = [#tpu.dimension_semantics<parallel>], iteration_bounds = array<i64: 1>, scalar_prefetch = 0 : i64, scratch_operands = 1 : i64, tpu.core_type = #tpu.core_type<tc>, window_params = [{transform_indices = @transform_0, window_bounds = array<i64: 64, 16>}, {pipeline_mode = #tpu.pipeline_mode<synchronous>, transform_indices = @transform_1, window_bounds = array<i64: 6, 128, 16>}, {pipeline_mode = #tpu.pipeline_mode<synchronous>, transform_indices = @transform_2, window_bounds = array<i64: 2, 128, 32>}, {pipeline_mode = #tpu.pipeline_mode<synchronous>, transform_indices = @transform_3, window_bounds = array<i64: 6, 1, 16>}, {pipeline_mode = #tpu.pipeline_mode<synchronous>, transform_indices = @transform_4, window_bounds = array<i64: 2, 1, 16>}, {pipeline_mode = #tpu.pipeline_mode<synchronous>, transform_indices = @transform_5, window_bounds = array<i64: 16, 16>}, {pipeline_mode = #tpu.pipeline_mode<synchronous>, transform_indices = @transform_6, window_bounds = array<i64: 1, 16>}, {pipeline_mode = #tpu.pipeline_mode<synchronous>, transform_indices = @transform_7, window_bounds = array<i64: 32, 1>}, {pipeline_mode = #tpu.pipeline_mode<synchronous>, transform_indices = @transform_8, window_bounds = array<i64: 1, 1>}, {transform_indices = @transform_9, window_bounds = array<i64: 2, 5>}]} {
    %cst = arith.constant 0.000000e+00 : f32
    %0 = vector.broadcast %cst : f32 to vector<2x8x16xf32>
    %c0 = arith.constant 0 : index
    %c0_0 = arith.constant 0 : index
    %c0_1 = arith.constant 0 : index
    %1 = vector.load %arg11[%c0, %c0_0, %c0_1] : memref<2x48x16xf32, #tpu.memory_space<vmem>>, vector<2x8x16xf32>
    tpu.vector_store %arg11[%c0, %c0_0, %c0_1], %0 {strides = array<i32>} : memref<2x48x16xf32, #tpu.memory_space<vmem>>, vector<2x8x16xf32>,
    %cst_2 = arith.constant 0.000000e+00 : f32
    %2 = vector.broadcast %cst_2 : f32 to vector<2x8x16xf32>
    %c0_3 = arith.constant 0 : index
    %c40 = arith.constant 40 : index
    %c0_4 = arith.constant 0 : index
    %3 = vector.load %arg11[%c0_3, %c40, %c0_4] : memref<2x48x16xf32, #tpu.memory_space<vmem>>, vector<2x8x16xf32>
    tpu.vector_store %arg11[%c0_3, %c40, %c0_4], %2 {strides = array<i32>} : memref<2x48x16xf32, #tpu.memory_space<vmem>>, vector<2x8x16xf32>,
    %c0_5 = arith.constant 0 : index
    %c0_6 = arith.constant 0 : index
    %4 = vector.load %arg1[%c0_5, %c0_6] : memref<64x16xf32, #tpu.memory_space<vmem>>, vector<64x16xf32>
    %5 = vector.extract_strided_slice %4 {offsets = [0, 0], sizes = [32, 16], strides = [1, 1]} : vector<64x16xf32> to vector<32x16xf32>
    %c0_7 = arith.constant 0 : index
    %c8 = arith.constant 8 : index
    %c0_8 = arith.constant 0 : index
    %6 = vector.load %arg11[%c0_7, %c8, %c0_8] : memref<2x48x16xf32, #tpu.memory_space<vmem>>, vector<1x32x16xf32>
    %7 = vector.shape_cast %6 : vector<1x32x16xf32> to vector<32x16xf32>
    %8 = vector.shape_cast %5 : vector<32x16xf32> to vector<1x32x16xf32>
    tpu.vector_store %arg11[%c0_7, %c8, %c0_8], %8 {strides = array<i32>} : memref<2x48x16xf32, #tpu.memory_space<vmem>>, vector<1x32x16xf32>,
    %c0_9 = arith.constant 0 : index
    %c5 = arith.constant 5 : index
    %c0_10 = arith.constant 0 : index
    %9 = vector.load %arg11[%c0_9, %c5, %c0_10] : memref<2x48x16xf32, #tpu.memory_space<vmem>>, vector<1x32x16xf32>
    %10 = vector.shape_cast %9 : vector<1x32x16xf32> to vector<32x16xf32>
    %c0_11 = arith.constant 0 : index
    %c6 = arith.constant 6 : index
    %c0_12 = arith.constant 0 : index
    %11 = vector.load %arg11[%c0_11, %c6, %c0_12] : memref<2x48x16xf32, #tpu.memory_space<vmem>>, vector<1x32x16xf32>
    %12 = vector.shape_cast %11 : vector<1x32x16xf32> to vector<32x16xf32>
    %c0_13 = arith.constant 0 : index
    %c7 = arith.constant 7 : index
    %c0_14 = arith.constant 0 : index
    %13 = vector.load %arg11[%c0_13, %c7, %c0_14] : memref<2x48x16xf32, #tpu.memory_space<vmem>>, vector<1x32x16xf32>
    %14 = vector.shape_cast %13 : vector<1x32x16xf32> to vector<32x16xf32>
    %c0_15 = arith.constant 0 : index
    %c8_16 = arith.constant 8 : index
    %c0_17 = arith.constant 0 : index
    %15 = vector.load %arg11[%c0_15, %c8_16, %c0_17] : memref<2x48x16xf32, #tpu.memory_space<vmem>>, vector<1x32x16xf32>
    %16 = vector.shape_cast %15 : vector<1x32x16xf32> to vector<32x16xf32>
    %c0_18 = arith.constant 0 : index
    %c9 = arith.constant 9 : index
    %c0_19 = arith.constant 0 : index
    %17 = vector.load %arg11[%c0_18, %c9, %c0_19] : memref<2x48x16xf32, #tpu.memory_space<vmem>>, vector<1x32x16xf32>
    %18 = vector.shape_cast %17 : vector<1x32x16xf32> to vector<32x16xf32>
    %c0_20 = arith.constant 0 : index
    %c10 = arith.constant 10 : index
    %c0_21 = arith.constant 0 : index
    %19 = vector.load %arg11[%c0_20, %c10, %c0_21] : memref<2x48x16xf32, #tpu.memory_space<vmem>>, vector<1x32x16xf32>
    %20 = vector.shape_cast %19 : vector<1x32x16xf32> to vector<32x16xf32>
    %c0_22 = arith.constant 0 : index
    %c11 = arith.constant 11 : index
    %c0_23 = arith.constant 0 : index
    %21 = vector.load %arg11[%c0_22, %c11, %c0_23] : memref<2x48x16xf32, #tpu.memory_space<vmem>>, vector<1x32x16xf32>
    %22 = vector.shape_cast %21 : vector<1x32x16xf32> to vector<32x16xf32>
    %c0_24 = arith.constant 0 : index
    %c12 = arith.constant 12 : index
    %c0_25 = arith.constant 0 : index
    %23 = vector.load %arg11[%c0_24, %c12, %c0_25] : memref<2x48x16xf32, #tpu.memory_space<vmem>>, vector<1x32x16xf32>
    %24 = vector.shape_cast %23 : vector<1x32x16xf32> to vector<32x16xf32>
    %25 = tpu.concatenate %10, %12, %14, %16, %18, %20, %22, %24 in 1 : vector<32x16xf32>, vector<32x16xf32>, vector<32x16xf32>, vector<32x16xf32>, vector<32x16xf32>, vector<32x16xf32>, vector<32x16xf32>, vector<32x16xf32> -> vector<32x128xf32>
    %26 = vector.extract_strided_slice %4 {offsets = [32, 0], sizes = [32, 16], strides = [1, 1]} : vector<64x16xf32> to vector<32x16xf32>
    %c1 = arith.constant 1 : index
    %c8_26 = arith.constant 8 : index
    %c0_27 = arith.constant 0 : index
    %27 = vector.load %arg11[%c1, %c8_26, %c0_27] : memref<2x48x16xf32, #tpu.memory_space<vmem>>, vector<1x32x16xf32>
    %28 = vector.shape_cast %27 : vector<1x32x16xf32> to vector<32x16xf32>
    %29 = vector.shape_cast %26 : vector<32x16xf32> to vector<1x32x16xf32>
    tpu.vector_store %arg11[%c1, %c8_26, %c0_27], %29 {strides = array<i32>} : memref<2x48x16xf32, #tpu.memory_space<vmem>>, vector<1x32x16xf32>,
    %c1_28 = arith.constant 1 : index
    %c5_29 = arith.constant 5 : index
    %c0_30 = arith.constant 0 : index
    %30 = vector.load %arg11[%c1_28, %c5_29, %c0_30] : memref<2x48x16xf32, #tpu.memory_space<vmem>>, vector<1x32x16xf32>
    %31 = vector.shape_cast %30 : vector<1x32x16xf32> to vector<32x16xf32>
    %c1_31 = arith.constant 1 : index
    %c6_32 = arith.constant 6 : index
    %c0_33 = arith.constant 0 : index
    %32 = vector.load %arg11[%c1_31, %c6_32, %c0_33] : memref<2x48x16xf32, #tpu.memory_space<vmem>>, vector<1x32x16xf32>
    %33 = vector.shape_cast %32 : vector<1x32x16xf32> to vector<32x16xf32>
    %c1_34 = arith.constant 1 : index
    %c7_35 = arith.constant 7 : index
    %c0_36 = arith.constant 0 : index
    %34 = vector.load %arg11[%c1_34, %c7_35, %c0_36] : memref<2x48x16xf32, #tpu.memory_space<vmem>>, vector<1x32x16xf32>
    %35 = vector.shape_cast %34 : vector<1x32x16xf32> to vector<32x16xf32>
    %c1_37 = arith.constant 1 : index
    %c8_38 = arith.constant 8 : index
    %c0_39 = arith.constant 0 : index
    %36 = vector.load %arg11[%c1_37, %c8_38, %c0_39] : memref<2x48x16xf32, #tpu.memory_space<vmem>>, vector<1x32x16xf32>
    %37 = vector.shape_cast %36 : vector<1x32x16xf32> to vector<32x16xf32>
    %c1_40 = arith.constant 1 : index
    %c9_41 = arith.constant 9 : index
    %c0_42 = arith.constant 0 : index
    %38 = vector.load %arg11[%c1_40, %c9_41, %c0_42] : memref<2x48x16xf32, #tpu.memory_space<vmem>>, vector<1x32x16xf32>
    %39 = vector.shape_cast %38 : vector<1x32x16xf32> to vector<32x16xf32>
    %c1_43 = arith.constant 1 : index
    %c10_44 = arith.constant 10 : index
    %c0_45 = arith.constant 0 : index
    %40 = vector.load %arg11[%c1_43, %c10_44, %c0_45] : memref<2x48x16xf32, #tpu.memory_space<vmem>>, vector<1x32x16xf32>
    %41 = vector.shape_cast %40 : vector<1x32x16xf32> to vector<32x16xf32>
    %c1_46 = arith.constant 1 : index
    %c11_47 = arith.constant 11 : index
    %c0_48 = arith.constant 0 : index
    %42 = vector.load %arg11[%c1_46, %c11_47, %c0_48] : memref<2x48x16xf32, #tpu.memory_space<vmem>>, vector<1x32x16xf32>
    %43 = vector.shape_cast %42 : vector<1x32x16xf32> to vector<32x16xf32>
    %c1_49 = arith.constant 1 : index
    %c12_50 = arith.constant 12 : index
    %c0_51 = arith.constant 0 : index
    %44 = vector.load %arg11[%c1_49, %c12_50, %c0_51] : memref<2x48x16xf32, #tpu.memory_space<vmem>>, vector<1x32x16xf32>
    %45 = vector.shape_cast %44 : vector<1x32x16xf32> to vector<32x16xf32>
    %46 = tpu.concatenate %31, %33, %35, %37, %39, %41, %43, %45 in 1 : vector<32x16xf32>, vector<32x16xf32>, vector<32x16xf32>, vector<32x16xf32>, vector<32x16xf32>, vector<32x16xf32>, vector<32x16xf32>, vector<32x16xf32> -> vector<32x128xf32>
    %47 = tpu.concatenate %25, %46 in 0 : vector<32x128xf32>, vector<32x128xf32> -> vector<64x128xf32>
    %48 = arith.truncf %47 : vector<64x128xf32> to vector<64x128xbf16>
    %c0_52 = arith.constant 0 : index
    %c0_53 = arith.constant 0 : index
    %c0_54 = arith.constant 0 : index
    %49 = vector.load %arg2[%c0_52, %c0_53, %c0_54] : memref<6x128x16xbf16, #tpu.memory_space<vmem>>, vector<1x128x16xbf16>
    %50 = vector.shape_cast %49 : vector<1x128x16xbf16> to vector<128x16xbf16>
    %cst_55 = arith.constant dense<0.000000e+00> : vector<64x16xf32>
    %51 = tpu.matmul %48, %50, %cst_55 {dimension_numbers = #tpu.dot_dimension_numbers<[1], [0], [0], [1], [0, 0, 1, 1], [], []>} : vector<64x128xbf16>, vector<128x16xbf16>, vector<64x16xf32> -> vector<64x16xf32>
    %c0_56 = arith.constant 0 : index
    %c0_57 = arith.constant 0 : index
    %c0_58 = arith.constant 0 : index
    %52 = vector.load %arg4[%c0_56, %c0_57, %c0_58] : memref<6x1x16xf32, #tpu.memory_space<vmem>>, vector<1x1x16xf32>
    %53 = vector.shape_cast %52 : vector<1x1x16xf32> to vector<1x16xf32>
    %54 = vector.broadcast %53 : vector<1x16xf32> to vector<64x16xf32>
    %55 = arith.addf %51, %54 : vector<64x16xf32>
    %cst_59 = arith.constant 0.000000e+00 : f32
    %56 = vector.broadcast %cst_59 : f32 to vector<64x16xf32>
    %57 = arith.maximumf %55, %56 : vector<64x16xf32>
    %58 = vector.extract_strided_slice %57 {offsets = [0, 0], sizes = [32, 16], strides = [1, 1]} : vector<64x16xf32> to vector<32x16xf32>
    %c0_60 = arith.constant 0 : index
    %c8_61 = arith.constant 8 : index
    %c0_62 = arith.constant 0 : index
    %59 = vector.load %arg11[%c0_60, %c8_61, %c0_62] : memref<2x48x16xf32, #tpu.memory_space<vmem>>, vector<1x32x16xf32>
    %60 = vector.shape_cast %59 : vector<1x32x16xf32> to vector<32x16xf32>
    %61 = vector.shape_cast %58 : vector<32x16xf32> to vector<1x32x16xf32>
    tpu.vector_store %arg11[%c0_60, %c8_61, %c0_62], %61 {strides = array<i32>} : memref<2x48x16xf32, #tpu.memory_space<vmem>>, vector<1x32x16xf32>,
    %c0_63 = arith.constant 0 : index
    %c5_64 = arith.constant 5 : index
    %c0_65 = arith.constant 0 : index
    %62 = vector.load %arg11[%c0_63, %c5_64, %c0_65] : memref<2x48x16xf32, #tpu.memory_space<vmem>>, vector<1x32x16xf32>
    %63 = vector.shape_cast %62 : vector<1x32x16xf32> to vector<32x16xf32>
    %c0_66 = arith.constant 0 : index
    %c6_67 = arith.constant 6 : index
    %c0_68 = arith.constant 0 : index
    %64 = vector.load %arg11[%c0_66, %c6_67, %c0_68] : memref<2x48x16xf32, #tpu.memory_space<vmem>>, vector<1x32x16xf32>
    %65 = vector.shape_cast %64 : vector<1x32x16xf32> to vector<32x16xf32>
    %c0_69 = arith.constant 0 : index
    %c7_70 = arith.constant 7 : index
    %c0_71 = arith.constant 0 : index
    %66 = vector.load %arg11[%c0_69, %c7_70, %c0_71] : memref<2x48x16xf32, #tpu.memory_space<vmem>>, vector<1x32x16xf32>
    %67 = vector.shape_cast %66 : vector<1x32x16xf32> to vector<32x16xf32>
    %c0_72 = arith.constant 0 : index
    %c8_73 = arith.constant 8 : index
    %c0_74 = arith.constant 0 : index
    %68 = vector.load %arg11[%c0_72, %c8_73, %c0_74] : memref<2x48x16xf32, #tpu.memory_space<vmem>>, vector<1x32x16xf32>
    %69 = vector.shape_cast %68 : vector<1x32x16xf32> to vector<32x16xf32>
    %c0_75 = arith.constant 0 : index
    %c9_76 = arith.constant 9 : index
    %c0_77 = arith.constant 0 : index
    %70 = vector.load %arg11[%c0_75, %c9_76, %c0_77] : memref<2x48x16xf32, #tpu.memory_space<vmem>>, vector<1x32x16xf32>
    %71 = vector.shape_cast %70 : vector<1x32x16xf32> to vector<32x16xf32>
    %c0_78 = arith.constant 0 : index
    %c10_79 = arith.constant 10 : index
    %c0_80 = arith.constant 0 : index
    %72 = vector.load %arg11[%c0_78, %c10_79, %c0_80] : memref<2x48x16xf32, #tpu.memory_space<vmem>>, vector<1x32x16xf32>
    %73 = vector.shape_cast %72 : vector<1x32x16xf32> to vector<32x16xf32>
    %c0_81 = arith.constant 0 : index
    %c11_82 = arith.constant 11 : index
    %c0_83 = arith.constant 0 : index
    %74 = vector.load %arg11[%c0_81, %c11_82, %c0_83] : memref<2x48x16xf32, #tpu.memory_space<vmem>>, vector<1x32x16xf32>
    %75 = vector.shape_cast %74 : vector<1x32x16xf32> to vector<32x16xf32>
    %c0_84 = arith.constant 0 : index
    %c12_85 = arith.constant 12 : index
    %c0_86 = arith.constant 0 : index
    %76 = vector.load %arg11[%c0_84, %c12_85, %c0_86] : memref<2x48x16xf32, #tpu.memory_space<vmem>>, vector<1x32x16xf32>
    %77 = vector.shape_cast %76 : vector<1x32x16xf32> to vector<32x16xf32>
    %78 = tpu.concatenate %63, %65, %67, %69, %71, %73, %75, %77 in 1 : vector<32x16xf32>, vector<32x16xf32>, vector<32x16xf32>, vector<32x16xf32>, vector<32x16xf32>, vector<32x16xf32>, vector<32x16xf32>, vector<32x16xf32> -> vector<32x128xf32>
    %79 = vector.extract_strided_slice %57 {offsets = [32, 0], sizes = [32, 16], strides = [1, 1]} : vector<64x16xf32> to vector<32x16xf32>
    %c1_87 = arith.constant 1 : index
    %c8_88 = arith.constant 8 : index
    %c0_89 = arith.constant 0 : index
    %80 = vector.load %arg11[%c1_87, %c8_88, %c0_89] : memref<2x48x16xf32, #tpu.memory_space<vmem>>, vector<1x32x16xf32>
    %81 = vector.shape_cast %80 : vector<1x32x16xf32> to vector<32x16xf32>
    %82 = vector.shape_cast %79 : vector<32x16xf32> to vector<1x32x16xf32>
    tpu.vector_store %arg11[%c1_87, %c8_88, %c0_89], %82 {strides = array<i32>} : memref<2x48x16xf32, #tpu.memory_space<vmem>>, vector<1x32x16xf32>,
    %c1_90 = arith.constant 1 : index
    %c5_91 = arith.constant 5 : index
    %c0_92 = arith.constant 0 : index
    %83 = vector.load %arg11[%c1_90, %c5_91, %c0_92] : memref<2x48x16xf32, #tpu.memory_space<vmem>>, vector<1x32x16xf32>
    %84 = vector.shape_cast %83 : vector<1x32x16xf32> to vector<32x16xf32>
    %c1_93 = arith.constant 1 : index
    %c6_94 = arith.constant 6 : index
    %c0_95 = arith.constant 0 : index
    %85 = vector.load %arg11[%c1_93, %c6_94, %c0_95] : memref<2x48x16xf32, #tpu.memory_space<vmem>>, vector<1x32x16xf32>
    %86 = vector.shape_cast %85 : vector<1x32x16xf32> to vector<32x16xf32>
    %c1_96 = arith.constant 1 : index
    %c7_97 = arith.constant 7 : index
    %c0_98 = arith.constant 0 : index
    %87 = vector.load %arg11[%c1_96, %c7_97, %c0_98] : memref<2x48x16xf32, #tpu.memory_space<vmem>>, vector<1x32x16xf32>
    %88 = vector.shape_cast %87 : vector<1x32x16xf32> to vector<32x16xf32>
    %c1_99 = arith.constant 1 : index
    %c8_100 = arith.constant 8 : index
    %c0_101 = arith.constant 0 : index
    %89 = vector.load %arg11[%c1_99, %c8_100, %c0_101] : memref<2x48x16xf32, #tpu.memory_space<vmem>>, vector<1x32x16xf32>
    %90 = vector.shape_cast %89 : vector<1x32x16xf32> to vector<32x16xf32>
    %c1_102 = arith.constant 1 : index
    %c9_103 = arith.constant 9 : index
    %c0_104 = arith.constant 0 : index
    %91 = vector.load %arg11[%c1_102, %c9_103, %c0_104] : memref<2x48x16xf32, #tpu.memory_space<vmem>>, vector<1x32x16xf32>
    %92 = vector.shape_cast %91 : vector<1x32x16xf32> to vector<32x16xf32>
    %c1_105 = arith.constant 1 : index
    %c10_106 = arith.constant 10 : index
    %c0_107 = arith.constant 0 : index
    %93 = vector.load %arg11[%c1_105, %c10_106, %c0_107] : memref<2x48x16xf32, #tpu.memory_space<vmem>>, vector<1x32x16xf32>
    %94 = vector.shape_cast %93 : vector<1x32x16xf32> to vector<32x16xf32>
    %c1_108 = arith.constant 1 : index
    %c11_109 = arith.constant 11 : index
    %c0_110 = arith.constant 0 : index
    %95 = vector.load %arg11[%c1_108, %c11_109, %c0_110] : memref<2x48x16xf32, #tpu.memory_space<vmem>>, vector<1x32x16xf32>
    %96 = vector.shape_cast %95 : vector<1x32x16xf32> to vector<32x16xf32>
    %c1_111 = arith.constant 1 : index
    %c12_112 = arith.constant 12 : index
    %c0_113 = arith.constant 0 : index
    %97 = vector.load %arg11[%c1_111, %c12_112, %c0_113] : memref<2x48x16xf32, #tpu.memory_space<vmem>>, vector<1x32x16xf32>
    %98 = vector.shape_cast %97 : vector<1x32x16xf32> to vector<32x16xf32>
    %99 = tpu.concatenate %84, %86, %88, %90, %92, %94, %96, %98 in 1 : vector<32x16xf32>, vector<32x16xf32>, vector<32x16xf32>, vector<32x16xf32>, vector<32x16xf32>, vector<32x16xf32>, vector<32x16xf32>, vector<32x16xf32> -> vector<32x128xf32>
    %100 = tpu.concatenate %78, %99 in 0 : vector<32x128xf32>, vector<32x128xf32> -> vector<64x128xf32>
    %101 = arith.truncf %100 : vector<64x128xf32> to vector<64x128xbf16>
    %c1_114 = arith.constant 1 : index
    %c0_115 = arith.constant 0 : index
    %c0_116 = arith.constant 0 : index
    %102 = vector.load %arg2[%c1_114, %c0_115, %c0_116] : memref<6x128x16xbf16, #tpu.memory_space<vmem>>, vector<1x128x16xbf16>
    %103 = vector.shape_cast %102 : vector<1x128x16xbf16> to vector<128x16xbf16>
    %cst_117 = arith.constant dense<0.000000e+00> : vector<64x16xf32>
    %104 = tpu.matmul %101, %103, %cst_117 {dimension_numbers = #tpu.dot_dimension_numbers<[1], [0], [0], [1], [0, 0, 1, 1], [], []>} : vector<64x128xbf16>, vector<128x16xbf16>, vector<64x16xf32> -> vector<64x16xf32>
    %c1_118 = arith.constant 1 : index
    %c0_119 = arith.constant 0 : index
    %c0_120 = arith.constant 0 : index
    %105 = vector.load %arg4[%c1_118, %c0_119, %c0_120] : memref<6x1x16xf32, #tpu.memory_space<vmem>>, vector<1x1x16xf32>
    %106 = vector.shape_cast %105 : vector<1x1x16xf32> to vector<1x16xf32>
    %107 = vector.broadcast %106 : vector<1x16xf32> to vector<64x16xf32>
    %108 = arith.addf %104, %107 : vector<64x16xf32>
    %cst_121 = arith.constant 0.000000e+00 : f32
    %109 = vector.broadcast %cst_121 : f32 to vector<64x16xf32>
    %110 = arith.maximumf %108, %109 : vector<64x16xf32>
    %111 = vector.extract_strided_slice %110 {offsets = [0, 0], sizes = [32, 16], strides = [1, 1]} : vector<64x16xf32> to vector<32x16xf32>
    %c0_122 = arith.constant 0 : index
    %c8_123 = arith.constant 8 : index
    %c0_124 = arith.constant 0 : index
    %112 = vector.load %arg11[%c0_122, %c8_123, %c0_124] : memref<2x48x16xf32, #tpu.memory_space<vmem>>, vector<1x32x16xf32>
    %113 = vector.shape_cast %112 : vector<1x32x16xf32> to vector<32x16xf32>
    %114 = vector.shape_cast %111 : vector<32x16xf32> to vector<1x32x16xf32>
    tpu.vector_store %arg11[%c0_122, %c8_123, %c0_124], %114 {strides = array<i32>} : memref<2x48x16xf32, #tpu.memory_space<vmem>>, vector<1x32x16xf32>,
    %c0_125 = arith.constant 0 : index
    %c5_126 = arith.constant 5 : index
    %c0_127 = arith.constant 0 : index
    %115 = vector.load %arg11[%c0_125, %c5_126, %c0_127] : memref<2x48x16xf32, #tpu.memory_space<vmem>>, vector<1x32x16xf32>
    %116 = vector.shape_cast %115 : vector<1x32x16xf32> to vector<32x16xf32>
    %c0_128 = arith.constant 0 : index
    %c6_129 = arith.constant 6 : index
    %c0_130 = arith.constant 0 : index
    %117 = vector.load %arg11[%c0_128, %c6_129, %c0_130] : memref<2x48x16xf32, #tpu.memory_space<vmem>>, vector<1x32x16xf32>
    %118 = vector.shape_cast %117 : vector<1x32x16xf32> to vector<32x16xf32>
    %c0_131 = arith.constant 0 : index
    %c7_132 = arith.constant 7 : index
    %c0_133 = arith.constant 0 : index
    %119 = vector.load %arg11[%c0_131, %c7_132, %c0_133] : memref<2x48x16xf32, #tpu.memory_space<vmem>>, vector<1x32x16xf32>
    %120 = vector.shape_cast %119 : vector<1x32x16xf32> to vector<32x16xf32>
    %c0_134 = arith.constant 0 : index
    %c8_135 = arith.constant 8 : index
    %c0_136 = arith.constant 0 : index
    %121 = vector.load %arg11[%c0_134, %c8_135, %c0_136] : memref<2x48x16xf32, #tpu.memory_space<vmem>>, vector<1x32x16xf32>
    %122 = vector.shape_cast %121 : vector<1x32x16xf32> to vector<32x16xf32>
    %c0_137 = arith.constant 0 : index
    %c9_138 = arith.constant 9 : index
    %c0_139 = arith.constant 0 : index
    %123 = vector.load %arg11[%c0_137, %c9_138, %c0_139] : memref<2x48x16xf32, #tpu.memory_space<vmem>>, vector<1x32x16xf32>
    %124 = vector.shape_cast %123 : vector<1x32x16xf32> to vector<32x16xf32>
    %c0_140 = arith.constant 0 : index
    %c10_141 = arith.constant 10 : index
    %c0_142 = arith.constant 0 : index
    %125 = vector.load %arg11[%c0_140, %c10_141, %c0_142] : memref<2x48x16xf32, #tpu.memory_space<vmem>>, vector<1x32x16xf32>
    %126 = vector.shape_cast %125 : vector<1x32x16xf32> to vector<32x16xf32>
    %c0_143 = arith.constant 0 : index
    %c11_144 = arith.constant 11 : index
    %c0_145 = arith.constant 0 : index
    %127 = vector.load %arg11[%c0_143, %c11_144, %c0_145] : memref<2x48x16xf32, #tpu.memory_space<vmem>>, vector<1x32x16xf32>
    %128 = vector.shape_cast %127 : vector<1x32x16xf32> to vector<32x16xf32>
    %c0_146 = arith.constant 0 : index
    %c12_147 = arith.constant 12 : index
    %c0_148 = arith.constant 0 : index
    %129 = vector.load %arg11[%c0_146, %c12_147, %c0_148] : memref<2x48x16xf32, #tpu.memory_space<vmem>>, vector<1x32x16xf32>
    %130 = vector.shape_cast %129 : vector<1x32x16xf32> to vector<32x16xf32>
    %131 = tpu.concatenate %116, %118, %120, %122, %124, %126, %128, %130 in 1 : vector<32x16xf32>, vector<32x16xf32>, vector<32x16xf32>, vector<32x16xf32>, vector<32x16xf32>, vector<32x16xf32>, vector<32x16xf32>, vector<32x16xf32> -> vector<32x128xf32>
    %132 = vector.extract_strided_slice %110 {offsets = [32, 0], sizes = [32, 16], strides = [1, 1]} : vector<64x16xf32> to vector<32x16xf32>
    %c1_149 = arith.constant 1 : index
    %c8_150 = arith.constant 8 : index
    %c0_151 = arith.constant 0 : index
    %133 = vector.load %arg11[%c1_149, %c8_150, %c0_151] : memref<2x48x16xf32, #tpu.memory_space<vmem>>, vector<1x32x16xf32>
    %134 = vector.shape_cast %133 : vector<1x32x16xf32> to vector<32x16xf32>
    %135 = vector.shape_cast %132 : vector<32x16xf32> to vector<1x32x16xf32>
    tpu.vector_store %arg11[%c1_149, %c8_150, %c0_151], %135 {strides = array<i32>} : memref<2x48x16xf32, #tpu.memory_space<vmem>>, vector<1x32x16xf32>,
    %c1_152 = arith.constant 1 : index
    %c5_153 = arith.constant 5 : index
    %c0_154 = arith.constant 0 : index
    %136 = vector.load %arg11[%c1_152, %c5_153, %c0_154] : memref<2x48x16xf32, #tpu.memory_space<vmem>>, vector<1x32x16xf32>
    %137 = vector.shape_cast %136 : vector<1x32x16xf32> to vector<32x16xf32>
    %c1_155 = arith.constant 1 : index
    %c6_156 = arith.constant 6 : index
    %c0_157 = arith.constant 0 : index
    %138 = vector.load %arg11[%c1_155, %c6_156, %c0_157] : memref<2x48x16xf32, #tpu.memory_space<vmem>>, vector<1x32x16xf32>
    %139 = vector.shape_cast %138 : vector<1x32x16xf32> to vector<32x16xf32>
    %c1_158 = arith.constant 1 : index
    %c7_159 = arith.constant 7 : index
    %c0_160 = arith.constant 0 : index
    %140 = vector.load %arg11[%c1_158, %c7_159, %c0_160] : memref<2x48x16xf32, #tpu.memory_space<vmem>>, vector<1x32x16xf32>
    %141 = vector.shape_cast %140 : vector<1x32x16xf32> to vector<32x16xf32>
    %c1_161 = arith.constant 1 : index
    %c8_162 = arith.constant 8 : index
    %c0_163 = arith.constant 0 : index
    %142 = vector.load %arg11[%c1_161, %c8_162, %c0_163] : memref<2x48x16xf32, #tpu.memory_space<vmem>>, vector<1x32x16xf32>
    %143 = vector.shape_cast %142 : vector<1x32x16xf32> to vector<32x16xf32>
    %c1_164 = arith.constant 1 : index
    %c9_165 = arith.constant 9 : index
    %c0_166 = arith.constant 0 : index
    %144 = vector.load %arg11[%c1_164, %c9_165, %c0_166] : memref<2x48x16xf32, #tpu.memory_space<vmem>>, vector<1x32x16xf32>
    %145 = vector.shape_cast %144 : vector<1x32x16xf32> to vector<32x16xf32>
    %c1_167 = arith.constant 1 : index
    %c10_168 = arith.constant 10 : index
    %c0_169 = arith.constant 0 : index
    %146 = vector.load %arg11[%c1_167, %c10_168, %c0_169] : memref<2x48x16xf32, #tpu.memory_space<vmem>>, vector<1x32x16xf32>
    %147 = vector.shape_cast %146 : vector<1x32x16xf32> to vector<32x16xf32>
    %c1_170 = arith.constant 1 : index
    %c11_171 = arith.constant 11 : index
    %c0_172 = arith.constant 0 : index
    %148 = vector.load %arg11[%c1_170, %c11_171, %c0_172] : memref<2x48x16xf32, #tpu.memory_space<vmem>>, vector<1x32x16xf32>
    %149 = vector.shape_cast %148 : vector<1x32x16xf32> to vector<32x16xf32>
    %c1_173 = arith.constant 1 : index
    %c12_174 = arith.constant 12 : index
    %c0_175 = arith.constant 0 : index
    %150 = vector.load %arg11[%c1_173, %c12_174, %c0_175] : memref<2x48x16xf32, #tpu.memory_space<vmem>>, vector<1x32x16xf32>
    %151 = vector.shape_cast %150 : vector<1x32x16xf32> to vector<32x16xf32>
    %152 = tpu.concatenate %137, %139, %141, %143, %145, %147, %149, %151 in 1 : vector<32x16xf32>, vector<32x16xf32>, vector<32x16xf32>, vector<32x16xf32>, vector<32x16xf32>, vector<32x16xf32>, vector<32x16xf32>, vector<32x16xf32> -> vector<32x128xf32>
    %153 = tpu.concatenate %131, %152 in 0 : vector<32x128xf32>, vector<32x128xf32> -> vector<64x128xf32>
    %154 = arith.truncf %153 : vector<64x128xf32> to vector<64x128xbf16>
    %155 = vector.extract_strided_slice %4 {offsets = [0, 0], sizes = [32, 16], strides = [1, 1]} : vector<64x16xf32> to vector<32x16xf32>
    %c0_176 = arith.constant 0 : index
    %c8_177 = arith.constant 8 : index
    %c0_178 = arith.constant 0 : index
    %156 = vector.load %arg11[%c0_176, %c8_177, %c0_178] : memref<2x48x16xf32, #tpu.memory_space<vmem>>, vector<1x32x16xf32>
    %157 = vector.shape_cast %156 : vector<1x32x16xf32> to vector<32x16xf32>
    %158 = vector.shape_cast %155 : vector<32x16xf32> to vector<1x32x16xf32>
    tpu.vector_store %arg11[%c0_176, %c8_177, %c0_178], %158 {strides = array<i32>} : memref<2x48x16xf32, #tpu.memory_space<vmem>>, vector<1x32x16xf32>,
    %c0_179 = arith.constant 0 : index
    %c5_180 = arith.constant 5 : index
    %c0_181 = arith.constant 0 : index
    %159 = vector.load %arg11[%c0_179, %c5_180, %c0_181] : memref<2x48x16xf32, #tpu.memory_space<vmem>>, vector<1x32x16xf32>
    %160 = vector.shape_cast %159 : vector<1x32x16xf32> to vector<32x16xf32>
    %c0_182 = arith.constant 0 : index
    %c6_183 = arith.constant 6 : index
    %c0_184 = arith.constant 0 : index
    %161 = vector.load %arg11[%c0_182, %c6_183, %c0_184] : memref<2x48x16xf32, #tpu.memory_space<vmem>>, vector<1x32x16xf32>
    %162 = vector.shape_cast %161 : vector<1x32x16xf32> to vector<32x16xf32>
    %c0_185 = arith.constant 0 : index
    %c7_186 = arith.constant 7 : index
    %c0_187 = arith.constant 0 : index
    %163 = vector.load %arg11[%c0_185, %c7_186, %c0_187] : memref<2x48x16xf32, #tpu.memory_space<vmem>>, vector<1x32x16xf32>
    %164 = vector.shape_cast %163 : vector<1x32x16xf32> to vector<32x16xf32>
    %c0_188 = arith.constant 0 : index
    %c8_189 = arith.constant 8 : index
    %c0_190 = arith.constant 0 : index
    %165 = vector.load %arg11[%c0_188, %c8_189, %c0_190] : memref<2x48x16xf32, #tpu.memory_space<vmem>>, vector<1x32x16xf32>
    %166 = vector.shape_cast %165 : vector<1x32x16xf32> to vector<32x16xf32>
    %c0_191 = arith.constant 0 : index
    %c9_192 = arith.constant 9 : index
    %c0_193 = arith.constant 0 : index
    %167 = vector.load %arg11[%c0_191, %c9_192, %c0_193] : memref<2x48x16xf32, #tpu.memory_space<vmem>>, vector<1x32x16xf32>
    %168 = vector.shape_cast %167 : vector<1x32x16xf32> to vector<32x16xf32>
    %c0_194 = arith.constant 0 : index
    %c10_195 = arith.constant 10 : index
    %c0_196 = arith.constant 0 : index
    %169 = vector.load %arg11[%c0_194, %c10_195, %c0_196] : memref<2x48x16xf32, #tpu.memory_space<vmem>>, vector<1x32x16xf32>
    %170 = vector.shape_cast %169 : vector<1x32x16xf32> to vector<32x16xf32>
    %c0_197 = arith.constant 0 : index
    %c11_198 = arith.constant 11 : index
    %c0_199 = arith.constant 0 : index
    %171 = vector.load %arg11[%c0_197, %c11_198, %c0_199] : memref<2x48x16xf32, #tpu.memory_space<vmem>>, vector<1x32x16xf32>
    %172 = vector.shape_cast %171 : vector<1x32x16xf32> to vector<32x16xf32>
    %c0_200 = arith.constant 0 : index
    %c12_201 = arith.constant 12 : index
    %c0_202 = arith.constant 0 : index
    %173 = vector.load %arg11[%c0_200, %c12_201, %c0_202] : memref<2x48x16xf32, #tpu.memory_space<vmem>>, vector<1x32x16xf32>
    %174 = vector.shape_cast %173 : vector<1x32x16xf32> to vector<32x16xf32>
    %175 = tpu.concatenate %160, %162, %164, %166, %168, %170, %172, %174 in 1 : vector<32x16xf32>, vector<32x16xf32>, vector<32x16xf32>, vector<32x16xf32>, vector<32x16xf32>, vector<32x16xf32>, vector<32x16xf32>, vector<32x16xf32> -> vector<32x128xf32>
    %176 = vector.extract_strided_slice %4 {offsets = [32, 0], sizes = [32, 16], strides = [1, 1]} : vector<64x16xf32> to vector<32x16xf32>
    %c1_203 = arith.constant 1 : index
    %c8_204 = arith.constant 8 : index
    %c0_205 = arith.constant 0 : index
    %177 = vector.load %arg11[%c1_203, %c8_204, %c0_205] : memref<2x48x16xf32, #tpu.memory_space<vmem>>, vector<1x32x16xf32>
    %178 = vector.shape_cast %177 : vector<1x32x16xf32> to vector<32x16xf32>
    %179 = vector.shape_cast %176 : vector<32x16xf32> to vector<1x32x16xf32>
    tpu.vector_store %arg11[%c1_203, %c8_204, %c0_205], %179 {strides = array<i32>} : memref<2x48x16xf32, #tpu.memory_space<vmem>>, vector<1x32x16xf32>,
    %c1_206 = arith.constant 1 : index
    %c5_207 = arith.constant 5 : index
    %c0_208 = arith.constant 0 : index
    %180 = vector.load %arg11[%c1_206, %c5_207, %c0_208] : memref<2x48x16xf32, #tpu.memory_space<vmem>>, vector<1x32x16xf32>
    %181 = vector.shape_cast %180 : vector<1x32x16xf32> to vector<32x16xf32>
    %c1_209 = arith.constant 1 : index
    %c6_210 = arith.constant 6 : index
    %c0_211 = arith.constant 0 : index
    %182 = vector.load %arg11[%c1_209, %c6_210, %c0_211] : memref<2x48x16xf32, #tpu.memory_space<vmem>>, vector<1x32x16xf32>
    %183 = vector.shape_cast %182 : vector<1x32x16xf32> to vector<32x16xf32>
    %c1_212 = arith.constant 1 : index
    %c7_213 = arith.constant 7 : index
    %c0_214 = arith.constant 0 : index
    %184 = vector.load %arg11[%c1_212, %c7_213, %c0_214] : memref<2x48x16xf32, #tpu.memory_space<vmem>>, vector<1x32x16xf32>
    %185 = vector.shape_cast %184 : vector<1x32x16xf32> to vector<32x16xf32>
    %c1_215 = arith.constant 1 : index
    %c8_216 = arith.constant 8 : index
    %c0_217 = arith.constant 0 : index
    %186 = vector.load %arg11[%c1_215, %c8_216, %c0_217] : memref<2x48x16xf32, #tpu.memory_space<vmem>>, vector<1x32x16xf32>
    %187 = vector.shape_cast %186 : vector<1x32x16xf32> to vector<32x16xf32>
    %c1_218 = arith.constant 1 : index
    %c9_219 = arith.constant 9 : index
    %c0_220 = arith.constant 0 : index
    %188 = vector.load %arg11[%c1_218, %c9_219, %c0_220] : memref<2x48x16xf32, #tpu.memory_space<vmem>>, vector<1x32x16xf32>
    %189 = vector.shape_cast %188 : vector<1x32x16xf32> to vector<32x16xf32>
    %c1_221 = arith.constant 1 : index
    %c10_222 = arith.constant 10 : index
    %c0_223 = arith.constant 0 : index
    %190 = vector.load %arg11[%c1_221, %c10_222, %c0_223] : memref<2x48x16xf32, #tpu.memory_space<vmem>>, vector<1x32x16xf32>
    %191 = vector.shape_cast %190 : vector<1x32x16xf32> to vector<32x16xf32>
    %c1_224 = arith.constant 1 : index
    %c11_225 = arith.constant 11 : index
    %c0_226 = arith.constant 0 : index
    %192 = vector.load %arg11[%c1_224, %c11_225, %c0_226] : memref<2x48x16xf32, #tpu.memory_space<vmem>>, vector<1x32x16xf32>
    %193 = vector.shape_cast %192 : vector<1x32x16xf32> to vector<32x16xf32>
    %c1_227 = arith.constant 1 : index
    %c12_228 = arith.constant 12 : index
    %c0_229 = arith.constant 0 : index
    %194 = vector.load %arg11[%c1_227, %c12_228, %c0_229] : memref<2x48x16xf32, #tpu.memory_space<vmem>>, vector<1x32x16xf32>
    %195 = vector.shape_cast %194 : vector<1x32x16xf32> to vector<32x16xf32>
    %196 = tpu.concatenate %181, %183, %185, %187, %189, %191, %193, %195 in 1 : vector<32x16xf32>, vector<32x16xf32>, vector<32x16xf32>, vector<32x16xf32>, vector<32x16xf32>, vector<32x16xf32>, vector<32x16xf32>, vector<32x16xf32> -> vector<32x128xf32>
    %197 = tpu.concatenate %175, %196 in 0 : vector<32x128xf32>, vector<32x128xf32> -> vector<64x128xf32>
    %198 = arith.truncf %197 : vector<64x128xf32> to vector<64x128xbf16>
    %199 = tpu.concatenate %154, %198 in 0 : vector<64x128xbf16>, vector<64x128xbf16> -> vector<128x128xbf16>
    %c0_230 = arith.constant 0 : index
    %c0_231 = arith.constant 0 : index
    %c0_232 = arith.constant 0 : index
    %200 = vector.load %arg3[%c0_230, %c0_231, %c0_232] : memref<2x128x32xbf16, #tpu.memory_space<vmem>>, vector<1x128x32xbf16>
    %201 = vector.shape_cast %200 : vector<1x128x32xbf16> to vector<128x32xbf16>
    %cst_233 = arith.constant dense<0.000000e+00> : vector<128x32xf32>
    %202 = tpu.matmul %199, %201, %cst_233 {dimension_numbers = #tpu.dot_dimension_numbers<[1], [0], [0], [1], [0, 0, 1, 1], [], []>} : vector<128x128xbf16>, vector<128x32xbf16>, vector<128x32xf32> -> vector<128x32xf32>
    %203 = vector.extract_strided_slice %202 {offsets = [0, 0], sizes = [64, 16], strides = [1, 1]} : vector<128x32xf32> to vector<64x16xf32>
    %c2 = arith.constant 2 : index
    %c0_234 = arith.constant 0 : index
    %c0_235 = arith.constant 0 : index
    %204 = vector.load %arg4[%c2, %c0_234, %c0_235] : memref<6x1x16xf32, #tpu.memory_space<vmem>>, vector<1x1x16xf32>
    %205 = vector.shape_cast %204 : vector<1x1x16xf32> to vector<1x16xf32>
    %206 = vector.broadcast %205 : vector<1x16xf32> to vector<64x16xf32>
    %207 = arith.addf %203, %206 : vector<64x16xf32>
    %cst_236 = arith.constant 0.000000e+00 : f32
    %208 = vector.broadcast %cst_236 : f32 to vector<64x16xf32>
    %209 = arith.maximumf %207, %208 : vector<64x16xf32>
    %210 = vector.extract_strided_slice %202 {offsets = [64, 16], sizes = [64, 16], strides = [1, 1]} : vector<128x32xf32> to vector<64x16xf32>
    %c0_237 = arith.constant 0 : index
    %c0_238 = arith.constant 0 : index
    %c0_239 = arith.constant 0 : index
    %211 = vector.load %arg5[%c0_237, %c0_238, %c0_239] : memref<2x1x16xf32, #tpu.memory_space<vmem>>, vector<1x1x16xf32>
    %212 = vector.shape_cast %211 : vector<1x1x16xf32> to vector<1x16xf32>
    %213 = vector.broadcast %212 : vector<1x16xf32> to vector<64x16xf32>
    %214 = arith.addf %210, %213 : vector<64x16xf32>
    %215 = arith.addf %209, %214 : vector<64x16xf32>
    %cst_240 = arith.constant 0.000000e+00 : f32
    %216 = vector.broadcast %cst_240 : f32 to vector<64x16xf32>
    %217 = arith.maximumf %215, %216 : vector<64x16xf32>
    %218 = vector.extract_strided_slice %217 {offsets = [0, 0], sizes = [32, 16], strides = [1, 1]} : vector<64x16xf32> to vector<32x16xf32>
    %c0_241 = arith.constant 0 : index
    %c8_242 = arith.constant 8 : index
    %c0_243 = arith.constant 0 : index
    %219 = vector.load %arg11[%c0_241, %c8_242, %c0_243] : memref<2x48x16xf32, #tpu.memory_space<vmem>>, vector<1x32x16xf32>
    %220 = vector.shape_cast %219 : vector<1x32x16xf32> to vector<32x16xf32>
    %221 = vector.shape_cast %218 : vector<32x16xf32> to vector<1x32x16xf32>
    tpu.vector_store %arg11[%c0_241, %c8_242, %c0_243], %221 {strides = array<i32>} : memref<2x48x16xf32, #tpu.memory_space<vmem>>, vector<1x32x16xf32>,
    %c0_244 = arith.constant 0 : index
    %c5_245 = arith.constant 5 : index
    %c0_246 = arith.constant 0 : index
    %222 = vector.load %arg11[%c0_244, %c5_245, %c0_246] : memref<2x48x16xf32, #tpu.memory_space<vmem>>, vector<1x32x16xf32>
    %223 = vector.shape_cast %222 : vector<1x32x16xf32> to vector<32x16xf32>
    %c0_247 = arith.constant 0 : index
    %c6_248 = arith.constant 6 : index
    %c0_249 = arith.constant 0 : index
    %224 = vector.load %arg11[%c0_247, %c6_248, %c0_249] : memref<2x48x16xf32, #tpu.memory_space<vmem>>, vector<1x32x16xf32>
    %225 = vector.shape_cast %224 : vector<1x32x16xf32> to vector<32x16xf32>
    %c0_250 = arith.constant 0 : index
    %c7_251 = arith.constant 7 : index
    %c0_252 = arith.constant 0 : index
    %226 = vector.load %arg11[%c0_250, %c7_251, %c0_252] : memref<2x48x16xf32, #tpu.memory_space<vmem>>, vector<1x32x16xf32>
    %227 = vector.shape_cast %226 : vector<1x32x16xf32> to vector<32x16xf32>
    %c0_253 = arith.constant 0 : index
    %c8_254 = arith.constant 8 : index
    %c0_255 = arith.constant 0 : index
    %228 = vector.load %arg11[%c0_253, %c8_254, %c0_255] : memref<2x48x16xf32, #tpu.memory_space<vmem>>, vector<1x32x16xf32>
    %229 = vector.shape_cast %228 : vector<1x32x16xf32> to vector<32x16xf32>
    %c0_256 = arith.constant 0 : index
    %c9_257 = arith.constant 9 : index
    %c0_258 = arith.constant 0 : index
    %230 = vector.load %arg11[%c0_256, %c9_257, %c0_258] : memref<2x48x16xf32, #tpu.memory_space<vmem>>, vector<1x32x16xf32>
    %231 = vector.shape_cast %230 : vector<1x32x16xf32> to vector<32x16xf32>
    %c0_259 = arith.constant 0 : index
    %c10_260 = arith.constant 10 : index
    %c0_261 = arith.constant 0 : index
    %232 = vector.load %arg11[%c0_259, %c10_260, %c0_261] : memref<2x48x16xf32, #tpu.memory_space<vmem>>, vector<1x32x16xf32>
    %233 = vector.shape_cast %232 : vector<1x32x16xf32> to vector<32x16xf32>
    %c0_262 = arith.constant 0 : index
    %c11_263 = arith.constant 11 : index
    %c0_264 = arith.constant 0 : index
    %234 = vector.load %arg11[%c0_262, %c11_263, %c0_264] : memref<2x48x16xf32, #tpu.memory_space<vmem>>, vector<1x32x16xf32>
    %235 = vector.shape_cast %234 : vector<1x32x16xf32> to vector<32x16xf32>
    %c0_265 = arith.constant 0 : index
    %c12_266 = arith.constant 12 : index
    %c0_267 = arith.constant 0 : index
    %236 = vector.load %arg11[%c0_265, %c12_266, %c0_267] : memref<2x48x16xf32, #tpu.memory_space<vmem>>, vector<1x32x16xf32>
    %237 = vector.shape_cast %236 : vector<1x32x16xf32> to vector<32x16xf32>
    %238 = tpu.concatenate %223, %225, %227, %229, %231, %233, %235, %237 in 1 : vector<32x16xf32>, vector<32x16xf32>, vector<32x16xf32>, vector<32x16xf32>, vector<32x16xf32>, vector<32x16xf32>, vector<32x16xf32>, vector<32x16xf32> -> vector<32x128xf32>
    %239 = vector.extract_strided_slice %217 {offsets = [32, 0], sizes = [32, 16], strides = [1, 1]} : vector<64x16xf32> to vector<32x16xf32>
    %c1_268 = arith.constant 1 : index
    %c8_269 = arith.constant 8 : index
    %c0_270 = arith.constant 0 : index
    %240 = vector.load %arg11[%c1_268, %c8_269, %c0_270] : memref<2x48x16xf32, #tpu.memory_space<vmem>>, vector<1x32x16xf32>
    %241 = vector.shape_cast %240 : vector<1x32x16xf32> to vector<32x16xf32>
    %242 = vector.shape_cast %239 : vector<32x16xf32> to vector<1x32x16xf32>
    tpu.vector_store %arg11[%c1_268, %c8_269, %c0_270], %242 {strides = array<i32>} : memref<2x48x16xf32, #tpu.memory_space<vmem>>, vector<1x32x16xf32>,
    %c1_271 = arith.constant 1 : index
    %c5_272 = arith.constant 5 : index
    %c0_273 = arith.constant 0 : index
    %243 = vector.load %arg11[%c1_271, %c5_272, %c0_273] : memref<2x48x16xf32, #tpu.memory_space<vmem>>, vector<1x32x16xf32>
    %244 = vector.shape_cast %243 : vector<1x32x16xf32> to vector<32x16xf32>
    %c1_274 = arith.constant 1 : index
    %c6_275 = arith.constant 6 : index
    %c0_276 = arith.constant 0 : index
    %245 = vector.load %arg11[%c1_274, %c6_275, %c0_276] : memref<2x48x16xf32, #tpu.memory_space<vmem>>, vector<1x32x16xf32>
    %246 = vector.shape_cast %245 : vector<1x32x16xf32> to vector<32x16xf32>
    %c1_277 = arith.constant 1 : index
    %c7_278 = arith.constant 7 : index
    %c0_279 = arith.constant 0 : index
    %247 = vector.load %arg11[%c1_277, %c7_278, %c0_279] : memref<2x48x16xf32, #tpu.memory_space<vmem>>, vector<1x32x16xf32>
    %248 = vector.shape_cast %247 : vector<1x32x16xf32> to vector<32x16xf32>
    %c1_280 = arith.constant 1 : index
    %c8_281 = arith.constant 8 : index
    %c0_282 = arith.constant 0 : index
    %249 = vector.load %arg11[%c1_280, %c8_281, %c0_282] : memref<2x48x16xf32, #tpu.memory_space<vmem>>, vector<1x32x16xf32>
    %250 = vector.shape_cast %249 : vector<1x32x16xf32> to vector<32x16xf32>
    %c1_283 = arith.constant 1 : index
    %c9_284 = arith.constant 9 : index
    %c0_285 = arith.constant 0 : index
    %251 = vector.load %arg11[%c1_283, %c9_284, %c0_285] : memref<2x48x16xf32, #tpu.memory_space<vmem>>, vector<1x32x16xf32>
    %252 = vector.shape_cast %251 : vector<1x32x16xf32> to vector<32x16xf32>
    %c1_286 = arith.constant 1 : index
    %c10_287 = arith.constant 10 : index
    %c0_288 = arith.constant 0 : index
    %253 = vector.load %arg11[%c1_286, %c10_287, %c0_288] : memref<2x48x16xf32, #tpu.memory_space<vmem>>, vector<1x32x16xf32>
    %254 = vector.shape_cast %253 : vector<1x32x16xf32> to vector<32x16xf32>
    %c1_289 = arith.constant 1 : index
    %c11_290 = arith.constant 11 : index
    %c0_291 = arith.constant 0 : index
    %255 = vector.load %arg11[%c1_289, %c11_290, %c0_291] : memref<2x48x16xf32, #tpu.memory_space<vmem>>, vector<1x32x16xf32>
    %256 = vector.shape_cast %255 : vector<1x32x16xf32> to vector<32x16xf32>
    %c1_292 = arith.constant 1 : index
    %c12_293 = arith.constant 12 : index
    %c0_294 = arith.constant 0 : index
    %257 = vector.load %arg11[%c1_292, %c12_293, %c0_294] : memref<2x48x16xf32, #tpu.memory_space<vmem>>, vector<1x32x16xf32>
    %258 = vector.shape_cast %257 : vector<1x32x16xf32> to vector<32x16xf32>
    %259 = tpu.concatenate %244, %246, %248, %250, %252, %254, %256, %258 in 1 : vector<32x16xf32>, vector<32x16xf32>, vector<32x16xf32>, vector<32x16xf32>, vector<32x16xf32>, vector<32x16xf32>, vector<32x16xf32>, vector<32x16xf32> -> vector<32x128xf32>
    %260 = tpu.concatenate %238, %259 in 0 : vector<32x128xf32>, vector<32x128xf32> -> vector<64x128xf32>
    %261 = arith.truncf %260 : vector<64x128xf32> to vector<64x128xbf16>
    %c3 = arith.constant 3 : index
    %c0_295 = arith.constant 0 : index
    %c0_296 = arith.constant 0 : index
    %262 = vector.load %arg2[%c3, %c0_295, %c0_296] : memref<6x128x16xbf16, #tpu.memory_space<vmem>>, vector<1x128x16xbf16>
    %263 = vector.shape_cast %262 : vector<1x128x16xbf16> to vector<128x16xbf16>
    %cst_297 = arith.constant dense<0.000000e+00> : vector<64x16xf32>
    %264 = tpu.matmul %261, %263, %cst_297 {dimension_numbers = #tpu.dot_dimension_numbers<[1], [0], [0], [1], [0, 0, 1, 1], [], []>} : vector<64x128xbf16>, vector<128x16xbf16>, vector<64x16xf32> -> vector<64x16xf32>
    %c3_298 = arith.constant 3 : index
    %c0_299 = arith.constant 0 : index
    %c0_300 = arith.constant 0 : index
    %265 = vector.load %arg4[%c3_298, %c0_299, %c0_300] : memref<6x1x16xf32, #tpu.memory_space<vmem>>, vector<1x1x16xf32>
    %266 = vector.shape_cast %265 : vector<1x1x16xf32> to vector<1x16xf32>
    %267 = vector.broadcast %266 : vector<1x16xf32> to vector<64x16xf32>
    %268 = arith.addf %264, %267 : vector<64x16xf32>
    %cst_301 = arith.constant 0.000000e+00 : f32
    %269 = vector.broadcast %cst_301 : f32 to vector<64x16xf32>
    %270 = arith.maximumf %268, %269 : vector<64x16xf32>
    %271 = vector.extract_strided_slice %270 {offsets = [0, 0], sizes = [32, 16], strides = [1, 1]} : vector<64x16xf32> to vector<32x16xf32>
    %c0_302 = arith.constant 0 : index
    %c8_303 = arith.constant 8 : index
    %c0_304 = arith.constant 0 : index
    %272 = vector.load %arg11[%c0_302, %c8_303, %c0_304] : memref<2x48x16xf32, #tpu.memory_space<vmem>>, vector<1x32x16xf32>
    %273 = vector.shape_cast %272 : vector<1x32x16xf32> to vector<32x16xf32>
    %274 = vector.shape_cast %271 : vector<32x16xf32> to vector<1x32x16xf32>
    tpu.vector_store %arg11[%c0_302, %c8_303, %c0_304], %274 {strides = array<i32>} : memref<2x48x16xf32, #tpu.memory_space<vmem>>, vector<1x32x16xf32>,
    %c0_305 = arith.constant 0 : index
    %c5_306 = arith.constant 5 : index
    %c0_307 = arith.constant 0 : index
    %275 = vector.load %arg11[%c0_305, %c5_306, %c0_307] : memref<2x48x16xf32, #tpu.memory_space<vmem>>, vector<1x32x16xf32>
    %276 = vector.shape_cast %275 : vector<1x32x16xf32> to vector<32x16xf32>
    %c0_308 = arith.constant 0 : index
    %c6_309 = arith.constant 6 : index
    %c0_310 = arith.constant 0 : index
    %277 = vector.load %arg11[%c0_308, %c6_309, %c0_310] : memref<2x48x16xf32, #tpu.memory_space<vmem>>, vector<1x32x16xf32>
    %278 = vector.shape_cast %277 : vector<1x32x16xf32> to vector<32x16xf32>
    %c0_311 = arith.constant 0 : index
    %c7_312 = arith.constant 7 : index
    %c0_313 = arith.constant 0 : index
    %279 = vector.load %arg11[%c0_311, %c7_312, %c0_313] : memref<2x48x16xf32, #tpu.memory_space<vmem>>, vector<1x32x16xf32>
    %280 = vector.shape_cast %279 : vector<1x32x16xf32> to vector<32x16xf32>
    %c0_314 = arith.constant 0 : index
    %c8_315 = arith.constant 8 : index
    %c0_316 = arith.constant 0 : index
    %281 = vector.load %arg11[%c0_314, %c8_315, %c0_316] : memref<2x48x16xf32, #tpu.memory_space<vmem>>, vector<1x32x16xf32>
    %282 = vector.shape_cast %281 : vector<1x32x16xf32> to vector<32x16xf32>
    %c0_317 = arith.constant 0 : index
    %c9_318 = arith.constant 9 : index
    %c0_319 = arith.constant 0 : index
    %283 = vector.load %arg11[%c0_317, %c9_318, %c0_319] : memref<2x48x16xf32, #tpu.memory_space<vmem>>, vector<1x32x16xf32>
    %284 = vector.shape_cast %283 : vector<1x32x16xf32> to vector<32x16xf32>
    %c0_320 = arith.constant 0 : index
    %c10_321 = arith.constant 10 : index
    %c0_322 = arith.constant 0 : index
    %285 = vector.load %arg11[%c0_320, %c10_321, %c0_322] : memref<2x48x16xf32, #tpu.memory_space<vmem>>, vector<1x32x16xf32>
    %286 = vector.shape_cast %285 : vector<1x32x16xf32> to vector<32x16xf32>
    %c0_323 = arith.constant 0 : index
    %c11_324 = arith.constant 11 : index
    %c0_325 = arith.constant 0 : index
    %287 = vector.load %arg11[%c0_323, %c11_324, %c0_325] : memref<2x48x16xf32, #tpu.memory_space<vmem>>, vector<1x32x16xf32>
    %288 = vector.shape_cast %287 : vector<1x32x16xf32> to vector<32x16xf32>
    %c0_326 = arith.constant 0 : index
    %c12_327 = arith.constant 12 : index
    %c0_328 = arith.constant 0 : index
    %289 = vector.load %arg11[%c0_326, %c12_327, %c0_328] : memref<2x48x16xf32, #tpu.memory_space<vmem>>, vector<1x32x16xf32>
    %290 = vector.shape_cast %289 : vector<1x32x16xf32> to vector<32x16xf32>
    %291 = tpu.concatenate %276, %278, %280, %282, %284, %286, %288, %290 in 1 : vector<32x16xf32>, vector<32x16xf32>, vector<32x16xf32>, vector<32x16xf32>, vector<32x16xf32>, vector<32x16xf32>, vector<32x16xf32>, vector<32x16xf32> -> vector<32x128xf32>
    %292 = vector.extract_strided_slice %270 {offsets = [32, 0], sizes = [32, 16], strides = [1, 1]} : vector<64x16xf32> to vector<32x16xf32>
    %c1_329 = arith.constant 1 : index
    %c8_330 = arith.constant 8 : index
    %c0_331 = arith.constant 0 : index
    %293 = vector.load %arg11[%c1_329, %c8_330, %c0_331] : memref<2x48x16xf32, #tpu.memory_space<vmem>>, vector<1x32x16xf32>
    %294 = vector.shape_cast %293 : vector<1x32x16xf32> to vector<32x16xf32>
    %295 = vector.shape_cast %292 : vector<32x16xf32> to vector<1x32x16xf32>
    tpu.vector_store %arg11[%c1_329, %c8_330, %c0_331], %295 {strides = array<i32>} : memref<2x48x16xf32, #tpu.memory_space<vmem>>, vector<1x32x16xf32>,
    %c1_332 = arith.constant 1 : index
    %c5_333 = arith.constant 5 : index
    %c0_334 = arith.constant 0 : index
    %296 = vector.load %arg11[%c1_332, %c5_333, %c0_334] : memref<2x48x16xf32, #tpu.memory_space<vmem>>, vector<1x32x16xf32>
    %297 = vector.shape_cast %296 : vector<1x32x16xf32> to vector<32x16xf32>
    %c1_335 = arith.constant 1 : index
    %c6_336 = arith.constant 6 : index
    %c0_337 = arith.constant 0 : index
    %298 = vector.load %arg11[%c1_335, %c6_336, %c0_337] : memref<2x48x16xf32, #tpu.memory_space<vmem>>, vector<1x32x16xf32>
    %299 = vector.shape_cast %298 : vector<1x32x16xf32> to vector<32x16xf32>
    %c1_338 = arith.constant 1 : index
    %c7_339 = arith.constant 7 : index
    %c0_340 = arith.constant 0 : index
    %300 = vector.load %arg11[%c1_338, %c7_339, %c0_340] : memref<2x48x16xf32, #tpu.memory_space<vmem>>, vector<1x32x16xf32>
    %301 = vector.shape_cast %300 : vector<1x32x16xf32> to vector<32x16xf32>
    %c1_341 = arith.constant 1 : index
    %c8_342 = arith.constant 8 : index
    %c0_343 = arith.constant 0 : index
    %302 = vector.load %arg11[%c1_341, %c8_342, %c0_343] : memref<2x48x16xf32, #tpu.memory_space<vmem>>, vector<1x32x16xf32>
    %303 = vector.shape_cast %302 : vector<1x32x16xf32> to vector<32x16xf32>
    %c1_344 = arith.constant 1 : index
    %c9_345 = arith.constant 9 : index
    %c0_346 = arith.constant 0 : index
    %304 = vector.load %arg11[%c1_344, %c9_345, %c0_346] : memref<2x48x16xf32, #tpu.memory_space<vmem>>, vector<1x32x16xf32>
    %305 = vector.shape_cast %304 : vector<1x32x16xf32> to vector<32x16xf32>
    %c1_347 = arith.constant 1 : index
    %c10_348 = arith.constant 10 : index
    %c0_349 = arith.constant 0 : index
    %306 = vector.load %arg11[%c1_347, %c10_348, %c0_349] : memref<2x48x16xf32, #tpu.memory_space<vmem>>, vector<1x32x16xf32>
    %307 = vector.shape_cast %306 : vector<1x32x16xf32> to vector<32x16xf32>
    %c1_350 = arith.constant 1 : index
    %c11_351 = arith.constant 11 : index
    %c0_352 = arith.constant 0 : index
    %308 = vector.load %arg11[%c1_350, %c11_351, %c0_352] : memref<2x48x16xf32, #tpu.memory_space<vmem>>, vector<1x32x16xf32>
    %309 = vector.shape_cast %308 : vector<1x32x16xf32> to vector<32x16xf32>
    %c1_353 = arith.constant 1 : index
    %c12_354 = arith.constant 12 : index
    %c0_355 = arith.constant 0 : index
    %310 = vector.load %arg11[%c1_353, %c12_354, %c0_355] : memref<2x48x16xf32, #tpu.memory_space<vmem>>, vector<1x32x16xf32>
    %311 = vector.shape_cast %310 : vector<1x32x16xf32> to vector<32x16xf32>
    %312 = tpu.concatenate %297, %299, %301, %303, %305, %307, %309, %311 in 1 : vector<32x16xf32>, vector<32x16xf32>, vector<32x16xf32>, vector<32x16xf32>, vector<32x16xf32>, vector<32x16xf32>, vector<32x16xf32>, vector<32x16xf32> -> vector<32x128xf32>
    %313 = tpu.concatenate %291, %312 in 0 : vector<32x128xf32>, vector<32x128xf32> -> vector<64x128xf32>
    %314 = arith.truncf %313 : vector<64x128xf32> to vector<64x128xbf16>
    %c4 = arith.constant 4 : index
    %c0_356 = arith.constant 0 : index
    %c0_357 = arith.constant 0 : index
    %315 = vector.load %arg2[%c4, %c0_356, %c0_357] : memref<6x128x16xbf16, #tpu.memory_space<vmem>>, vector<1x128x16xbf16>
    %316 = vector.shape_cast %315 : vector<1x128x16xbf16> to vector<128x16xbf16>
    %cst_358 = arith.constant dense<0.000000e+00> : vector<64x16xf32>
    %317 = tpu.matmul %314, %316, %cst_358 {dimension_numbers = #tpu.dot_dimension_numbers<[1], [0], [0], [1], [0, 0, 1, 1], [], []>} : vector<64x128xbf16>, vector<128x16xbf16>, vector<64x16xf32> -> vector<64x16xf32>
    %c4_359 = arith.constant 4 : index
    %c0_360 = arith.constant 0 : index
    %c0_361 = arith.constant 0 : index
    %318 = vector.load %arg4[%c4_359, %c0_360, %c0_361] : memref<6x1x16xf32, #tpu.memory_space<vmem>>, vector<1x1x16xf32>
    %319 = vector.shape_cast %318 : vector<1x1x16xf32> to vector<1x16xf32>
    %320 = vector.broadcast %319 : vector<1x16xf32> to vector<64x16xf32>
    %321 = arith.addf %317, %320 : vector<64x16xf32>
    %cst_362 = arith.constant 0.000000e+00 : f32
    %322 = vector.broadcast %cst_362 : f32 to vector<64x16xf32>
    %323 = arith.maximumf %321, %322 : vector<64x16xf32>
    %324 = vector.extract_strided_slice %323 {offsets = [0, 0], sizes = [32, 16], strides = [1, 1]} : vector<64x16xf32> to vector<32x16xf32>
    %c0_363 = arith.constant 0 : index
    %c8_364 = arith.constant 8 : index
    %c0_365 = arith.constant 0 : index
    %325 = vector.load %arg11[%c0_363, %c8_364, %c0_365] : memref<2x48x16xf32, #tpu.memory_space<vmem>>, vector<1x32x16xf32>
    %326 = vector.shape_cast %325 : vector<1x32x16xf32> to vector<32x16xf32>
    %327 = vector.shape_cast %324 : vector<32x16xf32> to vector<1x32x16xf32>
    tpu.vector_store %arg11[%c0_363, %c8_364, %c0_365], %327 {strides = array<i32>} : memref<2x48x16xf32, #tpu.memory_space<vmem>>, vector<1x32x16xf32>,
    %c0_366 = arith.constant 0 : index
    %c5_367 = arith.constant 5 : index
    %c0_368 = arith.constant 0 : index
    %328 = vector.load %arg11[%c0_366, %c5_367, %c0_368] : memref<2x48x16xf32, #tpu.memory_space<vmem>>, vector<1x32x16xf32>
    %329 = vector.shape_cast %328 : vector<1x32x16xf32> to vector<32x16xf32>
    %c0_369 = arith.constant 0 : index
    %c6_370 = arith.constant 6 : index
    %c0_371 = arith.constant 0 : index
    %330 = vector.load %arg11[%c0_369, %c6_370, %c0_371] : memref<2x48x16xf32, #tpu.memory_space<vmem>>, vector<1x32x16xf32>
    %331 = vector.shape_cast %330 : vector<1x32x16xf32> to vector<32x16xf32>
    %c0_372 = arith.constant 0 : index
    %c7_373 = arith.constant 7 : index
    %c0_374 = arith.constant 0 : index
    %332 = vector.load %arg11[%c0_372, %c7_373, %c0_374] : memref<2x48x16xf32, #tpu.memory_space<vmem>>, vector<1x32x16xf32>
    %333 = vector.shape_cast %332 : vector<1x32x16xf32> to vector<32x16xf32>
    %c0_375 = arith.constant 0 : index
    %c8_376 = arith.constant 8 : index
    %c0_377 = arith.constant 0 : index
    %334 = vector.load %arg11[%c0_375, %c8_376, %c0_377] : memref<2x48x16xf32, #tpu.memory_space<vmem>>, vector<1x32x16xf32>
    %335 = vector.shape_cast %334 : vector<1x32x16xf32> to vector<32x16xf32>
    %c0_378 = arith.constant 0 : index
    %c9_379 = arith.constant 9 : index
    %c0_380 = arith.constant 0 : index
    %336 = vector.load %arg11[%c0_378, %c9_379, %c0_380] : memref<2x48x16xf32, #tpu.memory_space<vmem>>, vector<1x32x16xf32>
    %337 = vector.shape_cast %336 : vector<1x32x16xf32> to vector<32x16xf32>
    %c0_381 = arith.constant 0 : index
    %c10_382 = arith.constant 10 : index
    %c0_383 = arith.constant 0 : index
    %338 = vector.load %arg11[%c0_381, %c10_382, %c0_383] : memref<2x48x16xf32, #tpu.memory_space<vmem>>, vector<1x32x16xf32>
    %339 = vector.shape_cast %338 : vector<1x32x16xf32> to vector<32x16xf32>
    %c0_384 = arith.constant 0 : index
    %c11_385 = arith.constant 11 : index
    %c0_386 = arith.constant 0 : index
    %340 = vector.load %arg11[%c0_384, %c11_385, %c0_386] : memref<2x48x16xf32, #tpu.memory_space<vmem>>, vector<1x32x16xf32>
    %341 = vector.shape_cast %340 : vector<1x32x16xf32> to vector<32x16xf32>
    %c0_387 = arith.constant 0 : index
    %c12_388 = arith.constant 12 : index
    %c0_389 = arith.constant 0 : index
    %342 = vector.load %arg11[%c0_387, %c12_388, %c0_389] : memref<2x48x16xf32, #tpu.memory_space<vmem>>, vector<1x32x16xf32>
    %343 = vector.shape_cast %342 : vector<1x32x16xf32> to vector<32x16xf32>
    %344 = tpu.concatenate %329, %331, %333, %335, %337, %339, %341, %343 in 1 : vector<32x16xf32>, vector<32x16xf32>, vector<32x16xf32>, vector<32x16xf32>, vector<32x16xf32>, vector<32x16xf32>, vector<32x16xf32>, vector<32x16xf32> -> vector<32x128xf32>
    %345 = vector.extract_strided_slice %323 {offsets = [32, 0], sizes = [32, 16], strides = [1, 1]} : vector<64x16xf32> to vector<32x16xf32>
    %c1_390 = arith.constant 1 : index
    %c8_391 = arith.constant 8 : index
    %c0_392 = arith.constant 0 : index
    %346 = vector.load %arg11[%c1_390, %c8_391, %c0_392] : memref<2x48x16xf32, #tpu.memory_space<vmem>>, vector<1x32x16xf32>
    %347 = vector.shape_cast %346 : vector<1x32x16xf32> to vector<32x16xf32>
    %348 = vector.shape_cast %345 : vector<32x16xf32> to vector<1x32x16xf32>
    tpu.vector_store %arg11[%c1_390, %c8_391, %c0_392], %348 {strides = array<i32>} : memref<2x48x16xf32, #tpu.memory_space<vmem>>, vector<1x32x16xf32>,
    %c1_393 = arith.constant 1 : index
    %c5_394 = arith.constant 5 : index
    %c0_395 = arith.constant 0 : index
    %349 = vector.load %arg11[%c1_393, %c5_394, %c0_395] : memref<2x48x16xf32, #tpu.memory_space<vmem>>, vector<1x32x16xf32>
    %350 = vector.shape_cast %349 : vector<1x32x16xf32> to vector<32x16xf32>
    %c1_396 = arith.constant 1 : index
    %c6_397 = arith.constant 6 : index
    %c0_398 = arith.constant 0 : index
    %351 = vector.load %arg11[%c1_396, %c6_397, %c0_398] : memref<2x48x16xf32, #tpu.memory_space<vmem>>, vector<1x32x16xf32>
    %352 = vector.shape_cast %351 : vector<1x32x16xf32> to vector<32x16xf32>
    %c1_399 = arith.constant 1 : index
    %c7_400 = arith.constant 7 : index
    %c0_401 = arith.constant 0 : index
    %353 = vector.load %arg11[%c1_399, %c7_400, %c0_401] : memref<2x48x16xf32, #tpu.memory_space<vmem>>, vector<1x32x16xf32>
    %354 = vector.shape_cast %353 : vector<1x32x16xf32> to vector<32x16xf32>
    %c1_402 = arith.constant 1 : index
    %c8_403 = arith.constant 8 : index
    %c0_404 = arith.constant 0 : index
    %355 = vector.load %arg11[%c1_402, %c8_403, %c0_404] : memref<2x48x16xf32, #tpu.memory_space<vmem>>, vector<1x32x16xf32>
    %356 = vector.shape_cast %355 : vector<1x32x16xf32> to vector<32x16xf32>
    %c1_405 = arith.constant 1 : index
    %c9_406 = arith.constant 9 : index
    %c0_407 = arith.constant 0 : index
    %357 = vector.load %arg11[%c1_405, %c9_406, %c0_407] : memref<2x48x16xf32, #tpu.memory_space<vmem>>, vector<1x32x16xf32>
    %358 = vector.shape_cast %357 : vector<1x32x16xf32> to vector<32x16xf32>
    %c1_408 = arith.constant 1 : index
    %c10_409 = arith.constant 10 : index
    %c0_410 = arith.constant 0 : index
    %359 = vector.load %arg11[%c1_408, %c10_409, %c0_410] : memref<2x48x16xf32, #tpu.memory_space<vmem>>, vector<1x32x16xf32>
    %360 = vector.shape_cast %359 : vector<1x32x16xf32> to vector<32x16xf32>
    %c1_411 = arith.constant 1 : index
    %c11_412 = arith.constant 11 : index
    %c0_413 = arith.constant 0 : index
    %361 = vector.load %arg11[%c1_411, %c11_412, %c0_413] : memref<2x48x16xf32, #tpu.memory_space<vmem>>, vector<1x32x16xf32>
    %362 = vector.shape_cast %361 : vector<1x32x16xf32> to vector<32x16xf32>
    %c1_414 = arith.constant 1 : index
    %c12_415 = arith.constant 12 : index
    %c0_416 = arith.constant 0 : index
    %363 = vector.load %arg11[%c1_414, %c12_415, %c0_416] : memref<2x48x16xf32, #tpu.memory_space<vmem>>, vector<1x32x16xf32>
    %364 = vector.shape_cast %363 : vector<1x32x16xf32> to vector<32x16xf32>
    %365 = tpu.concatenate %350, %352, %354, %356, %358, %360, %362, %364 in 1 : vector<32x16xf32>, vector<32x16xf32>, vector<32x16xf32>, vector<32x16xf32>, vector<32x16xf32>, vector<32x16xf32>, vector<32x16xf32>, vector<32x16xf32> -> vector<32x128xf32>
    %366 = tpu.concatenate %344, %365 in 0 : vector<32x128xf32>, vector<32x128xf32> -> vector<64x128xf32>
    %367 = arith.truncf %366 : vector<64x128xf32> to vector<64x128xbf16>
    %368 = vector.extract_strided_slice %217 {offsets = [0, 0], sizes = [32, 16], strides = [1, 1]} : vector<64x16xf32> to vector<32x16xf32>
    %c0_417 = arith.constant 0 : index
    %c8_418 = arith.constant 8 : index
    %c0_419 = arith.constant 0 : index
    %369 = vector.load %arg11[%c0_417, %c8_418, %c0_419] : memref<2x48x16xf32, #tpu.memory_space<vmem>>, vector<1x32x16xf32>
    %370 = vector.shape_cast %369 : vector<1x32x16xf32> to vector<32x16xf32>
    %371 = vector.shape_cast %368 : vector<32x16xf32> to vector<1x32x16xf32>
    tpu.vector_store %arg11[%c0_417, %c8_418, %c0_419], %371 {strides = array<i32>} : memref<2x48x16xf32, #tpu.memory_space<vmem>>, vector<1x32x16xf32>,
    %c0_420 = arith.constant 0 : index
    %c5_421 = arith.constant 5 : index
    %c0_422 = arith.constant 0 : index
    %372 = vector.load %arg11[%c0_420, %c5_421, %c0_422] : memref<2x48x16xf32, #tpu.memory_space<vmem>>, vector<1x32x16xf32>
    %373 = vector.shape_cast %372 : vector<1x32x16xf32> to vector<32x16xf32>
    %c0_423 = arith.constant 0 : index
    %c6_424 = arith.constant 6 : index
    %c0_425 = arith.constant 0 : index
    %374 = vector.load %arg11[%c0_423, %c6_424, %c0_425] : memref<2x48x16xf32, #tpu.memory_space<vmem>>, vector<1x32x16xf32>
    %375 = vector.shape_cast %374 : vector<1x32x16xf32> to vector<32x16xf32>
    %c0_426 = arith.constant 0 : index
    %c7_427 = arith.constant 7 : index
    %c0_428 = arith.constant 0 : index
    %376 = vector.load %arg11[%c0_426, %c7_427, %c0_428] : memref<2x48x16xf32, #tpu.memory_space<vmem>>, vector<1x32x16xf32>
    %377 = vector.shape_cast %376 : vector<1x32x16xf32> to vector<32x16xf32>
    %c0_429 = arith.constant 0 : index
    %c8_430 = arith.constant 8 : index
    %c0_431 = arith.constant 0 : index
    %378 = vector.load %arg11[%c0_429, %c8_430, %c0_431] : memref<2x48x16xf32, #tpu.memory_space<vmem>>, vector<1x32x16xf32>
    %379 = vector.shape_cast %378 : vector<1x32x16xf32> to vector<32x16xf32>
    %c0_432 = arith.constant 0 : index
    %c9_433 = arith.constant 9 : index
    %c0_434 = arith.constant 0 : index
    %380 = vector.load %arg11[%c0_432, %c9_433, %c0_434] : memref<2x48x16xf32, #tpu.memory_space<vmem>>, vector<1x32x16xf32>
    %381 = vector.shape_cast %380 : vector<1x32x16xf32> to vector<32x16xf32>
    %c0_435 = arith.constant 0 : index
    %c10_436 = arith.constant 10 : index
    %c0_437 = arith.constant 0 : index
    %382 = vector.load %arg11[%c0_435, %c10_436, %c0_437] : memref<2x48x16xf32, #tpu.memory_space<vmem>>, vector<1x32x16xf32>
    %383 = vector.shape_cast %382 : vector<1x32x16xf32> to vector<32x16xf32>
    %c0_438 = arith.constant 0 : index
    %c11_439 = arith.constant 11 : index
    %c0_440 = arith.constant 0 : index
    %384 = vector.load %arg11[%c0_438, %c11_439, %c0_440] : memref<2x48x16xf32, #tpu.memory_space<vmem>>, vector<1x32x16xf32>
    %385 = vector.shape_cast %384 : vector<1x32x16xf32> to vector<32x16xf32>
    %c0_441 = arith.constant 0 : index
    %c12_442 = arith.constant 12 : index
    %c0_443 = arith.constant 0 : index
    %386 = vector.load %arg11[%c0_441, %c12_442, %c0_443] : memref<2x48x16xf32, #tpu.memory_space<vmem>>, vector<1x32x16xf32>
    %387 = vector.shape_cast %386 : vector<1x32x16xf32> to vector<32x16xf32>
    %388 = tpu.concatenate %373, %375, %377, %379, %381, %383, %385, %387 in 1 : vector<32x16xf32>, vector<32x16xf32>, vector<32x16xf32>, vector<32x16xf32>, vector<32x16xf32>, vector<32x16xf32>, vector<32x16xf32>, vector<32x16xf32> -> vector<32x128xf32>
    %389 = vector.extract_strided_slice %217 {offsets = [32, 0], sizes = [32, 16], strides = [1, 1]} : vector<64x16xf32> to vector<32x16xf32>
    %c1_444 = arith.constant 1 : index
    %c8_445 = arith.constant 8 : index
    %c0_446 = arith.constant 0 : index
    %390 = vector.load %arg11[%c1_444, %c8_445, %c0_446] : memref<2x48x16xf32, #tpu.memory_space<vmem>>, vector<1x32x16xf32>
    %391 = vector.shape_cast %390 : vector<1x32x16xf32> to vector<32x16xf32>
    %392 = vector.shape_cast %389 : vector<32x16xf32> to vector<1x32x16xf32>
    tpu.vector_store %arg11[%c1_444, %c8_445, %c0_446], %392 {strides = array<i32>} : memref<2x48x16xf32, #tpu.memory_space<vmem>>, vector<1x32x16xf32>,
    %c1_447 = arith.constant 1 : index
    %c5_448 = arith.constant 5 : index
    %c0_449 = arith.constant 0 : index
    %393 = vector.load %arg11[%c1_447, %c5_448, %c0_449] : memref<2x48x16xf32, #tpu.memory_space<vmem>>, vector<1x32x16xf32>
    %394 = vector.shape_cast %393 : vector<1x32x16xf32> to vector<32x16xf32>
    %c1_450 = arith.constant 1 : index
    %c6_451 = arith.constant 6 : index
    %c0_452 = arith.constant 0 : index
    %395 = vector.load %arg11[%c1_450, %c6_451, %c0_452] : memref<2x48x16xf32, #tpu.memory_space<vmem>>, vector<1x32x16xf32>
    %396 = vector.shape_cast %395 : vector<1x32x16xf32> to vector<32x16xf32>
    %c1_453 = arith.constant 1 : index
    %c7_454 = arith.constant 7 : index
    %c0_455 = arith.constant 0 : index
    %397 = vector.load %arg11[%c1_453, %c7_454, %c0_455] : memref<2x48x16xf32, #tpu.memory_space<vmem>>, vector<1x32x16xf32>
    %398 = vector.shape_cast %397 : vector<1x32x16xf32> to vector<32x16xf32>
    %c1_456 = arith.constant 1 : index
    %c8_457 = arith.constant 8 : index
    %c0_458 = arith.constant 0 : index
    %399 = vector.load %arg11[%c1_456, %c8_457, %c0_458] : memref<2x48x16xf32, #tpu.memory_space<vmem>>, vector<1x32x16xf32>
    %400 = vector.shape_cast %399 : vector<1x32x16xf32> to vector<32x16xf32>
    %c1_459 = arith.constant 1 : index
    %c9_460 = arith.constant 9 : index
    %c0_461 = arith.constant 0 : index
    %401 = vector.load %arg11[%c1_459, %c9_460, %c0_461] : memref<2x48x16xf32, #tpu.memory_space<vmem>>, vector<1x32x16xf32>
    %402 = vector.shape_cast %401 : vector<1x32x16xf32> to vector<32x16xf32>
    %c1_462 = arith.constant 1 : index
    %c10_463 = arith.constant 10 : index
    %c0_464 = arith.constant 0 : index
    %403 = vector.load %arg11[%c1_462, %c10_463, %c0_464] : memref<2x48x16xf32, #tpu.memory_space<vmem>>, vector<1x32x16xf32>
    %404 = vector.shape_cast %403 : vector<1x32x16xf32> to vector<32x16xf32>
    %c1_465 = arith.constant 1 : index
    %c11_466 = arith.constant 11 : index
    %c0_467 = arith.constant 0 : index
    %405 = vector.load %arg11[%c1_465, %c11_466, %c0_467] : memref<2x48x16xf32, #tpu.memory_space<vmem>>, vector<1x32x16xf32>
    %406 = vector.shape_cast %405 : vector<1x32x16xf32> to vector<32x16xf32>
    %c1_468 = arith.constant 1 : index
    %c12_469 = arith.constant 12 : index
    %c0_470 = arith.constant 0 : index
    %407 = vector.load %arg11[%c1_468, %c12_469, %c0_470] : memref<2x48x16xf32, #tpu.memory_space<vmem>>, vector<1x32x16xf32>
    %408 = vector.shape_cast %407 : vector<1x32x16xf32> to vector<32x16xf32>
    %409 = tpu.concatenate %394, %396, %398, %400, %402, %404, %406, %408 in 1 : vector<32x16xf32>, vector<32x16xf32>, vector<32x16xf32>, vector<32x16xf32>, vector<32x16xf32>, vector<32x16xf32>, vector<32x16xf32>, vector<32x16xf32> -> vector<32x128xf32>
    %410 = tpu.concatenate %388, %409 in 0 : vector<32x128xf32>, vector<32x128xf32> -> vector<64x128xf32>
    %411 = arith.truncf %410 : vector<64x128xf32> to vector<64x128xbf16>
    %412 = tpu.concatenate %367, %411 in 0 : vector<64x128xbf16>, vector<64x128xbf16> -> vector<128x128xbf16>
    %c1_471 = arith.constant 1 : index
    %c0_472 = arith.constant 0 : index
    %c0_473 = arith.constant 0 : index
    %413 = vector.load %arg3[%c1_471, %c0_472, %c0_473] : memref<2x128x32xbf16, #tpu.memory_space<vmem>>, vector<1x128x32xbf16>
    %414 = vector.shape_cast %413 : vector<1x128x32xbf16> to vector<128x32xbf16>
    %cst_474 = arith.constant dense<0.000000e+00> : vector<128x32xf32>
    %415 = tpu.matmul %412, %414, %cst_474 {dimension_numbers = #tpu.dot_dimension_numbers<[1], [0], [0], [1], [0, 0, 1, 1], [], []>} : vector<128x128xbf16>, vector<128x32xbf16>, vector<128x32xf32> -> vector<128x32xf32>
    %416 = vector.extract_strided_slice %415 {offsets = [0, 0], sizes = [64, 16], strides = [1, 1]} : vector<128x32xf32> to vector<64x16xf32>
    %c5_475 = arith.constant 5 : index
    %c0_476 = arith.constant 0 : index
    %c0_477 = arith.constant 0 : index
    %417 = vector.load %arg4[%c5_475, %c0_476, %c0_477] : memref<6x1x16xf32, #tpu.memory_space<vmem>>, vector<1x1x16xf32>
    %418 = vector.shape_cast %417 : vector<1x1x16xf32> to vector<1x16xf32>
    %419 = vector.broadcast %418 : vector<1x16xf32> to vector<64x16xf32>
    %420 = arith.addf %416, %419 : vector<64x16xf32>
    %cst_478 = arith.constant 0.000000e+00 : f32
    %421 = vector.broadcast %cst_478 : f32 to vector<64x16xf32>
    %422 = arith.maximumf %420, %421 : vector<64x16xf32>
    %423 = vector.extract_strided_slice %415 {offsets = [64, 16], sizes = [64, 16], strides = [1, 1]} : vector<128x32xf32> to vector<64x16xf32>
    %c1_479 = arith.constant 1 : index
    %c0_480 = arith.constant 0 : index
    %c0_481 = arith.constant 0 : index
    %424 = vector.load %arg5[%c1_479, %c0_480, %c0_481] : memref<2x1x16xf32, #tpu.memory_space<vmem>>, vector<1x1x16xf32>
    %425 = vector.shape_cast %424 : vector<1x1x16xf32> to vector<1x16xf32>
    %426 = vector.broadcast %425 : vector<1x16xf32> to vector<64x16xf32>
    %427 = arith.addf %423, %426 : vector<64x16xf32>
    %428 = arith.addf %422, %427 : vector<64x16xf32>
    %cst_482 = arith.constant 0.000000e+00 : f32
    %429 = vector.broadcast %cst_482 : f32 to vector<64x16xf32>
    %430 = arith.maximumf %428, %429 : vector<64x16xf32>
    %c0_483 = arith.constant 0 : index
    %c0_484 = arith.constant 0 : index
    %431 = vector.load %arg6[%c0_483, %c0_484] : memref<16x16xbf16, #tpu.memory_space<vmem>>, vector<16x16xbf16>
    %c0_485 = arith.constant 0 : index
    %c0_486 = arith.constant 0 : index
    %432 = vector.load %arg8[%c0_485, %c0_486] : memref<32x1xf32, #tpu.memory_space<vmem>>, vector<32x1xf32>
    %433 = vector.extract_strided_slice %430 {offsets = [0, 0], sizes = [32, 16], strides = [1, 1]} : vector<64x16xf32> to vector<32x16xf32>
    %434 = vector.extract_strided_slice %433 {offsets = [1, 0], sizes = [31, 16], strides = [1, 1]} : vector<32x16xf32> to vector<31x16xf32>
    %cst_487 = arith.constant 0.000000e+00 : f32
    %435 = vector.broadcast %cst_487 : f32 to vector<1x16xf32>
    %436 = tpu.concatenate %434, %435 in 0 : vector<31x16xf32>, vector<1x16xf32> -> vector<32x16xf32>
    %437 = arith.addf %433, %436 : vector<32x16xf32>
    %cst_488 = arith.constant 5.000000e-01 : f32
    %438 = vector.broadcast %cst_488 : f32 to vector<32x16xf32>
    %439 = arith.mulf %438, %437 : vector<32x16xf32>
    %440 = arith.truncf %439 : vector<32x16xf32> to vector<32x16xbf16>
    %cst_489 = arith.constant dense<0.000000e+00> : vector<32x16xf32>
    %441 = tpu.matmul %440, %431, %cst_489 {dimension_numbers = #tpu.dot_dimension_numbers<[1], [0], [0], [1], [0, 0, 1, 1], [], []>} : vector<32x16xbf16>, vector<16x16xbf16>, vector<32x16xf32> -> vector<32x16xf32>
    %c0_490 = arith.constant 0 : index
    %c0_491 = arith.constant 0 : index
    %442 = vector.load %arg7[%c0_490, %c0_491] : memref<1x16xf32, #tpu.memory_space<vmem>>, vector<1x16xf32>
    %443 = vector.broadcast %442 : vector<1x16xf32> to vector<32x16xf32>
    %444 = arith.addf %441, %443 : vector<32x16xf32>
    %cst_492 = arith.constant 0.000000e+00 : f32
    %445 = vector.broadcast %cst_492 : f32 to vector<32x16xf32>
    %446 = arith.maximumf %444, %445 : vector<32x16xf32>
    %447 = vector.extract_strided_slice %446 {offsets = [1, 0], sizes = [31, 16], strides = [1, 1]} : vector<32x16xf32> to vector<31x16xf32>
    %cst_493 = arith.constant 0.000000e+00 : f32
    %448 = vector.broadcast %cst_493 : f32 to vector<1x16xf32>
    %449 = tpu.concatenate %447, %448 in 0 : vector<31x16xf32>, vector<1x16xf32> -> vector<32x16xf32>
    %450 = arith.maximumf %446, %449 : vector<32x16xf32>
    %451 = vector.broadcast %432 : vector<32x1xf32> to vector<32x16xf32>
    %452 = arith.mulf %450, %451 : vector<32x16xf32>
    %cst_494 = arith.constant dense<0.000000e+00> : vector<16xf32>
    %453 = vector.multi_reduction <add>, %452, %cst_494 [0] : vector<32x16xf32> to vector<16xf32>
    %454 = vector.shape_cast %453 : vector<16xf32> to vector<1x16xf32>
    %455 = vector.extract_strided_slice %430 {offsets = [32, 0], sizes = [32, 16], strides = [1, 1]} : vector<64x16xf32> to vector<32x16xf32>
    %456 = vector.extract_strided_slice %455 {offsets = [1, 0], sizes = [31, 16], strides = [1, 1]} : vector<32x16xf32> to vector<31x16xf32>
    %cst_495 = arith.constant 0.000000e+00 : f32
    %457 = vector.broadcast %cst_495 : f32 to vector<1x16xf32>
    %458 = tpu.concatenate %456, %457 in 0 : vector<31x16xf32>, vector<1x16xf32> -> vector<32x16xf32>
    %459 = arith.addf %455, %458 : vector<32x16xf32>
    %cst_496 = arith.constant 5.000000e-01 : f32
    %460 = vector.broadcast %cst_496 : f32 to vector<32x16xf32>
    %461 = arith.mulf %460, %459 : vector<32x16xf32>
    %462 = arith.truncf %461 : vector<32x16xf32> to vector<32x16xbf16>
    %cst_497 = arith.constant dense<0.000000e+00> : vector<32x16xf32>
    %463 = tpu.matmul %462, %431, %cst_497 {dimension_numbers = #tpu.dot_dimension_numbers<[1], [0], [0], [1], [0, 0, 1, 1], [], []>} : vector<32x16xbf16>, vector<16x16xbf16>, vector<32x16xf32> -> vector<32x16xf32>
    %c0_498 = arith.constant 0 : index
    %c0_499 = arith.constant 0 : index
    %464 = vector.load %arg7[%c0_498, %c0_499] : memref<1x16xf32, #tpu.memory_space<vmem>>, vector<1x16xf32>
    %465 = vector.broadcast %464 : vector<1x16xf32> to vector<32x16xf32>
    %466 = arith.addf %463, %465 : vector<32x16xf32>
    %cst_500 = arith.constant 0.000000e+00 : f32
    %467 = vector.broadcast %cst_500 : f32 to vector<32x16xf32>
    %468 = arith.maximumf %466, %467 : vector<32x16xf32>
    %469 = vector.extract_strided_slice %468 {offsets = [1, 0], sizes = [31, 16], strides = [1, 1]} : vector<32x16xf32> to vector<31x16xf32>
    %cst_501 = arith.constant 0.000000e+00 : f32
    %470 = vector.broadcast %cst_501 : f32 to vector<1x16xf32>
    %471 = tpu.concatenate %469, %470 in 0 : vector<31x16xf32>, vector<1x16xf32> -> vector<32x16xf32>
    %472 = arith.maximumf %468, %471 : vector<32x16xf32>
    %473 = vector.broadcast %432 : vector<32x1xf32> to vector<32x16xf32>
    %474 = arith.mulf %472, %473 : vector<32x16xf32>
    %cst_502 = arith.constant dense<0.000000e+00> : vector<16xf32>
    %475 = vector.multi_reduction <add>, %474, %cst_502 [0] : vector<32x16xf32> to vector<16xf32>
    %476 = vector.shape_cast %475 : vector<16xf32> to vector<1x16xf32>
    %477 = tpu.concatenate %454, %476 in 0 : vector<1x16xf32>, vector<1x16xf32> -> vector<2x16xf32>
    %c0_503 = arith.constant 0 : index
    %c0_504 = arith.constant 0 : index
    %478 = vector.load %arg9[%c0_503, %c0_504] : memref<1x1xf32, #tpu.memory_space<vmem>>, vector<1x1xf32>
    %479 = vector.broadcast %478 : vector<1x1xf32> to vector<2x16xf32>
    %480 = arith.addf %477, %479 : vector<2x16xf32>
    %481 = vector.extract_strided_slice %480 {offsets = [0, 0], sizes = [2, 5], strides = [1, 1]} : vector<2x16xf32> to vector<2x5xf32>
    %c0_505 = arith.constant 0 : index
    %c0_506 = arith.constant 0 : index
    %482 = vector.load %arg10[%c0_505, %c0_506] : memref<2x5xf32, #tpu.memory_space<vmem>>, vector<2x5xf32>
    tpu.vector_store %arg10[%c0_505, %c0_506], %481 {strides = array<i32>} : memref<2x5xf32, #tpu.memory_space<vmem>>, vector<2x5xf32>,
    return
  }
  func.func @transform_0(%arg0: i32) -> (i32, i32) {
    %c0_i32 = arith.constant 0 : i32
    %c0_i32_0 = arith.constant 0 : i32
    return %arg0, %c0_i32 : i32, i32
  }
  func.func @transform_1(%arg0: i32) -> (i32, i32, i32) {
    %c0_i32 = arith.constant 0 : i32
    %c0_i32_0 = arith.constant 0 : i32
    %c0_i32_1 = arith.constant 0 : i32
    %c0_i32_2 = arith.constant 0 : i32
    return %c0_i32, %c0_i32_0, %c0_i32_1 : i32, i32, i32
  }
  func.func @transform_2(%arg0: i32) -> (i32, i32, i32) {
    %c0_i32 = arith.constant 0 : i32
    %c0_i32_0 = arith.constant 0 : i32
    %c0_i32_1 = arith.constant 0 : i32
    %c0_i32_2 = arith.constant 0 : i32
    return %c0_i32, %c0_i32_0, %c0_i32_1 : i32, i32, i32
  }
  func.func @transform_3(%arg0: i32) -> (i32, i32, i32) {
    %c0_i32 = arith.constant 0 : i32
    %c0_i32_0 = arith.constant 0 : i32
    %c0_i32_1 = arith.constant 0 : i32
    %c0_i32_2 = arith.constant 0 : i32
    return %c0_i32, %c0_i32_0, %c0_i32_1 : i32, i32, i32
  }
  func.func @transform_4(%arg0: i32) -> (i32, i32, i32) {
    %c0_i32 = arith.constant 0 : i32
    %c0_i32_0 = arith.constant 0 : i32
    %c0_i32_1 = arith.constant 0 : i32
    %c0_i32_2 = arith.constant 0 : i32
    return %c0_i32, %c0_i32_0, %c0_i32_1 : i32, i32, i32
  }
  func.func @transform_5(%arg0: i32) -> (i32, i32) {
    %c0_i32 = arith.constant 0 : i32
    %c0_i32_0 = arith.constant 0 : i32
    %c0_i32_1 = arith.constant 0 : i32
    return %c0_i32, %c0_i32_0 : i32, i32
  }
  func.func @transform_6(%arg0: i32) -> (i32, i32) {
    %c0_i32 = arith.constant 0 : i32
    %c0_i32_0 = arith.constant 0 : i32
    %c0_i32_1 = arith.constant 0 : i32
    return %c0_i32, %c0_i32_0 : i32, i32
  }
  func.func @transform_7(%arg0: i32) -> (i32, i32) {
    %c0_i32 = arith.constant 0 : i32
    %c0_i32_0 = arith.constant 0 : i32
    %c0_i32_1 = arith.constant 0 : i32
    return %c0_i32, %c0_i32_0 : i32, i32
  }
  func.func @transform_8(%arg0: i32) -> (i32, i32) {
    %c0_i32 = arith.constant 0 : i32
    %c0_i32_0 = arith.constant 0 : i32
    %c0_i32_1 = arith.constant 0 : i32
    return %c0_i32, %c0_i32_0 : i32, i32
  }
  func.func @transform_9(%arg0: i32) -> (i32, i32) {
    %c0_i32 = arith.constant 0 : i32
    %c0_i32_0 = arith.constant 0 : i32
    return %arg0, %c0_i32 : i32, i32
  }
}

</mosaic_0001>

<bundles_post_ra>
// kernel: xception_forward.1
= control target key start
LH: loop header
LB: loop body
LE: loop exit
PB: predicated region body
PF: predicated region fallthrough
CT: control target
= control target key end

     0   :  { %s6971_s0 = inlined_call_operand.vmem [shape: f32[64,16], index: 0, kind: input, shape index: {}]   ;;  %s6972_s1 = inlined_call_operand.vmem [shape: bf16[6,128,16], index: 1, kind: input, shape index: {}]   ;;  %s6973_s2 = inlined_call_operand.vmem [shape: bf16[2,128,32], index: 2, kind: input, shape index: {}]   ;;  %s6974_s3 = inlined_call_operand.vmem [shape: f32[6,1,16], index: 3, kind: input, shape index: {}]   ;;  %s6975_s4 = inlined_call_operand.vmem [shape: f32[2,1,16], index: 4, kind: input, shape index: {}]   ;;  %s6976_s5 = inlined_call_operand.vmem [shape: bf16[16,16], index: 5, kind: input, shape index: {}]   ;;  %s6977_s6 = inlined_call_operand.vmem [shape: f32[1,16], index: 6, kind: input, shape index: {}]   ;;  %s6978_s7 = inlined_call_operand.vmem [shape: f32[32,1], index: 7, kind: input, shape index: {}]   ;;  %s6979_s8 = inlined_call_operand.<no memory space> [shape: f32[1,1], index: 8, kind: input, shape index: {}]   ;;  %s6980_s9 = inlined_call_operand.hbm [shape: f32[2,5], index: 9, kind: output, shape index: {}]  }
   0x1   :  { %v14_v0 = vstv %s6979_s8 }
   0x2   :  { %15 = vst [vmem:[#allocation3] sm:$0x1] %v14_v0 }
   0x3   :  { %vm36_vm0 = vcmask 130048   ;;  %v5663_v1 = vld [vmem:[%s6971_s0] sm:$0xff]  ;;  %v5668_v2 = vld [vmem:[%s6971_s0 + $0x8] sm:$0xff]  ;;  %v5597_v3 = vmov 0.0   ;;  %v5679_v4 = vld [vmem:[%s6971_s0 + $0x10] sm:$0xff] }
   0x4   :  { %37 = vst.msk [vmem:[#allocation2] sm:$0xff] %vm36_vm0, %v5597_v3  ;;  %v5685_v5 = vld [vmem:[%s6971_s0 + $0x18] sm:$0xff] }
   0x5   :  { %49 = vst.msk [vmem:[#allocation2 + $0x8] sm:$0xff] %vm36_vm0, %v5663_v1 }
   0x6   :  { %50 = vst.msk [vmem:[#allocation2 + $0x10] sm:$0xff] %vm36_vm0, %v5668_v2 }
   0x7   :  { %38 = vst.msk [vmem:[#allocation2 + $0x30] sm:$0xff] %vm36_vm0, %v5597_v3 }
   0x8   :  { %39 = vst.msk [vmem:[#allocation2 + $0x28] sm:$0xff] %vm36_vm0, %v5597_v3 }
   0x9   :  { %40 = vst.msk [vmem:[#allocation2 + $0x58] sm:$0xff] %vm36_vm0, %v5597_v3 }
   0xa   :  { %51 = vst.msk [vmem:[#allocation2 + $0x18] sm:$0xff] %vm36_vm0, %v5679_v4 }
   0xb   :  { %16 = vsyncpa [#allocation5], 0  ;;  %52 = vst.msk [vmem:[#allocation2 + $0x20] sm:$0xff] %vm36_vm0, %v5685_v5  ;;  %v5695_v12 = vld [vmem:[%s6971_s0 + $0x20] sm:$0xff]  ;;  %v5700_v13 = vld [vmem:[%s6971_s0 + $0x28] sm:$0xff]  ;;  %s5598_s22 = smov 16  }
   0xc   :  { %v57_v6 = vld [vmem:[#allocation2 + $0x6] sm:$0xff]  ;;  %s5599_s23 = smov 48   ;;  %232 = vst.msk [vmem:[#allocation2 + $0x38] sm:$0xff] %vm36_vm0, %v5695_v12  ;;  %v5711_v23 = vld [vmem:[%s6971_s0 + $0x30] sm:$0xff]  ;;  %s5600_s26 = smov 80   ;;  %v5721_v33 = vld [vmem:[%s6971_s0 + $0x38] sm:$0xff] }
   0xd   :  { %v65_v7 = vld [vmem:[#allocation2 + $0x8] sm:$0xff]  ;;  %v66_v9 = vld [vmem:[#allocation2 + $0x10] sm:$0xff]  ;;  %233 = vst.msk [vmem:[#allocation2 + $0x40] sm:$0xff] %vm36_vm0, %v5700_v13  ;;  %s5601_s27 = smov 32   ;;  %s5602_s28 = smov 64   ;;  %vm201_vm1 = vcmask 261120  }
   0xe   :  { %v58_v8 = vld [vmem:[#allocation2 + $0xe] sm:$0xff]  ;;  %v4448_v11 = vpack.i.bf16 %v66_v9, %v65_v7  ;;  %234 = vst.msk [vmem:[#allocation2 + $0x48] sm:$0xff] %vm36_vm0, %v5711_v23  ;;  %s5603_s10 = smov 96   ;;  %s5604_s11 = smov 112   ;;  %v4362_v7 = vld [vmem:[%s6972_s1 + $0x38] sm:$0xff]  ;;  %vm206_vm2 = vcmask 392192  }
   0xf   :  { %v4438_v10 = vpack.i.bf16 %v58_v8, %v57_v6  ;;  %v61_v14 = vld [vmem:[#allocation2 + $0x7] sm:$0xff]  ;;  %v62_v15 = vld [vmem:[#allocation2 + $0xf] sm:$0xff]  ;;  %235 = vst.msk [vmem:[#allocation2 + $0x50] sm:$0xff] %vm36_vm0, %v5721_v33  ;;  %480 = vmatpush.bf16.msra.mxu0 %v4362_v7  ;;  %vm211_vm3 = vcmask 523264   ;;  %vm216_vm4 = vcmask 654336   ;;  %vm221_vm5 = vcmask 785408  }
  0x10   :  { %4449 = vrot.lane.b32.xlu1 %v4448_v11, %s5599_s23  ;;  %v69_v16 = vld [vmem:[#allocation2 + $0x9] sm:$0xff]  ;;  %v4443_v20 = vpack.i.bf16 %v62_v15, %v61_v14  ;;  %vm226_vm6 = vcmask 916480   ;;  %vm3846_vm7 = vcmask 1046528   ;;  %vm4057_vm8 = vcmask 1040384   ;;  %s4076_s12 = sshll.u32 %s6980_s9, 4  ;;  %s4077_s12 = int_to_ptr.hbm [resolvable:$true] %s4076_s12 }
  0x11   :  { %4439 = vrot.lane.b32.xlu0 %v4438_v10, %s5598_s22  ;;  %v70_v17 = vld [vmem:[#allocation2 + $0x11] sm:$0xff]  ;;  %vm4067_vm9 = vcmask 33792  }
  0x12   :  { %v73_v18 = vld [vmem:[#allocation2 + $0xa] sm:$0xff]  ;;  %v74_v19 = vld [vmem:[#allocation2 + $0x12] sm:$0xff]  ;;  %v4453_v21 = vpack.i.bf16 %v70_v17, %v69_v16  ;;  %v60_v29 = vld [vmem:[#allocation2 + $0x1e] sm:$0xff] }
  0x13   :  { %v4458_v22 = vpack.i.bf16 %v74_v19, %v73_v18  ;;  %v77_v24 = vld [vmem:[#allocation2 + $0xb] sm:$0xff]  ;;  %v78_v25 = vld [vmem:[#allocation2 + $0x13] sm:$0xff]  ;;  %v64_v35 = vld [vmem:[#allocation2 + $0x1f] sm:$0xff] }
  0x14   :  { %v81_v26 = vld [vmem:[#allocation2 + $0xc] sm:$0xff]  ;;  %v82_v27 = vld [vmem:[#allocation2 + $0x14] sm:$0xff]  ;;  %v4463_v30 = vpack.i.bf16 %v78_v25, %v77_v24  ;;  %v68_v37 = vld [vmem:[#allocation2 + $0x20] sm:$0xff] }
  0x15   :  { %4459 = vrot.lane.b32.xlu2 %v4458_v22, %s5600_s26  ;;  %v59_v28 = vld [vmem:[#allocation2 + $0x16] sm:$0xff]  ;;  %v4468_v31 = vpack.i.bf16 %v82_v27, %v81_v26  ;;  %v72_v39 = vld [vmem:[#allocation2 + $0x21] sm:$0xff] }
  0x16   :  { %v4473_v32 = vpack.i.bf16 %v60_v29, %v59_v28  ;;  %v63_v34 = vld [vmem:[#allocation2 + $0x17] sm:$0xff]  ;;  %v76_v44 = vld [vmem:[#allocation2 + $0x22] sm:$0xff]  ;;  %v243_v18 = vld [vmem:[#allocation2 + $0x4e] sm:$0xff] }
  0x17   :  { %v67_v36 = vld [vmem:[#allocation2 + $0x18] sm:$0xff]  ;;  %v4478_v40 = vpack.i.bf16 %v64_v35, %v63_v34  ;;  %v80_v46 = vld [vmem:[#allocation2 + $0x23] sm:$0xff]  ;;  %v4361_v9 = vld [vmem:[%s6972_s1 + $0x30] sm:$0xff] }
  0x18   :  { %4454 = vrot.lane.b32.xlu1 %v4453_v21, %s5602_s28  ;;  %v71_v38 = vld [vmem:[#allocation2 + $0x19] sm:$0xff]  ;;  %v4483_v41 = vpack.i.bf16 %v68_v37, %v67_v36  ;;  %v84_v48 = vld [vmem:[#allocation2 + $0x24] sm:$0xff]  ;;  %481 = vmatpush.bf16.msra.mxu0 %v4361_v9  ;;  %v251_v26 = vld [vmem:[#allocation2 + $0x50] sm:$0xff] }
  0x19   :  { %4444 = vrot.lane.b32.xlu0 %v4443_v20, %s5601_s27  ;;  %v4488_v42 = vpack.i.bf16 %v72_v39, %v71_v38  ;;  %v75_v43 = vld [vmem:[#allocation2 + $0x1a] sm:$0xff]  ;;  %v257_v0 = vld [vmem:[#allocation2 + $0x42] sm:$0xff]  ;;  %v247_v20 = vld [vmem:[#allocation2 + $0x4f] sm:$0xff] }
  0x1a   :  { %v79_v45 = vld [vmem:[#allocation2 + $0x1b] sm:$0xff]  ;;  %v4493_v49 = vpack.i.bf16 %v76_v44, %v75_v43  ;;  %v261_v6 = vld [vmem:[#allocation2 + $0x43] sm:$0xff]  ;;  %v255_v28 = vld [vmem:[#allocation2 + $0x51] sm:$0xff] }
  0x1b   :  { %v83_v47 = vld [vmem:[#allocation2 + $0x1c] sm:$0xff]  ;;  %v4498_v50 = vpack.i.bf16 %v80_v46, %v79_v45  ;;  %v265_v15 = vld [vmem:[#allocation2 + $0x44] sm:$0xff]  ;;  %v263_v36 = vld [vmem:[#allocation2 + $0x53] sm:$0xff] }
  0x1c   :  { %v4503_v51 = vpack.i.bf16 %v84_v48, %v83_v47  ;;  %v240_v52 = vld [vmem:[#allocation2 + $0x36] sm:$0xff]  ;;  %v241_v53 = vld [vmem:[#allocation2 + $0x3e] sm:$0xff]  ;;  %v4360_v16 = vld [vmem:[%s6972_s1 + $0x28] sm:$0xff] }
  0x1d   :  { %4464 = vrot.lane.b32.xlu2 %v4463_v30, %s5603_s10  ;;  %v244_v54 = vld [vmem:[#allocation2 + $0x37] sm:$0xff]  ;;  %v245_v55 = vld [vmem:[#allocation2 + $0x3f] sm:$0xff]  ;;  %v4508_v58 = vpack.i.bf16 %v241_v53, %v240_v52  ;;  %v246_v19 = vld [vmem:[#allocation2 + $0x47] sm:$0xff]  ;;  %482 = vmatpush.bf16.msra.mxu0 %v4360_v16 }
  0x1e   :  { %v248_v56 = vld [vmem:[#allocation2 + $0x38] sm:$0xff]  ;;  %v249_v57 = vld [vmem:[#allocation2 + $0x40] sm:$0xff]  ;;  %v4513_v59 = vpack.i.bf16 %v245_v55, %v244_v54  ;;  %v4548_v24 = vpack.i.bf16 %v247_v20, %v246_v19  ;;  %v250_v25 = vld [vmem:[#allocation2 + $0x48] sm:$0xff] }
  0x1f   :  { %v4518_v60 = vpack.i.bf16 %v249_v57, %v248_v56  ;;  %v252_v61 = vld [vmem:[#allocation2 + $0x39] sm:$0xff]  ;;  %v253_v62 = vld [vmem:[#allocation2 + $0x41] sm:$0xff]  ;;  %v254_v27 = vld [vmem:[#allocation2 + $0x49] sm:$0xff] }
  0x20   :  { %4474 = vrot.lane.b32.xlu1 %v4473_v32, %s5598_s22  ;;  %v256_v63 = vld [vmem:[#allocation2 + $0x3a] sm:$0xff]  ;;  %v4523_v8 = vpack.i.bf16 %v253_v62, %v252_v61  ;;  %v242_v17 = vld [vmem:[#allocation2 + $0x46] sm:$0xff]  ;;  %v259_v30 = vld [vmem:[#allocation2 + $0x52] sm:$0xff]  ;;  %v4558_v32 = vpack.i.bf16 %v255_v28, %v254_v27 }
  0x21   :  { %4469 = vrot.lane.b32.xlu0 %v4468_v31, %s5604_s11  ;;  %v260_v3 = vld [vmem:[#allocation2 + $0x3b] sm:$0xff]  ;;  %v4528_v10 = vpack.i.bf16 %v257_v0, %v256_v63  ;;  %v4543_v22 = vpack.i.bf16 %v243_v18, %v242_v17  ;;  %v258_v29 = vld [vmem:[#allocation2 + $0x4a] sm:$0xff]  ;;  %v4553_v31 = vpack.i.bf16 %v251_v26, %v250_v25 }
  0x22   :  { %v4533_v11 = vpack.i.bf16 %v261_v6, %v260_v3  ;;  %v264_v14 = vld [vmem:[#allocation2 + $0x3c] sm:$0xff]  ;;  %v4563_v34 = vpack.i.bf16 %v259_v30, %v258_v29  ;;  %v262_v35 = vld [vmem:[#allocation2 + $0x4b] sm:$0xff]  ;;  %v267_v38 = vld [vmem:[#allocation2 + $0x54] sm:$0xff] }
  0x23   :  { %v4538_v21 = vpack.i.bf16 %v265_v15, %v264_v14  ;;  %v266_v37 = vld [vmem:[#allocation2 + $0x4c] sm:$0xff]  ;;  %v4568_v39 = vpack.i.bf16 %v263_v36, %v262_v35  ;;  %v4355_v46 = vld [vmem:[%s6972_s1] sm:$0xff] }
  0x24   :  { %v4357_v43 = vld [vmem:[%s6972_s1 + $0x10] sm:$0xff]  ;;  %v4356_v44 = vld [vmem:[%s6972_s1 + $0x8] sm:$0xff] }
  0x25   :  { %4479 = vrot.lane.b32.xlu2 %v4478_v40, %s5601_s27  ;;  %v4573_v40 = vpack.i.bf16 %v267_v38, %v266_v37  ;;  %v54_v53 = vld [vmem:[#allocation2 + $0xd] sm:$0xff]  ;;  %v53_v54 = vld [vmem:[#allocation2 + $0x5] sm:$0xff] }
  0x28   :  { %4489 = vrot.lane.b32.xlu1 %v4488_v42, %s5602_s28  ;;  %v4358_v42 = vld [vmem:[%s6972_s1 + $0x18] sm:$0xff] }
  0x29   :  { %4484 = vrot.lane.b32.xlu0 %v4483_v41, %s5599_s23  ;;  %v4359_v41 = vld [vmem:[%s6972_s1 + $0x20] sm:$0xff] }
  0x2a   :  { %483 = vmatpush.bf16.msra.mxu0 %v4359_v41 }
  0x2d   :  { %4494 = vrot.lane.b32.xlu2 %v4493_v49, %s5600_s26 }
  0x2e   :  { %484 = vmatpush.bf16.msra.mxu0 %v4358_v42 }
  0x30   :  { %4504 = vrot.lane.b32.xlu1 %v4503_v51, %s5604_s11 }
  0x31   :  { %4499 = vrot.lane.b32.xlu0 %v4498_v50, %s5603_s10 }
  0x32   :  { %485 = vmatpush.bf16.msra.mxu0 %v4357_v43 }
  0x35   :  { %4509 = vrot.lane.b32.xlu2 %v4508_v58, %s5598_s22 }
  0x36   :  { %486 = vmatpush.bf16.msra.mxu0 %v4356_v44 }
  0x38   :  { %4519 = vrot.lane.b32.xlu1 %v4518_v60, %s5599_s23 }
  0x39   :  { %4514 = vrot.lane.b32.xlu0 %v4513_v59, %s5601_s27 }
  0x3a   :  { %487 = vmatpush.bf16.msra.mxu0 %v4355_v46 }
  0x3d   :  { %4524 = vrot.lane.b32.xlu2 %v4523_v8, %s5602_s28 }
  0x40   :  { %4534 = vrot.lane.b32.xlu1 %v4533_v11, %s5603_s10 }
  0x41   :  { %4529 = vrot.lane.b32.xlu0 %v4528_v10, %s5600_s26 }
  0x45   :  { %4539 = vrot.lane.b32.xlu2 %v4538_v21, %s5604_s11 }
  0x48   :  { %4549 = vrot.lane.b32.xlu1 %v4548_v24, %s5601_s27 }
  0x49   :  { %4544 = vrot.lane.b32.xlu0 %v4543_v22, %s5598_s22 }
  0x4d   :  { %4554 = vrot.lane.b32.xlu2 %v4553_v31, %s5599_s23 }
  0x50   :  { %4564 = vrot.lane.b32.xlu1 %v4563_v34, %s5600_s26  ;;  %v56_v34 = vld [vmem:[#allocation2 + $0x1d] sm:$0xff] }
  0x51   :  { %4559 = vrot.lane.b32.xlu0 %v4558_v32, %s5602_s28  ;;  %v55_v32 = vld [vmem:[#allocation2 + $0x15] sm:$0xff] }
  0x55   :  { %4569 = vrot.lane.b32.xlu2 %v4568_v39, %s5603_s10 }
  0x59   :  { %4574 = vrot.lane.b32.xlu0 %v4573_v40, %s5604_s11 }
  0x6f   :  { %v4460_v45 = vpop.permute.xlu2 %4459 }
  0x70   :  { %v4462_v9 = vunpack.i.h.bf16 %v4460_v45  ;;  %v4461_v10 = vunpack.i.l.bf16 %v4460_v45 }
  0x77   :  { %v4465_v47 = vpop.permute.xlu2 %4464 }
  0x78   :  { %v4467_v15 = vunpack.i.h.bf16 %v4465_v47  ;;  %v4466_v16 = vunpack.i.l.bf16 %v4465_v47 }
  0x7f   :  { %v4480_v50 = vpop.permute.xlu2 %4479 }
  0x80   :  { %v4482_v35 = vunpack.i.h.bf16 %v4480_v50  ;;  %v4481_v36 = vunpack.i.l.bf16 %v4480_v50 }
  0x82   :  { %v4450_v49 = vpop.permute.xlu1 %4449 }
  0x83   :  { %v4440_v48 = vpop.permute.xlu0 %4439  ;;  %v4452_v63 = vunpack.i.h.bf16 %v4450_v49  ;;  %v4451_v0 = vunpack.i.l.bf16 %v4450_v49 }
  0x84   :  { %v4442_v51 = vunpack.i.h.bf16 %v4440_v48  ;;  %v4441_v52 = vunpack.i.l.bf16 %v4440_v48 }
  0x86   :  { %v198_v61 = vsel %vm36_vm0, %v54_v53, %v4442_v51  ;;  %v197_v62 = vsel %vm36_vm0, %v53_v54, %v4441_v52 }
  0x87   :  { %v4495_v19 = vpop.permute.xlu2 %4494 }
  0x88   :  { %v4497_v50 = vunpack.i.h.bf16 %v4495_v19  ;;  %v4496_v51 = vunpack.i.l.bf16 %v4495_v19 }
  0x8a   :  { %v4455_v56 = vpop.permute.xlu1 %4454 }
  0x8b   :  { %v4445_v55 = vpop.permute.xlu0 %4444  ;;  %v4457_v59 = vunpack.i.h.bf16 %v4455_v56  ;;  %v4456_v60 = vunpack.i.l.bf16 %v4455_v56 }
  0x8c   :  { %v4447_v57 = vunpack.i.h.bf16 %v4445_v55  ;;  %v4446_v58 = vunpack.i.l.bf16 %v4445_v55 }
  0x8e   :  { %v202_v3 = vsel %vm201_vm1, %v197_v62, %v4446_v58  ;;  %v203_v6 = vsel %vm201_vm1, %v198_v61, %v4447_v57 }
  0x8f   :  { %v207_v7 = vsel %vm206_vm2, %v202_v3, %v4451_v0  ;;  %v208_v8 = vsel %vm206_vm2, %v203_v6, %v4452_v63  ;;  %v4510_v43 = vpop.permute.xlu2 %4509 }
  0x90   :  { %v212_v11 = vsel %vm211_vm3, %v207_v7, %v4456_v60  ;;  %v213_v14 = vsel %vm211_vm3, %v208_v8, %v4457_v59  ;;  %v4512_v7 = vunpack.i.h.bf16 %v4510_v43  ;;  %v4511_v8 = vunpack.i.l.bf16 %v4510_v43 }
  0x91   :  { %v217_v17 = vsel %vm216_vm4, %v212_v11, %v4461_v10  ;;  %v218_v18 = vsel %vm216_vm4, %v213_v14, %v4462_v9  ;;  %v237_v10 = vld [vmem:[#allocation2 + $0x3d] sm:$0xff]  ;;  %v236_v11 = vld [vmem:[#allocation2 + $0x35] sm:$0xff] }
  0x92   :  { %v4475_v21 = vpop.permute.xlu1 %4474  ;;  %v222_v25 = vsel %vm221_vm5, %v217_v17, %v4466_v16  ;;  %v223_v26 = vsel %vm221_vm5, %v218_v18, %v4467_v15  ;;  %v381_v16 = vsel %vm36_vm0, %v237_v10, %v4512_v7  ;;  %v380_v17 = vsel %vm36_vm0, %v236_v11, %v4511_v8 }
  0x93   :  { %v4470_v20 = vpop.permute.xlu0 %4469  ;;  %v4477_v29 = vunpack.i.h.bf16 %v4475_v21  ;;  %v4476_v30 = vunpack.i.l.bf16 %v4475_v21 }
  0x94   :  { %v4472_v22 = vunpack.i.h.bf16 %v4470_v20  ;;  %v4471_v24 = vunpack.i.l.bf16 %v4470_v20 }
  0x95   :  { %v200_v37 = vsel %vm36_vm0, %v56_v34, %v4477_v29  ;;  %v199_v38 = vsel %vm36_vm0, %v55_v32, %v4476_v30 }
  0x96   :  { %v227_v27 = vsel %vm226_vm6, %v222_v25, %v4471_v24  ;;  %v228_v28 = vsel %vm226_vm6, %v223_v26, %v4472_v22  ;;  %v204_v44 = vsel %vm201_vm1, %v199_v38, %v4481_v36  ;;  %v205_v45 = vsel %vm201_vm1, %v200_v37, %v4482_v35 }
  0x97   :  { %v408_v31 = vpack.c.bf16 %v228_v28, %v227_v27  ;;  %v4525_v0 = vpop.permute.xlu2 %4524 }
  0x98   :  { %v4527_v26 = vunpack.i.h.bf16 %v4525_v0  ;;  %v4526_v27 = vunpack.i.l.bf16 %v4525_v0 }
  0x99   :  { %488 = vmatmul.bf16.vlgmr.msra.gmra.mxu0 %v408_v31 }
  0x9a   :  { %v4490_v40 = vpop.permute.xlu1 %4489 }
  0x9b   :  { %v4485_v39 = vpop.permute.xlu0 %4484  ;;  %v4492_v46 = vunpack.i.h.bf16 %v4490_v40  ;;  %v4491_v47 = vunpack.i.l.bf16 %v4490_v40 }
  0x9c   :  { %v4487_v41 = vunpack.i.h.bf16 %v4485_v39  ;;  %v4486_v42 = vunpack.i.l.bf16 %v4485_v39 }
  0x9e   :  { %v210_v48 = vsel %vm206_vm2, %v205_v45, %v4487_v41  ;;  %v209_v49 = vsel %vm206_vm2, %v204_v44, %v4486_v42 }
  0x9f   :  { %v214_v52 = vsel %vm211_vm3, %v209_v49, %v4491_v47  ;;  %v215_v53 = vsel %vm211_vm3, %v210_v48, %v4492_v46  ;;  %v4540_v25 = vpop.permute.xlu2 %4539 }
  0xa0   :  { %v219_v60 = vsel %vm216_vm4, %v214_v52, %v4496_v51  ;;  %v220_v61 = vsel %vm216_vm4, %v215_v53, %v4497_v50  ;;  %v4542_v32 = vunpack.i.h.bf16 %v4540_v25  ;;  %v4541_v34 = vunpack.i.l.bf16 %v4540_v25  ;;  %v238_v53 = vld [vmem:[#allocation2 + $0x45] sm:$0xff] }
  0xa2   :  { %v4505_v55 = vpop.permute.xlu1 %4504 }
  0xa3   :  { %v4500_v54 = vpop.permute.xlu0 %4499  ;;  %v4507_v58 = vunpack.i.h.bf16 %v4505_v55  ;;  %v4506_v59 = vunpack.i.l.bf16 %v4505_v55 }
  0xa4   :  { %v4502_v56 = vunpack.i.h.bf16 %v4500_v54  ;;  %v4501_v57 = vunpack.i.l.bf16 %v4500_v54  ;;  %v239_v54 = vld [vmem:[#allocation2 + $0x4d] sm:$0xff] }
  0xa6   :  { %v224_v62 = vsel %vm221_vm5, %v219_v60, %v4501_v57  ;;  %v225_v63 = vsel %vm221_vm5, %v220_v61, %v4502_v56 }
  0xa7   :  { %v229_v3 = vsel %vm226_vm6, %v224_v62, %v4506_v59  ;;  %v230_v6 = vsel %vm226_vm6, %v225_v63, %v4507_v58  ;;  %v4555_v52 = vpop.permute.xlu2 %4554 }
  0xa8   :  { %v409_v9 = vpack.c.bf16 %v230_v6, %v229_v3  ;;  %v4557_v59 = vunpack.i.h.bf16 %v4555_v52  ;;  %v4556_v60 = vunpack.i.l.bf16 %v4555_v52 }
  0xaa   :  { %493 = vmatmul.bf16.gmra.mxu0 %v409_v9  ;;  %v4520_v15 = vpop.permute.xlu1 %4519 }
  0xab   :  { %v4515_v14 = vpop.permute.xlu0 %4514  ;;  %v4522_v20 = vunpack.i.h.bf16 %v4520_v15  ;;  %v4521_v21 = vunpack.i.l.bf16 %v4520_v15 }
  0xac   :  { %v4517_v18 = vunpack.i.h.bf16 %v4515_v14  ;;  %v4516_v19 = vunpack.i.l.bf16 %v4515_v14 }
  0xae   :  { %v385_v22 = vsel %vm201_vm1, %v381_v16, %v4517_v18  ;;  %v384_v24 = vsel %vm201_vm1, %v380_v17, %v4516_v19 }
  0xaf   :  { %v388_v28 = vsel %vm206_vm2, %v384_v24, %v4521_v21  ;;  %v389_v29 = vsel %vm206_vm2, %v385_v22, %v4522_v20  ;;  %v4570_v11 = vpop.permute.xlu2 %4569 }
  0xb0   :  { %v392_v39 = vsel %vm211_vm3, %v388_v28, %v4526_v27  ;;  %v393_v40 = vsel %vm211_vm3, %v389_v29, %v4527_v26  ;;  %v4572_v16 = vunpack.i.h.bf16 %v4570_v11  ;;  %v4571_v17 = vunpack.i.l.bf16 %v4570_v11  ;;  %v5831_v29 = vld [vmem:[%s6974_s3] ss:$0 sm:$0xff] }
  0xb2   :  { %v4535_v31 = vpop.permute.xlu1 %4534 }
  0xb3   :  { %v4530_v30 = vpop.permute.xlu0 %4529  ;;  %v4537_v37 = vunpack.i.h.bf16 %v4535_v31  ;;  %v4536_v38 = vunpack.i.l.bf16 %v4535_v31 }
  0xb4   :  { %v4532_v35 = vunpack.i.h.bf16 %v4530_v30  ;;  %v4531_v36 = vunpack.i.l.bf16 %v4530_v30 }
  0xb6   :  { %v396_v41 = vsel %vm216_vm4, %v392_v39, %v4531_v36  ;;  %v397_v42 = vsel %vm216_vm4, %v393_v40, %v4532_v35 }
  0xb7   :  { %v400_v43 = vsel %vm221_vm5, %v396_v41, %v4536_v38  ;;  %v401_v44 = vsel %vm221_vm5, %v397_v42, %v4537_v37 }
  0xb8   :  { %v404_v45 = vsel %vm226_vm6, %v400_v43, %v4541_v34  ;;  %v405_v46 = vsel %vm226_vm6, %v401_v44, %v4542_v32 }
  0xb9   :  { %v410_v47 = vpack.c.bf16 %v405_v46, %v404_v45 }
  0xba   :  { %v4550_v49 = vpop.permute.xlu1 %4549 }
  0xbb   :  { %v4545_v48 = vpop.permute.xlu0 %4544  ;;  %498 = vmatmul.bf16.gmra.mxu0 %v410_v47  ;;  %v4552_v55 = vunpack.i.h.bf16 %v4550_v49  ;;  %v4551_v56 = vunpack.i.l.bf16 %v4550_v49 }
  0xbc   :  { %v4547_v50 = vunpack.i.h.bf16 %v4545_v48  ;;  %v4546_v51 = vunpack.i.l.bf16 %v4545_v48 }
  0xbe   :  { %v383_v57 = vsel %vm36_vm0, %v239_v54, %v4547_v50  ;;  %v382_v58 = vsel %vm36_vm0, %v238_v53, %v4546_v51 }
  0xbf   :  { %v386_v61 = vsel %vm201_vm1, %v382_v58, %v4551_v56  ;;  %v387_v62 = vsel %vm201_vm1, %v383_v57, %v4552_v55 }
  0xc0   :  { %v390_v7 = vsel %vm206_vm2, %v386_v61, %v4556_v60  ;;  %v391_v8 = vsel %vm206_vm2, %v387_v62, %v4557_v59 }
  0xc2   :  { %v4565_v0 = vpop.permute.xlu1 %4564 }
  0xc3   :  { %v4560_v63 = vpop.permute.xlu0 %4559  ;;  %v4567_v9 = vunpack.i.h.bf16 %v4565_v0  ;;  %v4566_v10 = vunpack.i.l.bf16 %v4565_v0 }
  0xc4   :  { %v4562_v3 = vunpack.i.h.bf16 %v4560_v63  ;;  %v4561_v6 = vunpack.i.l.bf16 %v4560_v63 }
  0xc6   :  { %v394_v14 = vsel %vm211_vm3, %v390_v7, %v4561_v6  ;;  %v395_v15 = vsel %vm211_vm3, %v391_v8, %v4562_v3 }
  0xc7   :  { %v398_v18 = vsel %vm216_vm4, %v394_v14, %v4566_v10  ;;  %v399_v19 = vsel %vm216_vm4, %v395_v15, %v4567_v9 }
  0xc8   :  { %v402_v24 = vsel %vm221_vm5, %v398_v18, %v4571_v17  ;;  %v403_v25 = vsel %vm221_vm5, %v399_v19, %v4572_v16 }
  0xcb   :  { %v4575_v20 = vpop.permute.xlu0 %4574 }
  0xcc   :  { %v4577_v21 = vunpack.i.h.bf16 %v4575_v20  ;;  %v4576_v22 = vunpack.i.l.bf16 %v4575_v20 }
  0xce   :  { %v406_v26 = vsel %vm226_vm6, %v402_v24, %v4576_v22  ;;  %v407_v27 = vsel %vm226_vm6, %v403_v25, %v4577_v21 }
  0xcf   :  { %v411_v28 = vpack.c.bf16 %v407_v27, %v406_v26 }
  0xd1   :  { %503 = vmatmul.bf16.gmra.mxu0 %v411_v28 }
 0x116   :  { %v489_v30 = vpop.f32.mrf.mxu0 }
 0x117   :  { %v490_v31 = vadd.f32 %v5831_v29, %v489_v30 }
 0x119   :  { %v509_v32 = vmax.f32 %v490_v31, 0.0 }
 0x11b   :  { %517 = vst.msk [vmem:[#allocation2 + $0x8] sm:$0xff] %vm36_vm0, %v509_v32 }
 0x11e   :  { %v491_v34 = vpop.f32.mrf.mxu0 }
 0x11f   :  { %v492_v35 = vadd.f32 %v5831_v29, %v491_v34 }
 0x121   :  { %v510_v36 = vmax.f32 %v492_v35, 0.0 }
 0x122   :  { %v533_v39 = vld [vmem:[#allocation2 + $0x8] sm:$0xff] }
 0x123   :  { %518 = vst.msk [vmem:[#allocation2 + $0x10] sm:$0xff] %vm36_vm0, %v510_v36  ;;  %v529_v40 = vld [vmem:[#allocation2 + $0x7] sm:$0xff] }
 0x124   :  { %v525_v41 = vld [vmem:[#allocation2 + $0x6] sm:$0xff] }
 0x127   :  { %v494_v37 = vpop.f32.mrf.mxu0 }
 0x128   :  { %v495_v38 = vadd.f32 %v5831_v29, %v494_v37 }
 0x12a   :  { %v511_v42 = vmax.f32 %v495_v38, 0.0  ;;  %v534_v43 = vld [vmem:[#allocation2 + $0x10] sm:$0xff] }
 0x12b   :  { %v530_v44 = vld [vmem:[#allocation2 + $0xf] sm:$0xff]  ;;  %v4588_v46 = vpack.i.bf16 %v534_v43, %v533_v39 }
 0x12c   :  { %v526_v45 = vld [vmem:[#allocation2 + $0xe] sm:$0xff]  ;;  %v4583_v47 = vpack.i.bf16 %v530_v44, %v529_v40  ;;  %519 = vst.msk [vmem:[#allocation2 + $0x18] sm:$0xff] %vm36_vm0, %v511_v42 }
 0x12d   :  { %v4578_v48 = vpack.i.bf16 %v526_v45, %v525_v41  ;;  %4589 = vrot.lane.b32.xlu0 %v4588_v46, %s5599_s23  ;;  %v545_v52 = vld [vmem:[#allocation2 + $0xb] sm:$0xff] }
 0x12e   :  { %4584 = vrot.lane.b32.xlu2 %v4583_v47, %s5601_s27  ;;  %v541_v53 = vld [vmem:[#allocation2 + $0xa] sm:$0xff] }
 0x12f   :  { %4579 = vrot.lane.b32.xlu1 %v4578_v48, %s5598_s22  ;;  %v496_v49 = vpop.f32.mrf.mxu0  ;;  %v537_v54 = vld [vmem:[#allocation2 + $0x9] sm:$0xff] }
 0x130   :  { %v497_v50 = vadd.f32 %v5831_v29, %v496_v49  ;;  %v549_v11 = vld [vmem:[#allocation2 + $0xc] sm:$0xff] }
 0x132   :  { %v512_v51 = vmax.f32 %v497_v50, 0.0  ;;  %v4370_v50 = vld [vmem:[%s6972_s1 + $0x78] sm:$0xff] }
 0x133   :  { %v546_v55 = vld [vmem:[#allocation2 + $0x13] sm:$0xff]  ;;  %943 = vmatpush.bf16.msrb.mxu0 %v4370_v50  ;;  %4404 = vmatpush.bf16.msra.mxu1 %v4370_v50 }
 0x134   :  { %v542_v56 = vld [vmem:[#allocation2 + $0x12] sm:$0xff]  ;;  %520 = vst.msk [vmem:[#allocation2 + $0x20] sm:$0xff] %vm36_vm0, %v512_v51  ;;  %v4603_v58 = vpack.i.bf16 %v546_v55, %v545_v52 }
 0x135   :  { %v538_v57 = vld [vmem:[#allocation2 + $0x11] sm:$0xff]  ;;  %v4598_v59 = vpack.i.bf16 %v542_v56, %v541_v53 }
 0x136   :  { %v4593_v60 = vpack.i.bf16 %v538_v57, %v537_v54  ;;  %4604 = vrot.lane.b32.xlu0 %v4603_v58, %s5603_s10  ;;  %v531_v63 = vld [vmem:[#allocation2 + $0x17] sm:$0xff] }
 0x137   :  { %4599 = vrot.lane.b32.xlu2 %v4598_v59, %s5600_s26  ;;  %v550_v0 = vld [vmem:[#allocation2 + $0x14] sm:$0xff] }
 0x138   :  { %4594 = vrot.lane.b32.xlu1 %v4593_v60, %s5602_s28  ;;  %v499_v61 = vpop.f32.mrf.mxu0  ;;  %v527_v7 = vld [vmem:[#allocation2 + $0x16] sm:$0xff]  ;;  %v4608_v14 = vpack.i.bf16 %v550_v0, %v549_v11 }
 0x139   :  { %v500_v62 = vadd.f32 %v5831_v29, %v499_v61  ;;  %v535_v26 = vld [vmem:[#allocation2 + $0x18] sm:$0xff]  ;;  %v4369_v55 = vld [vmem:[%s6972_s1 + $0x70] sm:$0xff]  ;;  %v4368_v61 = vld [vmem:[%s6972_s1 + $0x68] sm:$0xff] }
 0x13a   :  { %944 = vmatpush.bf16.msrb.mxu0 %v4369_v55  ;;  %4405 = vmatpush.bf16.msra.mxu1 %v4369_v55 }
 0x13b   :  { %v513_v3 = vmax.f32 %v500_v62, 0.0  ;;  %v532_v6 = vld [vmem:[#allocation2 + $0x1f] sm:$0xff] }
 0x13c   :  { %v528_v8 = vld [vmem:[#allocation2 + $0x1e] sm:$0xff]  ;;  %v4618_v9 = vpack.i.bf16 %v532_v6, %v531_v63 }
 0x13d   :  { %v4613_v10 = vpack.i.bf16 %v528_v8, %v527_v7  ;;  %693 = vst.msk [vmem:[#allocation2 + $0x38] sm:$0xff] %vm36_vm0, %v513_v3  ;;  %v543_v16 = vld [vmem:[#allocation2 + $0x1a] sm:$0xff]  ;;  %v544_v18 = vld [vmem:[#allocation2 + $0x22] sm:$0xff] }
 0x13e   :  { %4619 = vrot.lane.b32.xlu0 %v4618_v9, %s5601_s27  ;;  %v539_v19 = vld [vmem:[#allocation2 + $0x19] sm:$0xff]  ;;  %v540_v20 = vld [vmem:[#allocation2 + $0x21] sm:$0xff]  ;;  %v4633_v24 = vpack.i.bf16 %v544_v18, %v543_v16  ;;  %945 = vmatpush.bf16.msrb.mxu0 %v4368_v61 }
 0x13f   :  { %4614 = vrot.lane.b32.xlu2 %v4613_v10, %s5598_s22  ;;  %v536_v21 = vld [vmem:[#allocation2 + $0x20] sm:$0xff]  ;;  %v4628_v25 = vpack.i.bf16 %v540_v20, %v539_v19  ;;  %4406 = vmatpush.bf16.msra.mxu1 %v4368_v61 }
 0x140   :  { %4609 = vrot.lane.b32.xlu1 %v4608_v14, %s5604_s11  ;;  %v501_v15 = vpop.f32.mrf.mxu0  ;;  %v4623_v27 = vpack.i.bf16 %v536_v21, %v535_v26  ;;  %v551_v28 = vld [vmem:[#allocation2 + $0x1c] sm:$0xff]  ;;  %v552_v30 = vld [vmem:[#allocation2 + $0x24] sm:$0xff] }
 0x141   :  { %v502_v17 = vadd.f32 %v5831_v29, %v501_v15  ;;  %v547_v31 = vld [vmem:[#allocation2 + $0x1b] sm:$0xff]  ;;  %v548_v32 = vld [vmem:[#allocation2 + $0x23] sm:$0xff]  ;;  %v4643_v34 = vpack.i.bf16 %v552_v30, %v551_v28 }
 0x142   :  { %v4638_v37 = vpack.i.bf16 %v548_v32, %v547_v31  ;;  %v4367_v14 = vld [vmem:[%s6972_s1 + $0x60] sm:$0xff]  ;;  %v4366_v26 = vld [vmem:[%s6972_s1 + $0x58] sm:$0xff]  ;;  %v4365_v32 = vld [vmem:[%s6972_s1 + $0x50] sm:$0xff] }
 0x143   :  { %v514_v22 = vmax.f32 %v502_v17, 0.0  ;;  %946 = vmatpush.bf16.msrb.mxu0 %v4367_v14  ;;  %4407 = vmatpush.bf16.msra.mxu1 %v4367_v14 }
 0x144   :  { %v701_v35 = vld [vmem:[#allocation2 + $0x36] sm:$0xff] }
 0x145   :  { %694 = vst.msk [vmem:[#allocation2 + $0x40] sm:$0xff] %vm36_vm0, %v514_v22  ;;  %v709_v44 = vld [vmem:[#allocation2 + $0x38] sm:$0xff] }
 0x146   :  { %4634 = vrot.lane.b32.xlu0 %v4633_v24, %s5600_s26  ;;  %v705_v46 = vld [vmem:[#allocation2 + $0x37] sm:$0xff] }
 0x147   :  { %4629 = vrot.lane.b32.xlu2 %v4628_v25, %s5602_s28  ;;  %947 = vmatpush.bf16.msrb.mxu0 %v4366_v26 }
 0x148   :  { %4624 = vrot.lane.b32.xlu1 %v4623_v27, %s5599_s23  ;;  %4408 = vmatpush.bf16.msra.mxu1 %v4366_v26 }
 0x14b   :  { %948 = vmatpush.bf16.msrb.mxu0 %v4365_v32 }
 0x14c   :  { %v702_v36 = vld [vmem:[#allocation2 + $0x3e] sm:$0xff]  ;;  %4409 = vmatpush.bf16.msra.mxu1 %v4365_v32 }
 0x14d   :  { %v4648_v38 = vpack.i.bf16 %v702_v36, %v701_v35  ;;  %v710_v42 = vld [vmem:[#allocation2 + $0x40] sm:$0xff] }
 0x14e   :  { %v504_v39 = vpop.f32.mrf.mxu0  ;;  %v706_v43 = vld [vmem:[#allocation2 + $0x3f] sm:$0xff]  ;;  %v4658_v45 = vpack.i.bf16 %v710_v42, %v709_v44 }
 0x14f   :  { %4644 = vrot.lane.b32.xlu2 %v4643_v34, %s5604_s11  ;;  %v505_v40 = vadd.f32 %v5831_v29, %v504_v39  ;;  %4649 = vrot.lane.b32.xlu0 %v4648_v38, %s5598_s22  ;;  %v4653_v47 = vpack.i.bf16 %v706_v43, %v705_v46  ;;  %v713_v51 = vld [vmem:[#allocation2 + $0x39] sm:$0xff]  ;;  %v4364_v34 = vld [vmem:[%s6972_s1 + $0x48] sm:$0xff] }
 0x150   :  { %4639 = vrot.lane.b32.xlu1 %v4638_v37, %s5603_s10  ;;  %v721_v53 = vld [vmem:[#allocation2 + $0x3b] sm:$0xff]  ;;  %949 = vmatpush.bf16.msrb.mxu0 %v4364_v34  ;;  %v521_v42 = vld [vmem:[#allocation2 + $0x5] sm:$0xff]  ;;  %v522_v43 = vld [vmem:[#allocation2 + $0xd] sm:$0xff] }
 0x151   :  { %v515_v41 = vmax.f32 %v505_v40, 0.0  ;;  %v717_v54 = vld [vmem:[#allocation2 + $0x3a] sm:$0xff]  ;;  %4410 = vmatpush.bf16.msra.mxu1 %v4364_v34 }
 0x152   :  { %v725_v63 = vld [vmem:[#allocation2 + $0x3c] sm:$0xff] }
 0x153   :  { %695 = vst.msk [vmem:[#allocation2 + $0x48] sm:$0xff] %vm36_vm0, %v515_v41  ;;  %v4363_v35 = vld [vmem:[%s6972_s1 + $0x40] sm:$0xff] }
 0x154   :  { %950 = vmatpush.bf16.msrb.mxu0 %v4363_v35 }
 0x155   :  { %4411 = vmatpush.bf16.msra.mxu1 %v4363_v35 }
 0x156   :  { %v506_v48 = vpop.f32.mrf.mxu0 }
 0x157   :  { %4659 = vrot.lane.b32.xlu2 %v4658_v45, %s5599_s23  ;;  %v507_v49 = vadd.f32 %v5831_v29, %v506_v48 }
 0x158   :  { %4654 = vrot.lane.b32.xlu1 %v4653_v47, %s5601_s27 }
 0x159   :  { %v516_v52 = vmax.f32 %v507_v49, 0.0 }
 0x15a   :  { %v714_v56 = vld [vmem:[#allocation2 + $0x41] sm:$0xff] }
 0x15b   :  { %v722_v57 = vld [vmem:[#allocation2 + $0x43] sm:$0xff]  ;;  %696 = vst.msk [vmem:[#allocation2 + $0x50] sm:$0xff] %vm36_vm0, %v516_v52  ;;  %v4663_v29 = vpack.i.bf16 %v714_v56, %v713_v51 }
 0x15c   :  { %v718_v58 = vld [vmem:[#allocation2 + $0x42] sm:$0xff]  ;;  %v4673_v59 = vpack.i.bf16 %v722_v57, %v721_v53 }
 0x15d   :  { %v4668_v60 = vpack.i.bf16 %v718_v58, %v717_v54  ;;  %4664 = vrot.lane.b32.xlu0 %v4663_v29, %s5602_s28  ;;  %v726_v62 = vld [vmem:[#allocation2 + $0x44] sm:$0xff] }
 0x15e   :  { %v707_v0 = vld [vmem:[#allocation2 + $0x47] sm:$0xff]  ;;  %v4678_v8 = vpack.i.bf16 %v726_v62, %v725_v63 }
 0x15f   :  { %4674 = vrot.lane.b32.xlu2 %v4673_v59, %s5603_s10  ;;  %v703_v6 = vld [vmem:[#allocation2 + $0x46] sm:$0xff] }
 0x160   :  { %4669 = vrot.lane.b32.xlu1 %v4668_v60, %s5600_s26  ;;  %v711_v17 = vld [vmem:[#allocation2 + $0x48] sm:$0xff] }
 0x162   :  { %v708_v3 = vld [vmem:[#allocation2 + $0x4f] sm:$0xff] }
 0x163   :  { %v704_v7 = vld [vmem:[#allocation2 + $0x4e] sm:$0xff]  ;;  %v4688_v9 = vpack.i.bf16 %v708_v3, %v707_v0 }
 0x164   :  { %v4683_v10 = vpack.i.bf16 %v704_v7, %v703_v6  ;;  %v712_v11 = vld [vmem:[#allocation2 + $0x50] sm:$0xff] }
 0x165   :  { %4679 = vrot.lane.b32.xlu0 %v4678_v8, %s5604_s11  ;;  %v719_v15 = vld [vmem:[#allocation2 + $0x4a] sm:$0xff]  ;;  %v720_v16 = vld [vmem:[#allocation2 + $0x52] sm:$0xff]  ;;  %v4693_v20 = vpack.i.bf16 %v712_v11, %v711_v17 }
 0x166   :  { %v715_v18 = vld [vmem:[#allocation2 + $0x49] sm:$0xff]  ;;  %v716_v19 = vld [vmem:[#allocation2 + $0x51] sm:$0xff]  ;;  %v4703_v21 = vpack.i.bf16 %v720_v16, %v719_v15 }
 0x167   :  { %4689 = vrot.lane.b32.xlu2 %v4688_v9, %s5601_s27  ;;  %v4698_v22 = vpack.i.bf16 %v716_v19, %v715_v18  ;;  %v723_v24 = vld [vmem:[#allocation2 + $0x4b] sm:$0xff]  ;;  %v724_v25 = vld [vmem:[#allocation2 + $0x53] sm:$0xff] }
 0x168   :  { %4684 = vrot.lane.b32.xlu1 %v4683_v10, %s5598_s22  ;;  %v727_v27 = vld [vmem:[#allocation2 + $0x4c] sm:$0xff]  ;;  %v728_v28 = vld [vmem:[#allocation2 + $0x54] sm:$0xff]  ;;  %v4708_v30 = vpack.i.bf16 %v724_v25, %v723_v24  ;;  %v524_v25 = vld [vmem:[#allocation2 + $0x1d] sm:$0xff] }
 0x169   :  { %v4713_v31 = vpack.i.bf16 %v728_v28, %v727_v27  ;;  %v523_v24 = vld [vmem:[#allocation2 + $0x15] sm:$0xff] }
 0x16d   :  { %4694 = vrot.lane.b32.xlu0 %v4693_v20, %s5599_s23 }
 0x16f   :  { %4704 = vrot.lane.b32.xlu2 %v4703_v21, %s5600_s26 }
 0x170   :  { %4699 = vrot.lane.b32.xlu1 %v4698_v22, %s5602_s28 }
 0x175   :  { %4709 = vrot.lane.b32.xlu0 %v4708_v30, %s5603_s10 }
 0x178   :  { %4714 = vrot.lane.b32.xlu1 %v4713_v31, %s5604_s11 }
 0x188   :  { %v4585_v36 = vpop.permute.xlu2 %4584 }
 0x189   :  { %v4587_v46 = vunpack.i.h.bf16 %v4585_v36  ;;  %v4586_v47 = vunpack.i.l.bf16 %v4585_v36 }
 0x191   :  { %v4600_v37 = vpop.permute.xlu2 %4599 }
 0x192   :  { %v4602_v60 = vunpack.i.h.bf16 %v4600_v37  ;;  %v4601_v61 = vunpack.i.l.bf16 %v4600_v37 }
 0x199   :  { %v4615_v48 = vpop.permute.xlu2 %4614 }
 0x19a   :  { %v4617_v18 = vunpack.i.h.bf16 %v4615_v48  ;;  %v4616_v19 = vunpack.i.l.bf16 %v4615_v48 }
 0x19c   :  { %v668_v28 = vsel %vm36_vm0, %v524_v25, %v4617_v18  ;;  %v667_v30 = vsel %vm36_vm0, %v523_v24, %v4616_v19 }
 0x19f   :  { %v4590_v38 = vpop.permute.xlu0 %4589 }
 0x1a0   :  { %v4592_v53 = vunpack.i.h.bf16 %v4590_v38  ;;  %v4591_v54 = vunpack.i.l.bf16 %v4590_v38 }
 0x1a1   :  { %v4580_v39 = vpop.permute.xlu1 %4579  ;;  %v4630_v7 = vpop.permute.xlu2 %4629 }
 0x1a2   :  { %v4582_v40 = vunpack.i.h.bf16 %v4580_v39  ;;  %v4581_v41 = vunpack.i.l.bf16 %v4580_v39  ;;  %v4632_v38 = vunpack.i.h.bf16 %v4630_v7  ;;  %v4631_v39 = vunpack.i.l.bf16 %v4630_v7 }
 0x1a4   :  { %v665_v44 = vsel %vm36_vm0, %v521_v42, %v4581_v41  ;;  %v666_v45 = vsel %vm36_vm0, %v522_v43, %v4582_v40 }
 0x1a5   :  { %v669_v49 = vsel %vm201_vm1, %v665_v44, %v4586_v47  ;;  %v670_v50 = vsel %vm201_vm1, %v666_v45, %v4587_v46 }
 0x1a6   :  { %v673_v57 = vsel %vm206_vm2, %v669_v49, %v4591_v54  ;;  %v674_v58 = vsel %vm206_vm2, %v670_v50, %v4592_v53 }
 0x1a8   :  { %v4605_v51 = vpop.permute.xlu0 %4604 }
 0x1a9   :  { %v4607_v0 = vunpack.i.h.bf16 %v4605_v51  ;;  %v4606_v3 = vunpack.i.l.bf16 %v4605_v51  ;;  %v4645_v31 = vpop.permute.xlu2 %4644 }
 0x1aa   :  { %v4595_v52 = vpop.permute.xlu1 %4594  ;;  %v4647_v47 = vunpack.i.h.bf16 %v4645_v31  ;;  %v4646_v48 = vunpack.i.l.bf16 %v4645_v31 }
 0x1ab   :  { %v4597_v55 = vunpack.i.h.bf16 %v4595_v52  ;;  %v4596_v56 = vunpack.i.l.bf16 %v4595_v52 }
 0x1ad   :  { %v677_v29 = vsel %vm211_vm3, %v673_v57, %v4596_v56  ;;  %v678_v59 = vsel %vm211_vm3, %v674_v58, %v4597_v55 }
 0x1ae   :  { %v681_v62 = vsel %vm216_vm4, %v677_v29, %v4601_v61  ;;  %v682_v63 = vsel %vm216_vm4, %v678_v59, %v4602_v60 }
 0x1af   :  { %v685_v11 = vsel %vm221_vm5, %v681_v62, %v4606_v3  ;;  %v686_v14 = vsel %vm221_vm5, %v682_v63, %v4607_v0  ;;  %v697_v62 = vld [vmem:[#allocation2 + $0x35] sm:$0xff]  ;;  %v698_v63 = vld [vmem:[#allocation2 + $0x3d] sm:$0xff] }
 0x1b0   :  { %v4620_v10 = vpop.permute.xlu0 %4619 }
 0x1b1   :  { %v4622_v20 = vunpack.i.h.bf16 %v4620_v10  ;;  %v4621_v21 = vunpack.i.l.bf16 %v4620_v10  ;;  %v4660_v55 = vpop.permute.xlu2 %4659 }
 0x1b2   :  { %v4610_v6 = vpop.permute.xlu1 %4609  ;;  %v4661_v10 = vunpack.i.l.bf16 %v4660_v55 }
 0x1b3   :  { %v4612_v8 = vunpack.i.h.bf16 %v4610_v6  ;;  %v4611_v9 = vunpack.i.l.bf16 %v4610_v6  ;;  %v671_v32 = vsel %vm201_vm1, %v667_v30, %v4621_v21  ;;  %v672_v34 = vsel %vm201_vm1, %v668_v28, %v4622_v20 }
 0x1b5   :  { %v689_v15 = vsel %vm226_vm6, %v685_v11, %v4611_v9  ;;  %v690_v16 = vsel %vm226_vm6, %v686_v14, %v4612_v8  ;;  %v4662_v9 = vunpack.i.h.bf16 %v4660_v55 }
 0x1b6   :  { %v869_v17 = vpack.c.bf16 %v690_v16, %v689_v15 }
 0x1b8   :  { %951 = vmatmul.bf16.vlgmr.msrb.gmra.mxu0 %v869_v17  ;;  %v4635_v35 = vpop.permute.xlu0 %4634 }
 0x1b9   :  { %v4637_v42 = vunpack.i.h.bf16 %v4635_v35  ;;  %v4636_v43 = vunpack.i.l.bf16 %v4635_v35  ;;  %v4675_v11 = vpop.permute.xlu2 %4674 }
 0x1ba   :  { %v4625_v22 = vpop.permute.xlu1 %4624 }
 0x1bb   :  { %v4627_v26 = vunpack.i.h.bf16 %v4625_v22  ;;  %v4626_v27 = vunpack.i.l.bf16 %v4625_v22 }
 0x1bd   :  { %v676_v36 = vsel %vm206_vm2, %v672_v34, %v4627_v26  ;;  %v675_v37 = vsel %vm206_vm2, %v671_v32, %v4626_v27  ;;  %v4677_v26 = vunpack.i.h.bf16 %v4675_v11  ;;  %v4676_v27 = vunpack.i.l.bf16 %v4675_v11 }
 0x1be   :  { %v679_v40 = vsel %vm211_vm3, %v675_v37, %v4631_v39  ;;  %v680_v41 = vsel %vm211_vm3, %v676_v36, %v4632_v38 }
 0x1bf   :  { %v683_v49 = vsel %vm216_vm4, %v679_v40, %v4636_v43  ;;  %v684_v50 = vsel %vm216_vm4, %v680_v41, %v4637_v42  ;;  %v699_v42 = vld [vmem:[#allocation2 + $0x45] sm:$0xff]  ;;  %v700_v43 = vld [vmem:[#allocation2 + $0x4d] sm:$0xff] }
 0x1c1   :  { %v4650_v57 = vpop.permute.xlu0 %4649  ;;  %v4690_v36 = vpop.permute.xlu2 %4689 }
 0x1c2   :  { %v4640_v44 = vpop.permute.xlu1 %4639  ;;  %v4652_v29 = vunpack.i.h.bf16 %v4650_v57  ;;  %v4651_v59 = vunpack.i.l.bf16 %v4650_v57 }
 0x1c3   :  { %v4642_v45 = vunpack.i.h.bf16 %v4640_v44  ;;  %v4641_v46 = vunpack.i.l.bf16 %v4640_v44 }
 0x1c4   :  { %v842_v0 = vsel %vm36_vm0, %v698_v63, %v4652_v29  ;;  %v841_v3 = vsel %vm36_vm0, %v697_v62, %v4651_v59 }
 0x1c5   :  { %v687_v51 = vsel %vm221_vm5, %v683_v49, %v4641_v46  ;;  %v688_v52 = vsel %vm221_vm5, %v684_v50, %v4642_v45 }
 0x1c6   :  { %v691_v53 = vsel %vm226_vm6, %v687_v51, %v4646_v48  ;;  %v692_v54 = vsel %vm226_vm6, %v688_v52, %v4647_v47  ;;  %v4692_v47 = vunpack.i.h.bf16 %v4690_v36  ;;  %v4691_v48 = vunpack.i.l.bf16 %v4690_v36 }
 0x1c7   :  { %v870_v56 = vpack.c.bf16 %v692_v54, %v691_v53 }
 0x1c9   :  { %956 = vmatmul.bf16.gmra.mxu0 %v870_v56 }
 0x1ca   :  { %v4655_v58 = vpop.permute.xlu1 %4654 }
 0x1cb   :  { %v4657_v60 = vunpack.i.h.bf16 %v4655_v58  ;;  %v4656_v61 = vunpack.i.l.bf16 %v4655_v58  ;;  %v4705_v58 = vpop.permute.xlu2 %4704 }
 0x1cd   :  { %v846_v6 = vsel %vm201_vm1, %v842_v0, %v4657_v60  ;;  %v845_v7 = vsel %vm201_vm1, %v841_v3, %v4656_v61  ;;  %v4707_v60 = vunpack.i.h.bf16 %v4705_v58  ;;  %v4706_v61 = vunpack.i.l.bf16 %v4705_v58 }
 0x1ce   :  { %v849_v17 = vsel %vm206_vm2, %v845_v7, %v4661_v10  ;;  %v850_v18 = vsel %vm206_vm2, %v846_v6, %v4662_v9 }
 0x1cf   :  { %v4665_v8 = vpop.permute.xlu0 %4664 }
 0x1d0   :  { %v4667_v14 = vunpack.i.h.bf16 %v4665_v8  ;;  %v4666_v15 = vunpack.i.l.bf16 %v4665_v8 }
 0x1d2   :  { %v4670_v16 = vpop.permute.xlu1 %4669  ;;  %v853_v21 = vsel %vm211_vm3, %v849_v17, %v4666_v15  ;;  %v854_v22 = vsel %vm211_vm3, %v850_v18, %v4667_v14  ;;  %v5960_v17 = vld [vmem:[%s6974_s3 + $0x1] ss:$0 sm:$0xff] }
 0x1d3   :  { %v4672_v19 = vunpack.i.h.bf16 %v4670_v16  ;;  %v4671_v20 = vunpack.i.l.bf16 %v4670_v16 }
 0x1d5   :  { %v857_v24 = vsel %vm216_vm4, %v853_v21, %v4671_v20  ;;  %v858_v25 = vsel %vm216_vm4, %v854_v22, %v4672_v19 }
 0x1d6   :  { %v861_v34 = vsel %vm221_vm5, %v857_v24, %v4676_v27  ;;  %v862_v35 = vsel %vm221_vm5, %v858_v25, %v4677_v26 }
 0x1d7   :  { %v4680_v28 = vpop.permute.xlu0 %4679 }
 0x1d8   :  { %v4682_v30 = vunpack.i.h.bf16 %v4680_v28  ;;  %v4681_v31 = vunpack.i.l.bf16 %v4680_v28 }
 0x1da   :  { %v4685_v32 = vpop.permute.xlu1 %4684  ;;  %v865_v37 = vsel %vm226_vm6, %v861_v34, %v4681_v31  ;;  %v866_v38 = vsel %vm226_vm6, %v862_v35, %v4682_v30 }
 0x1db   :  { %v4687_v39 = vunpack.i.h.bf16 %v4685_v32  ;;  %v4686_v40 = vunpack.i.l.bf16 %v4685_v32  ;;  %v871_v41 = vpack.c.bf16 %v866_v38, %v865_v37 }
 0x1dd   :  { %961 = vmatmul.bf16.vlgmr.msra.gmra.mxu1 %v871_v41  ;;  %v844_v44 = vsel %vm36_vm0, %v700_v43, %v4687_v39  ;;  %v843_v45 = vsel %vm36_vm0, %v699_v42, %v4686_v40 }
 0x1de   :  { %v847_v52 = vsel %vm201_vm1, %v843_v45, %v4691_v48  ;;  %v848_v53 = vsel %vm201_vm1, %v844_v44, %v4692_v47 }
 0x1df   :  { %v4695_v46 = vpop.permute.xlu0 %4694 }
 0x1e0   :  { %v4697_v49 = vunpack.i.h.bf16 %v4695_v46  ;;  %v4696_v50 = vunpack.i.l.bf16 %v4695_v46 }
 0x1e2   :  { %v4700_v51 = vpop.permute.xlu1 %4699  ;;  %v851_v56 = vsel %vm206_vm2, %v847_v52, %v4696_v50  ;;  %v852_v57 = vsel %vm206_vm2, %v848_v53, %v4697_v49 }
 0x1e3   :  { %v4702_v54 = vunpack.i.h.bf16 %v4700_v51  ;;  %v4701_v55 = vunpack.i.l.bf16 %v4700_v51 }
 0x1e5   :  { %v855_v29 = vsel %vm211_vm3, %v851_v56, %v4701_v55  ;;  %v856_v59 = vsel %vm211_vm3, %v852_v57, %v4702_v54 }
 0x1e6   :  { %v859_v6 = vsel %vm216_vm4, %v855_v29, %v4706_v61  ;;  %v860_v7 = vsel %vm216_vm4, %v856_v59, %v4707_v60 }
 0x1e7   :  { %v4710_v62 = vpop.permute.xlu0 %4709 }
 0x1e8   :  { %v4712_v63 = vunpack.i.h.bf16 %v4710_v62  ;;  %v4711_v0 = vunpack.i.l.bf16 %v4710_v62 }
 0x1ea   :  { %v4715_v3 = vpop.permute.xlu1 %4714  ;;  %v863_v10 = vsel %vm221_vm5, %v859_v6, %v4711_v0  ;;  %v864_v11 = vsel %vm221_vm5, %v860_v7, %v4712_v63 }
 0x1eb   :  { %v4717_v8 = vunpack.i.h.bf16 %v4715_v3  ;;  %v4716_v9 = vunpack.i.l.bf16 %v4715_v3 }
 0x1ed   :  { %v867_v14 = vsel %vm226_vm6, %v863_v10, %v4716_v9  ;;  %v868_v15 = vsel %vm226_vm6, %v864_v11, %v4717_v8 }
 0x1ee   :  { %v872_v16 = vpack.c.bf16 %v868_v15, %v867_v14 }
 0x1f0   :  { %966 = vmatmul.bf16.gmra.mxu1 %v872_v16 }
 0x235   :  { %v952_v18 = vpop.f32.mrf.mxu0 }
 0x236   :  { %v953_v19 = vadd.f32 %v5960_v17, %v952_v18 }
 0x238   :  { %v972_v20 = vmax.f32 %v953_v19, 0.0 }
 0x23a   :  { %980 = vst.msk [vmem:[#allocation2 + $0x8] sm:$0xff] %vm36_vm0, %v972_v20 }
 0x23d   :  { %v954_v21 = vpop.f32.mrf.mxu0 }
 0x23e   :  { %v955_v22 = vadd.f32 %v5960_v17, %v954_v21 }
 0x240   :  { %v973_v24 = vmax.f32 %v955_v22, 0.0 }
 0x241   :  { %v996_v27 = vld [vmem:[#allocation2 + $0x8] sm:$0xff] }
 0x242   :  { %981 = vst.msk [vmem:[#allocation2 + $0x10] sm:$0xff] %vm36_vm0, %v973_v24  ;;  %v992_v28 = vld [vmem:[#allocation2 + $0x7] sm:$0xff] }
 0x243   :  { %v988_v30 = vld [vmem:[#allocation2 + $0x6] sm:$0xff] }
 0x244   :  { %v5967_v36 = vld [vmem:[#allocation2 + $0x5] sm:$0xff] }
 0x246   :  { %v957_v25 = vpop.f32.mrf.mxu0 }
 0x247   :  { %v958_v26 = vadd.f32 %v5960_v17, %v957_v25 }
 0x249   :  { %v974_v31 = vmax.f32 %v958_v26, 0.0  ;;  %v997_v32 = vld [vmem:[#allocation2 + $0x10] sm:$0xff] }
 0x24a   :  { %v993_v34 = vld [vmem:[#allocation2 + $0xf] sm:$0xff]  ;;  %v4728_v37 = vpack.i.bf16 %v997_v32, %v996_v27 }
 0x24b   :  { %v989_v35 = vld [vmem:[#allocation2 + $0xe] sm:$0xff]  ;;  %v4723_v38 = vpack.i.bf16 %v993_v34, %v992_v28  ;;  %982 = vst.msk [vmem:[#allocation2 + $0x18] sm:$0xff] %vm36_vm0, %v974_v31 }
 0x24c   :  { %v4718_v39 = vpack.i.bf16 %v989_v35, %v988_v30  ;;  %v1008_v40 = vld [vmem:[#allocation2 + $0xb] sm:$0xff]  ;;  %4729 = vrot.lane.b32.xlu1 %v4728_v37, %s5599_s23 }
 0x24d   :  { %v1004_v41 = vld [vmem:[#allocation2 + $0xa] sm:$0xff]  ;;  %4724 = vrot.lane.b32.xlu0 %v4723_v38, %s5601_s27 }
 0x24e   :  { %v1000_v42 = vld [vmem:[#allocation2 + $0x9] sm:$0xff]  ;;  %4719 = vrot.lane.b32.xlu2 %v4718_v39, %s5598_s22  ;;  %v959_v45 = vpop.f32.mrf.mxu0 }
 0x24f   :  { %v1012_v43 = vld [vmem:[#allocation2 + $0xc] sm:$0xff]  ;;  %v960_v46 = vadd.f32 %v5960_v17, %v959_v45 }
 0x250   :  { %v5970_v44 = vld [vmem:[#allocation2 + $0xd] sm:$0xff] }
 0x251   :  { %1340 = vst.msk [vmem:[#allocation2 + $0x8] sm:$0xff] %vm36_vm0, %v5663_v1  ;;  %v975_v47 = vmax.f32 %v960_v46, 0.0 }
 0x252   :  { %v1009_v48 = vld [vmem:[#allocation2 + $0x13] sm:$0xff] }
 0x253   :  { %v1005_v49 = vld [vmem:[#allocation2 + $0x12] sm:$0xff]  ;;  %983 = vst.msk [vmem:[#allocation2 + $0x20] sm:$0xff] %vm36_vm0, %v975_v47  ;;  %v4743_v51 = vpack.i.bf16 %v1009_v48, %v1008_v40 }
 0x254   :  { %v5978_v50 = vld [vmem:[#allocation2 + $0x15] sm:$0xff]  ;;  %v4738_v52 = vpack.i.bf16 %v1005_v49, %v1004_v41 }
 0x255   :  { %v1001_v53 = vld [vmem:[#allocation2 + $0x11] sm:$0xff]  ;;  %4744 = vrot.lane.b32.xlu1 %v4743_v51, %s5603_s10 }
 0x256   :  { %v4733_v54 = vpack.i.bf16 %v1001_v53, %v1000_v42  ;;  %v994_v55 = vld [vmem:[#allocation2 + $0x17] sm:$0xff]  ;;  %4739 = vrot.lane.b32.xlu0 %v4738_v52, %s5600_s26 }
 0x257   :  { %v990_v56 = vld [vmem:[#allocation2 + $0x16] sm:$0xff] }
 0x258   :  { %v1013_v57 = vld [vmem:[#allocation2 + $0x14] sm:$0xff]  ;;  %4734 = vrot.lane.b32.xlu2 %v4733_v54, %s5602_s28  ;;  %v1352_v24 = vld [vmem:[#allocation2 + $0x7] sm:$0xff] }
 0x259   :  { %1341 = vst.msk [vmem:[#allocation2 + $0x10] sm:$0xff] %vm36_vm0, %v5668_v2  ;;  %v998_v62 = vld [vmem:[#allocation2 + $0x18] sm:$0xff]  ;;  %v4748_v0 = vpack.i.bf16 %v1013_v57, %v1012_v43  ;;  %v1348_v30 = vld [vmem:[#allocation2 + $0x6] sm:$0xff] }
 0x25a   :  { %v995_v1 = vld [vmem:[#allocation2 + $0x1f] sm:$0xff]  ;;  %v962_v59 = vpop.f32.mrf.mxu1  ;;  %v1356_v32 = vld [vmem:[#allocation2 + $0x8] sm:$0xff] }
 0x25b   :  { %v991_v58 = vld [vmem:[#allocation2 + $0x1e] sm:$0xff]  ;;  %v4758_v60 = vpack.i.bf16 %v995_v1, %v994_v55  ;;  %v963_v63 = vadd.f32 %v5960_v17, %v962_v59 }
 0x25c   :  { %v5986_v29 = vld [vmem:[#allocation2 + $0x1d] sm:$0xff]  ;;  %v4753_v61 = vpack.i.bf16 %v991_v58, %v990_v56 }
 0x25d   :  { %v1006_v3 = vld [vmem:[#allocation2 + $0x1a] sm:$0xff]  ;;  %v1007_v6 = vld [vmem:[#allocation2 + $0x22] sm:$0xff]  ;;  %4759 = vrot.lane.b32.xlu1 %v4758_v60, %s5601_s27  ;;  %v976_v10 = vmax.f32 %v963_v63, 0.0 }
 0x25e   :  { %v1002_v7 = vld [vmem:[#allocation2 + $0x19] sm:$0xff]  ;;  %4754 = vrot.lane.b32.xlu0 %v4753_v61, %s5598_s22  ;;  %v1003_v2 = vld [vmem:[#allocation2 + $0x21] sm:$0xff]  ;;  %v4773_v18 = vpack.i.bf16 %v1007_v6, %v1006_v3 }
 0x25f   :  { %v1014_v8 = vld [vmem:[#allocation2 + $0x1c] sm:$0xff]  ;;  %v1015_v14 = vld [vmem:[#allocation2 + $0x24] sm:$0xff]  ;;  %1156 = vst.msk [vmem:[#allocation2 + $0x38] sm:$0xff] %vm36_vm0, %v976_v10  ;;  %v4768_v19 = vpack.i.bf16 %v1003_v2, %v1002_v7 }
 0x260   :  { %v1010_v9 = vld [vmem:[#allocation2 + $0x1b] sm:$0xff]  ;;  %4749 = vrot.lane.b32.xlu2 %v4748_v0, %s5604_s11  ;;  %v1011_v15 = vld [vmem:[#allocation2 + $0x23] sm:$0xff]  ;;  %v4783_v25 = vpack.i.bf16 %v1015_v14, %v1014_v8  ;;  %v1349_v31 = vld [vmem:[#allocation2 + $0xe] sm:$0xff] }
 0x261   :  { %v999_v11 = vld [vmem:[#allocation2 + $0x20] sm:$0xff]  ;;  %1342 = vst.msk [vmem:[#allocation2 + $0x18] sm:$0xff] %vm36_vm0, %v5679_v4  ;;  %v1353_v4 = vld [vmem:[#allocation2 + $0xf] sm:$0xff]  ;;  %v4778_v26 = vpack.i.bf16 %v1011_v15, %v1010_v9  ;;  %v4788_v42 = vpack.i.bf16 %v1349_v31, %v1348_v30 }
 0x262   :  { %1343 = vst.msk [vmem:[#allocation2 + $0x20] sm:$0xff] %vm36_vm0, %v5685_v5  ;;  %v964_v16 = vpop.f32.mrf.mxu1  ;;  %v4763_v21 = vpack.i.bf16 %v999_v11, %v998_v62  ;;  %v4793_v5 = vpack.i.bf16 %v1353_v4, %v1352_v24  ;;  %v1357_v34 = vld [vmem:[#allocation2 + $0x10] sm:$0xff]  ;;  %v4378_v4 = vld [vmem:[%s6973_s2 + $0x38] sm:$0xff] }
 0x263   :  { %v965_v20 = vadd.f32 %v5960_v17, %v964_v16  ;;  %v4798_v47 = vpack.i.bf16 %v1357_v34, %v1356_v32  ;;  %1812 = vmatpush.bf16.msra.mxu2 %v4378_v4  ;;  %v4377_v32 = vld [vmem:[%s6973_s2 + $0x30] sm:$0xff]  ;;  %v4376_v34 = vld [vmem:[%s6973_s2 + $0x28] sm:$0xff] }
 0x265   :  { %4774 = vrot.lane.b32.xlu1 %v4773_v18, %s5600_s26  ;;  %v977_v22 = vmax.f32 %v965_v20, 0.0 }
 0x266   :  { %4769 = vrot.lane.b32.xlu0 %v4768_v19, %s5602_s28  ;;  %v6006_v35 = vld [vmem:[#allocation2 + $0x35] sm:$0xff] }
 0x267   :  { %1157 = vst.msk [vmem:[#allocation2 + $0x40] sm:$0xff] %vm36_vm0, %v977_v22  ;;  %v1164_v38 = vld [vmem:[#allocation2 + $0x36] sm:$0xff]  ;;  %1813 = vmatpush.bf16.msra.mxu2 %v4377_v32 }
 0x268   :  { %4764 = vrot.lane.b32.xlu2 %v4763_v21, %s5599_s23  ;;  %v1168_v40 = vld [vmem:[#allocation2 + $0x37] sm:$0xff] }
 0x269   :  { %v1172_v41 = vld [vmem:[#allocation2 + $0x38] sm:$0xff] }
 0x26b   :  { %1814 = vmatpush.bf16.msra.mxu2 %v4376_v34 }
 0x26d   :  { %v967_v27 = vpop.f32.mrf.mxu1  ;;  %4794 = vrot.lane.b32.xlu1 %v4793_v5, %s5601_s27 }
 0x26e   :  { %4784 = vrot.lane.b32.xlu0 %v4783_v25, %s5604_s11  ;;  %v968_v28 = vadd.f32 %v5960_v17, %v967_v27  ;;  %v1165_v39 = vld [vmem:[#allocation2 + $0x3e] sm:$0xff]  ;;  %v1364_v27 = vld [vmem:[#allocation2 + $0xa] sm:$0xff] }
 0x26f   :  { %v1169_v43 = vld [vmem:[#allocation2 + $0x3f] sm:$0xff]  ;;  %v4803_v52 = vpack.i.bf16 %v1165_v39, %v1164_v38  ;;  %v1372_v38 = vld [vmem:[#allocation2 + $0xc] sm:$0xff]  ;;  %v1373_v39 = vld [vmem:[#allocation2 + $0x14] sm:$0xff] }
 0x270   :  { %4779 = vrot.lane.b32.xlu2 %v4778_v26, %s5603_s10  ;;  %v978_v37 = vmax.f32 %v968_v28, 0.0  ;;  %v1176_v45 = vld [vmem:[#allocation2 + $0x39] sm:$0xff]  ;;  %v4808_v0 = vpack.i.bf16 %v1169_v43, %v1168_v40  ;;  %v1361_v26 = vld [vmem:[#allocation2 + $0x11] sm:$0xff] }
 0x271   :  { %v1180_v46 = vld [vmem:[#allocation2 + $0x3a] sm:$0xff]  ;;  %v1365_v28 = vld [vmem:[#allocation2 + $0x12] sm:$0xff] }
 0x272   :  { %1158 = vst.msk [vmem:[#allocation2 + $0x48] sm:$0xff] %vm36_vm0, %v978_v37  ;;  %v1188_v48 = vld [vmem:[#allocation2 + $0x3c] sm:$0xff]  ;;  %v4873_v31 = vpack.i.bf16 %v1365_v28, %v1364_v27  ;;  %v1369_v43 = vld [vmem:[#allocation2 + $0x13] sm:$0xff] }
 0x273   :  { %v1184_v49 = vld [vmem:[#allocation2 + $0x3b] sm:$0xff] }
 0x274   :  { %v6009_v51 = vld [vmem:[#allocation2 + $0x3d] sm:$0xff] }
 0x275   :  { %1516 = vst.msk [vmem:[#allocation2 + $0x38] sm:$0xff] %vm36_vm0, %v5695_v12  ;;  %v969_v53 = vpop.f32.mrf.mxu1  ;;  %4804 = vrot.lane.b32.xlu1 %v4803_v52, %s5598_s22  ;;  %v1173_v56 = vld [vmem:[#allocation2 + $0x40] sm:$0xff]  ;;  %v1350_v40 = vld [vmem:[#allocation2 + $0x16] sm:$0xff] }
 0x276   :  { %4789 = vrot.lane.b32.xlu0 %v4788_v42, %s5598_s22  ;;  %v970_v54 = vadd.f32 %v5960_v17, %v969_v53  ;;  %v4813_v12 = vpack.i.bf16 %v1173_v56, %v1172_v41  ;;  %v1351_v41 = vld [vmem:[#allocation2 + $0x1e] sm:$0xff]  ;;  %v1368_v42 = vld [vmem:[#allocation2 + $0xb] sm:$0xff] }
 0x277   :  { %v1358_v52 = vld [vmem:[#allocation2 + $0x18] sm:$0xff]  ;;  %v1359_v53 = vld [vmem:[#allocation2 + $0x20] sm:$0xff] }
 0x278   :  { %4799 = vrot.lane.b32.xlu2 %v4798_v47, %s5599_s23  ;;  %v979_v55 = vmax.f32 %v970_v54, 0.0  ;;  %v4375_v47 = vld [vmem:[%s6973_s2 + $0x20] sm:$0xff] }
 0x279   :  { %v1177_v57 = vld [vmem:[#allocation2 + $0x41] sm:$0xff]  ;;  %1815 = vmatpush.bf16.msra.mxu2 %v4375_v47  ;;  %v1362_v54 = vld [vmem:[#allocation2 + $0x19] sm:$0xff] }
 0x27a   :  { %v6017_v1 = vld [vmem:[#allocation2 + $0x45] sm:$0xff]  ;;  %1159 = vst.msk [vmem:[#allocation2 + $0x50] sm:$0xff] %vm36_vm0, %v979_v55  ;;  %v4818_v58 = vpack.i.bf16 %v1177_v57, %v1176_v45  ;;  %v4888_v45 = vpack.i.bf16 %v1373_v39, %v1372_v38  ;;  %v1354_v57 = vld [vmem:[#allocation2 + $0x17] sm:$0xff] }
 0x27b   :  { %v1181_v59 = vld [vmem:[#allocation2 + $0x42] sm:$0xff] }
 0x27c   :  { %v1189_v60 = vld [vmem:[#allocation2 + $0x44] sm:$0xff]  ;;  %v4823_v14 = vpack.i.bf16 %v1181_v59, %v1180_v46  ;;  %v4893_v46 = vpack.i.bf16 %v1351_v41, %v1350_v40  ;;  %v4903_v59 = vpack.i.bf16 %v1359_v53, %v1358_v52 }
 0x27d   :  { %v1185_v61 = vld [vmem:[#allocation2 + $0x43] sm:$0xff]  ;;  %4819 = vrot.lane.b32.xlu1 %v4818_v58, %s5602_s28  ;;  %v4833_v7 = vpack.i.bf16 %v1189_v60, %v1188_v48  ;;  %v4883_v48 = vpack.i.bf16 %v1369_v43, %v1368_v42 }
 0x27e   :  { %v1166_v62 = vld [vmem:[#allocation2 + $0x46] sm:$0xff]  ;;  %4814 = vrot.lane.b32.xlu0 %v4813_v12, %s5599_s23  ;;  %v4828_v2 = vpack.i.bf16 %v1185_v61, %v1184_v49  ;;  %v4374_v49 = vld [vmem:[%s6973_s2 + $0x18] sm:$0xff]  ;;  %v4373_v12 = vld [vmem:[%s6973_s2 + $0x10] sm:$0xff] }
 0x27f   :  { %v1170_v63 = vld [vmem:[#allocation2 + $0x47] sm:$0xff]  ;;  %v1355_v58 = vld [vmem:[#allocation2 + $0x1f] sm:$0xff]  ;;  %1816 = vmatpush.bf16.msra.mxu2 %v4374_v49 }
 0x280   :  { %1517 = vst.msk [vmem:[#allocation2 + $0x40] sm:$0xff] %vm36_vm0, %v5700_v13  ;;  %4809 = vrot.lane.b32.xlu2 %v4808_v0, %s5601_s27  ;;  %v1174_v6 = vld [vmem:[#allocation2 + $0x48] sm:$0xff]  ;;  %v4898_v61 = vpack.i.bf16 %v1355_v58, %v1354_v57 }
 0x281   :  { %v6025_v17 = vld [vmem:[#allocation2 + $0x4d] sm:$0xff]  ;;  %v1363_v55 = vld [vmem:[#allocation2 + $0x21] sm:$0xff] }
 0x282   :  { %v1167_v3 = vld [vmem:[#allocation2 + $0x4e] sm:$0xff]  ;;  %v4908_v60 = vpack.i.bf16 %v1363_v55, %v1362_v54  ;;  %v1371_v0 = vld [vmem:[#allocation2 + $0x23] sm:$0xff] }
 0x283   :  { %v1175_v8 = vld [vmem:[#allocation2 + $0x50] sm:$0xff]  ;;  %v4838_v24 = vpack.i.bf16 %v1167_v3, %v1166_v62  ;;  %1817 = vmatpush.bf16.msra.mxu2 %v4373_v12  ;;  %v4372_v62 = vld [vmem:[%s6973_s2 + $0x8] sm:$0xff]  ;;  %v1374_v3 = vld [vmem:[#allocation2 + $0x1c] sm:$0xff] }
 0x284   :  { %v1171_v9 = vld [vmem:[#allocation2 + $0x4f] sm:$0xff]  ;;  %v4848_v21 = vpack.i.bf16 %v1175_v8, %v1174_v6  ;;  %v1375_v6 = vld [vmem:[#allocation2 + $0x24] sm:$0xff] }
 0x285   :  { %v1178_v10 = vld [vmem:[#allocation2 + $0x49] sm:$0xff]  ;;  %v1179_v11 = vld [vmem:[#allocation2 + $0x51] sm:$0xff]  ;;  %4834 = vrot.lane.b32.xlu1 %v4833_v7, %s5604_s11  ;;  %v4843_v22 = vpack.i.bf16 %v1171_v9, %v1170_v63  ;;  %v1370_v63 = vld [vmem:[#allocation2 + $0x1b] sm:$0xff] }
 0x286   :  { %v1186_v15 = vld [vmem:[#allocation2 + $0x4b] sm:$0xff]  ;;  %4829 = vrot.lane.b32.xlu0 %v4828_v2, %s5603_s10  ;;  %v1187_v18 = vld [vmem:[#allocation2 + $0x53] sm:$0xff]  ;;  %v4853_v25 = vpack.i.bf16 %v1179_v11, %v1178_v10  ;;  %v1367_v2 = vld [vmem:[#allocation2 + $0x22] sm:$0xff]  ;;  %v4918_v9 = vpack.i.bf16 %v1371_v0, %v1370_v63  ;;  %v4923_v10 = vpack.i.bf16 %v1375_v6, %v1374_v3 }
 0x287   :  { %v1182_v16 = vld [vmem:[#allocation2 + $0x4a] sm:$0xff]  ;;  %v1183_v19 = vld [vmem:[#allocation2 + $0x52] sm:$0xff]  ;;  %v4868_v5 = vpack.i.bf16 %v1187_v18, %v1186_v15  ;;  %v1366_v7 = vld [vmem:[#allocation2 + $0x1a] sm:$0xff]  ;;  %1818 = vmatpush.bf16.msra.mxu2 %v4372_v62 }
 0x288   :  { %v1190_v13 = vld [vmem:[#allocation2 + $0x4c] sm:$0xff]  ;;  %v1191_v20 = vld [vmem:[#allocation2 + $0x54] sm:$0xff]  ;;  %4824 = vrot.lane.b32.xlu2 %v4823_v14, %s5600_s26  ;;  %v4371_v11 = vld [vmem:[%s6973_s2] sm:$0xff]  ;;  %v4913_v14 = vpack.i.bf16 %v1367_v2, %v1366_v7 }
 0x289   :  { %1518 = vst.msk [vmem:[#allocation2 + $0x48] sm:$0xff] %vm36_vm0, %v5711_v23  ;;  %v4858_v23 = vpack.i.bf16 %v1183_v19, %v1182_v16  ;;  %v4878_v37 = vpack.i.bf16 %v1191_v20, %v1190_v13  ;;  %v1528_v15 = vld [vmem:[#allocation2 + $0x37] sm:$0xff]  ;;  %v1529_v16 = vld [vmem:[#allocation2 + $0x3f] sm:$0xff] }
 0x28a   :  { %1519 = vst.msk [vmem:[#allocation2 + $0x50] sm:$0xff] %vm36_vm0, %v5721_v33  ;;  %v1360_v33 = vld [vmem:[#allocation2 + $0x9] sm:$0xff]  ;;  %v1532_v13 = vld [vmem:[#allocation2 + $0x38] sm:$0xff]  ;;  %v1533_v18 = vld [vmem:[#allocation2 + $0x40] sm:$0xff] }
 0x28b   :  { %v4863_v30 = vpack.i.bf16 %v1361_v26, %v1360_v33  ;;  %1819 = vmatpush.bf16.msra.mxu2 %v4371_v11  ;;  %v1524_v19 = vld [vmem:[#allocation2 + $0x36] sm:$0xff]  ;;  %v1525_v20 = vld [vmem:[#allocation2 + $0x3e] sm:$0xff] }
 0x28c   :  { %v4928_v4 = vpack.i.bf16 %v1525_v20, %v1524_v19  ;;  %v1544_v28 = vld [vmem:[#allocation2 + $0x3b] sm:$0xff] }
 0x28d   :  { %4849 = vrot.lane.b32.xlu1 %v4848_v21, %s5599_s23  ;;  %v1536_v34 = vld [vmem:[#allocation2 + $0x39] sm:$0xff] }
 0x28e   :  { %4844 = vrot.lane.b32.xlu0 %v4843_v22, %s5601_s27  ;;  %v4933_v22 = vpack.i.bf16 %v1529_v16, %v1528_v15 }
 0x290   :  { %4839 = vrot.lane.b32.xlu2 %v4838_v24, %s5598_s22  ;;  %v4938_v24 = vpack.i.bf16 %v1533_v18, %v1532_v13  ;;  %v1541_v27 = vld [vmem:[#allocation2 + $0x42] sm:$0xff] }
 0x291   :  { %v1526_v49 = vld [vmem:[#allocation2 + $0x46] sm:$0xff]  ;;  %v1527_v52 = vld [vmem:[#allocation2 + $0x4e] sm:$0xff] }
 0x292   :  { %v1530_v54 = vld [vmem:[#allocation2 + $0x47] sm:$0xff]  ;;  %v1531_v55 = vld [vmem:[#allocation2 + $0x4f] sm:$0xff] }
 0x293   :  { %v1549_v12 = vld [vmem:[#allocation2 + $0x44] sm:$0xff] }
 0x295   :  { %4869 = vrot.lane.b32.xlu1 %v4868_v5, %s5603_s10 }
 0x296   :  { %4859 = vrot.lane.b32.xlu0 %v4858_v23, %s5600_s26  ;;  %v1540_v23 = vld [vmem:[#allocation2 + $0x3a] sm:$0xff] }
 0x297   :  { %v4948_v40 = vpack.i.bf16 %v1541_v27, %v1540_v23  ;;  %v1535_v27 = vld [vmem:[#allocation2 + $0x50] sm:$0xff] }
 0x298   :  { %4854 = vrot.lane.b32.xlu2 %v4853_v25, %s5602_s28 }
 0x29d   :  { %4874 = vrot.lane.b32.xlu1 %v4873_v31, %s5600_s26 }
 0x29e   :  { %4864 = vrot.lane.b32.xlu0 %v4863_v30, %s5602_s28  ;;  %v1545_v30 = vld [vmem:[#allocation2 + $0x43] sm:$0xff] }
 0x29f   :  { %v4953_v41 = vpack.i.bf16 %v1545_v30, %v1544_v28 }
 0x2a0   :  { %4879 = vrot.lane.b32.xlu2 %v4878_v37, %s5604_s11  ;;  %v1537_v37 = vld [vmem:[#allocation2 + $0x41] sm:$0xff] }
 0x2a5   :  { %4894 = vrot.lane.b32.xlu1 %v4893_v46, %s5598_s22  ;;  %v4943_v46 = vpack.i.bf16 %v1537_v37, %v1536_v34 }
 0x2a6   :  { %4889 = vrot.lane.b32.xlu0 %v4888_v45, %s5604_s11 }
 0x2a8   :  { %4884 = vrot.lane.b32.xlu2 %v4883_v48, %s5603_s10  ;;  %v4720_v56 = vpop.permute.xlu2 %4719 }
 0x2a9   :  { %v4721_v5 = vunpack.i.l.bf16 %v4720_v56  ;;  %v4722_v25 = vunpack.i.h.bf16 %v4720_v56 }
 0x2ab   :  { %v1128_v39 = vsel %vm36_vm0, %v5967_v36, %v4721_v5  ;;  %v1129_v42 = vsel %vm36_vm0, %v5970_v44, %v4722_v25 }
 0x2ad   :  { %4909 = vrot.lane.b32.xlu1 %v4908_v60, %s5602_s28  ;;  %v1548_v60 = vld [vmem:[#allocation2 + $0x3c] sm:$0xff] }
 0x2ae   :  { %4904 = vrot.lane.b32.xlu0 %v4903_v59, %s5599_s23  ;;  %v4963_v59 = vpack.i.bf16 %v1527_v52, %v1526_v49 }
 0x2b0   :  { %4899 = vrot.lane.b32.xlu2 %v4898_v61, %s5601_s27 }
 0x2b2   :  { %v6070_v8 = vpop.permute.xlu2 %4734 }
 0x2b3   :  { %v4737_v44 = vunpack.i.h.bf16 %v6070_v8  ;;  %v4736_v56 = vunpack.i.l.bf16 %v6070_v8 }
 0x2b5   :  { %4924 = vrot.lane.b32.xlu1 %v4923_v10, %s5604_s11 }
 0x2b6   :  { %4919 = vrot.lane.b32.xlu0 %v4918_v9, %s5603_s10  ;;  %v4968_v9 = vpack.i.bf16 %v1531_v55, %v1530_v54 }
 0x2b8   :  { %4914 = vrot.lane.b32.xlu2 %v4913_v14, %s5600_s26  ;;  %v4958_v14 = vpack.i.bf16 %v1549_v12, %v1548_v60 }
 0x2ba   :  { %v6078_v21 = vpop.permute.xlu2 %4749 }
 0x2bb   :  { %v4752_v6 = vunpack.i.h.bf16 %v6078_v21  ;;  %v4751_v8 = vunpack.i.l.bf16 %v6078_v21  ;;  %v1538_v21 = vld [vmem:[#allocation2 + $0x49] sm:$0xff] }
 0x2bd   :  { %4939 = vrot.lane.b32.xlu1 %v4938_v24, %s5599_s23  ;;  %v1542_v24 = vld [vmem:[#allocation2 + $0x4a] sm:$0xff] }
 0x2be   :  { %4934 = vrot.lane.b32.xlu0 %v4933_v22, %s5601_s27  ;;  %v4730_v33 = vpop.permute.xlu1 %4729  ;;  %v1539_v22 = vld [vmem:[#allocation2 + $0x51] sm:$0xff] }
 0x2bf   :  { %v4725_v26 = vpop.permute.xlu0 %4724  ;;  %v4732_v43 = vunpack.i.h.bf16 %v4730_v33  ;;  %v4731_v45 = vunpack.i.l.bf16 %v4730_v33  ;;  %v4978_v34 = vpack.i.bf16 %v1539_v22, %v1538_v21 }
 0x2c0   :  { %4929 = vrot.lane.b32.xlu2 %v4928_v4, %s5598_s22  ;;  %v4727_v31 = vunpack.i.h.bf16 %v4725_v26  ;;  %v4726_v32 = vunpack.i.l.bf16 %v4725_v26  ;;  %v1543_v4 = vld [vmem:[#allocation2 + $0x52] sm:$0xff]  ;;  %v1534_v26 = vld [vmem:[#allocation2 + $0x48] sm:$0xff] }
 0x2c1   :  { %v4983_v37 = vpack.i.bf16 %v1543_v4, %v1542_v24 }
 0x2c2   :  { %v6083_v38 = vpop.permute.xlu2 %4764  ;;  %v1132_v47 = vsel %vm201_vm1, %v1128_v39, %v4726_v32  ;;  %v1133_v48 = vsel %vm201_vm1, %v1129_v42, %v4727_v31  ;;  %v4973_v39 = vpack.i.bf16 %v1535_v27, %v1534_v26 }
 0x2c3   :  { %v1136_v36 = vsel %vm206_vm2, %v1132_v47, %v4731_v45  ;;  %v1137_v53 = vsel %vm206_vm2, %v1133_v48, %v4732_v43  ;;  %v1550_v45 = vld [vmem:[#allocation2 + $0x4c] sm:$0xff] }
 0x2c4   :  { %v1140_v7 = vsel %vm211_vm3, %v1136_v36, %v4736_v56  ;;  %v1141_v2 = vsel %vm211_vm3, %v1137_v53, %v4737_v44  ;;  %v1546_v47 = vld [vmem:[#allocation2 + $0x4b] sm:$0xff]  ;;  %v1547_v48 = vld [vmem:[#allocation2 + $0x53] sm:$0xff] }
 0x2c5   :  { %4954 = vrot.lane.b32.xlu1 %v4953_v41, %s5603_s10 }
 0x2c6   :  { %4949 = vrot.lane.b32.xlu0 %v4948_v40, %s5600_s26 }
 0x2c7   :  { %v4745_v57 = vpop.permute.xlu1 %4744 }
 0x2c8   :  { %4944 = vrot.lane.b32.xlu2 %v4943_v46, %s5602_s28  ;;  %v4740_v58 = vpop.permute.xlu0 %4739  ;;  %v4747_v61 = vunpack.i.h.bf16 %v4745_v57  ;;  %v4746_v62 = vunpack.i.l.bf16 %v4745_v57  ;;  %v1551_v46 = vld [vmem:[#allocation2 + $0x54] sm:$0xff]  ;;  %v4988_v57 = vpack.i.bf16 %v1547_v48, %v1546_v47 }
 0x2c9   :  { %v4742_v63 = vunpack.i.h.bf16 %v4740_v58  ;;  %v4741_v0 = vunpack.i.l.bf16 %v4740_v58  ;;  %v4993_v56 = vpack.i.bf16 %v1551_v46, %v1550_v45 }
 0x2ca   :  { %v6098_v3 = vpop.permute.xlu2 %4779 }
 0x2cb   :  { %v1144_v10 = vsel %vm216_vm4, %v1140_v7, %v4741_v0  ;;  %v1145_v11 = vsel %vm216_vm4, %v1141_v2, %v4742_v63  ;;  %v4782_v0 = vunpack.i.h.bf16 %v6098_v3 }
 0x2cc   :  { %v1148_v15 = vsel %vm221_vm5, %v1144_v10, %v4746_v62  ;;  %v1149_v16 = vsel %vm221_vm5, %v1145_v11, %v4747_v61 }
 0x2cd   :  { %v1152_v13 = vsel %vm226_vm6, %v1148_v15, %v4751_v8  ;;  %v1153_v18 = vsel %vm226_vm6, %v1149_v16, %v4752_v6  ;;  %4969 = vrot.lane.b32.xlu1 %v4968_v9, %s5601_s27  ;;  %v4781_v6 = vunpack.i.l.bf16 %v6098_v3 }
 0x2ce   :  { %4964 = vrot.lane.b32.xlu0 %v4963_v59, %s5598_s22  ;;  %v1332_v19 = vpack.c.bf16 %v1152_v13, %v1152_v13  ;;  %v1333_v20 = vpack.c.bf16 %v1153_v18, %v1153_v18 }
 0x2cf   :  { %v4760_v5 = vpop.permute.xlu1 %4759 }
 0x2d0   :  { %4959 = vrot.lane.b32.xlu2 %v4958_v14, %s5604_s11  ;;  %v4755_v23 = vpop.permute.xlu0 %4754  ;;  %v1708_v25 = vunpack.c.l.b16 %v1332_v19  ;;  %v1709_v33 = vunpack.c.l.b16 %v1333_v20  ;;  %v4762_v40 = vunpack.i.h.bf16 %v4760_v5  ;;  %v4761_v41 = vunpack.i.l.bf16 %v4760_v5 }
 0x2d1   :  { %v4757_v28 = vunpack.i.h.bf16 %v4755_v23  ;;  %v4756_v30 = vunpack.i.l.bf16 %v4755_v23 }
 0x2d2   :  { %v6113_v31 = vpop.permute.xlu2 %4799  ;;  %v1716_v32 = vpack.c.b16 %v1709_v33, %v1708_v25 }
 0x2d3   :  { %v1131_v42 = vsel %vm36_vm0, %v5986_v29, %v4757_v28  ;;  %v1130_v43 = vsel %vm36_vm0, %v5978_v50, %v4756_v30  ;;  %v4767_v29 = vunpack.i.h.bf16 %v6083_v38  ;;  %v4766_v50 = vunpack.i.l.bf16 %v6083_v38 }
 0x2d4   :  { %1820 = vmatmul.bf16.vlgmr.msra.gmra.mxu2 %v1716_v32  ;;  %v1135_v49 = vsel %vm201_vm1, %v1131_v42, %v4762_v40  ;;  %v1134_v52 = vsel %vm201_vm1, %v1130_v43, %v4761_v41 }
 0x2d5   :  { %4984 = vrot.lane.b32.xlu1 %v4983_v37, %s5600_s26  ;;  %v1138_v60 = vsel %vm206_vm2, %v1134_v52, %v4766_v50  ;;  %v1139_v12 = vsel %vm206_vm2, %v1135_v49, %v4767_v29 }
 0x2d6   :  { %4979 = vrot.lane.b32.xlu0 %v4978_v34, %s5602_s28 }
 0x2d7   :  { %v4775_v36 = vpop.permute.xlu1 %4774 }
 0x2d8   :  { %4974 = vrot.lane.b32.xlu2 %v4973_v39, %s5599_s23  ;;  %v4770_v53 = vpop.permute.xlu0 %4769  ;;  %v4777_v58 = vunpack.i.h.bf16 %v4775_v36  ;;  %v4776_v59 = vunpack.i.l.bf16 %v4775_v36 }
 0x2d9   :  { %v4772_v54 = vunpack.i.h.bf16 %v4770_v53  ;;  %v4771_v55 = vunpack.i.l.bf16 %v4770_v53 }
 0x2da   :  { %v4810_v44 = vpop.permute.xlu2 %4809 }
 0x2db   :  { %v1142_v61 = vsel %vm211_vm3, %v1138_v60, %v4771_v55  ;;  %v1143_v62 = vsel %vm211_vm3, %v1139_v12, %v4772_v54  ;;  %v4812_v27 = vunpack.i.h.bf16 %v4810_v44  ;;  %v4811_v28 = vunpack.i.l.bf16 %v4810_v44 }
 0x2dc   :  { %v1146_v63 = vsel %vm216_vm4, %v1142_v61, %v4776_v59  ;;  %v1147_v38 = vsel %vm216_vm4, %v1143_v62, %v4777_v58 }
 0x2dd   :  { %v1150_v11 = vsel %vm221_vm5, %v1146_v63, %v4781_v6  ;;  %v1151_v14 = vsel %vm221_vm5, %v1147_v38, %v4782_v0 }
 0x2de   :  { %4994 = vrot.lane.b32.xlu0 %v4993_v56, %s5604_s11 }
 0x2df   :  { %v6136_v2 = vpop.permute.xlu1 %4794 }
 0x2e0   :  { %4989 = vrot.lane.b32.xlu2 %v4988_v57, %s5603_s10  ;;  %v4785_v7 = vpop.permute.xlu0 %4784 }
 0x2e1   :  { %v4787_v9 = vunpack.i.h.bf16 %v4785_v7  ;;  %v4786_v8 = vunpack.i.l.bf16 %v4785_v7 }
 0x2e2   :  { %v4825_v10 = vpop.permute.xlu2 %4824 }
 0x2e3   :  { %v1154_v15 = vsel %vm226_vm6, %v1150_v11, %v4786_v8  ;;  %v1155_v16 = vsel %vm226_vm6, %v1151_v14, %v4787_v9  ;;  %v4827_v45 = vunpack.i.h.bf16 %v4825_v10  ;;  %v4826_v46 = vunpack.i.l.bf16 %v4825_v10 }
 0x2e4   :  { %v1334_v13 = vpack.c.bf16 %v1154_v15, %v1154_v15  ;;  %v1335_v18 = vpack.c.bf16 %v1155_v16, %v1155_v16 }
 0x2e6   :  { %v1710_v19 = vunpack.c.l.b16 %v1334_v13  ;;  %v1711_v20 = vunpack.c.l.b16 %v1335_v18 }
 0x2e7   :  { %v4805_v21 = vpop.permute.xlu1 %4804 }
 0x2e8   :  { %v6142_v3 = vpop.permute.xlu0 %4789  ;;  %v1717_v22 = vpack.c.b16 %v1711_v20, %v1710_v19  ;;  %v4807_v4 = vunpack.i.h.bf16 %v4805_v21  ;;  %v4806_v5 = vunpack.i.l.bf16 %v4805_v21 }
 0x2e9   :  { %v4792_v19 = vunpack.i.h.bf16 %v6142_v3 }
 0x2ea   :  { %v4840_v24 = vpop.permute.xlu2 %4839  ;;  %1825 = vmatmul.bf16.gmra.mxu2 %v1717_v22  ;;  %v1305_v23 = vsel %vm36_vm0, %v6009_v51, %v4807_v4  ;;  %v1304_v25 = vsel %vm36_vm0, %v6006_v35, %v4806_v5 }
 0x2eb   :  { %v1308_v40 = vsel %vm201_vm1, %v1304_v25, %v4811_v28  ;;  %v1309_v41 = vsel %vm201_vm1, %v1305_v23, %v4812_v27  ;;  %v4842_v60 = vunpack.i.h.bf16 %v4840_v24  ;;  %v4841_v12 = vunpack.i.l.bf16 %v4840_v24  ;;  %v1344_v25 = vld [vmem:[#allocation2 + $0x5] sm:$0xff] }
 0x2ed   :  { %v1307_v9 = vsel %vm36_vm0, %v6025_v17, %v4842_v60  ;;  %v1306_v8 = vsel %vm36_vm0, %v6017_v1, %v4841_v12  ;;  %v4791_v17 = vunpack.i.l.bf16 %v6142_v3  ;;  %v5563_v12 = vld [vmem:[%s6975_s4] ss:$0 sm:$0xff] }
 0x2ee   :  { %1885 = vrot.lane.b32.xlu1 %v5563_v12, %s5598_s22 }
 0x2ef   :  { %v4820_v33 = vpop.permute.xlu1 %4819 }
 0x2f0   :  { %v4815_v26 = vpop.permute.xlu0 %4814  ;;  %v4822_v37 = vunpack.i.h.bf16 %v4820_v33  ;;  %v4821_v39 = vunpack.i.l.bf16 %v4820_v33  ;;  %v1345_v33 = vld [vmem:[#allocation2 + $0xd] sm:$0xff] }
 0x2f1   :  { %v4817_v32 = vunpack.i.h.bf16 %v4815_v26  ;;  %v4816_v34 = vunpack.i.l.bf16 %v4815_v26 }
 0x2f2   :  { %v4855_v30 = vpop.permute.xlu2 %4854 }
 0x2f3   :  { %v1313_v42 = vsel %vm206_vm2, %v1309_v41, %v4817_v32  ;;  %v1312_v51 = vsel %vm206_vm2, %v1308_v40, %v4816_v34  ;;  %v4857_v20 = vunpack.i.h.bf16 %v4855_v30  ;;  %v4856_v21 = vunpack.i.l.bf16 %v4855_v30 }
 0x2f4   :  { %v1317_v43 = vsel %vm211_vm3, %v1313_v42, %v4822_v37  ;;  %v1316_v35 = vsel %vm211_vm3, %v1312_v51, %v4821_v39  ;;  %v1488_v39 = vsel %vm36_vm0, %v1344_v25, %v4791_v17  ;;  %v1489_v40 = vsel %vm36_vm0, %v1345_v33, %v4792_v19  ;;  %v1346_v19 = vld [vmem:[#allocation2 + $0x15] sm:$0xff]  ;;  %v1347_v17 = vld [vmem:[#allocation2 + $0x1d] sm:$0xff] }
 0x2f5   :  { %v1320_v29 = vsel %vm216_vm4, %v1316_v35, %v4826_v46  ;;  %v1321_v50 = vsel %vm216_vm4, %v1317_v43, %v4827_v45  ;;  %v4797_v43 = vunpack.i.h.bf16 %v6136_v2  ;;  %v4796_v35 = vunpack.i.l.bf16 %v6136_v2 }
 0x2f7   :  { %v4835_v47 = vpop.permute.xlu1 %4834 }
 0x2f8   :  { %v4830_v48 = vpop.permute.xlu0 %4829  ;;  %v4837_v49 = vunpack.i.h.bf16 %v4835_v47  ;;  %v4836_v52 = vunpack.i.l.bf16 %v4835_v47  ;;  %v1492_v47 = vsel %vm201_vm1, %v1488_v39, %v4796_v35 }
 0x2f9   :  { %v4832_v36 = vunpack.i.h.bf16 %v4830_v48  ;;  %v4831_v53 = vunpack.i.l.bf16 %v4830_v48  ;;  %v1493_v48 = vsel %vm201_vm1, %v1489_v40, %v4797_v43 }
 0x2fa   :  { %v4880_v54 = vpop.permute.xlu2 %4879 }
 0x2fb   :  { %v1324_v55 = vsel %vm221_vm5, %v1320_v29, %v4831_v53  ;;  %v1325_v44 = vsel %vm221_vm5, %v1321_v50, %v4832_v36  ;;  %v4882_v28 = vunpack.i.h.bf16 %v4880_v54  ;;  %v4881_v32 = vunpack.i.l.bf16 %v4880_v54 }
 0x2fc   :  { %v1328_v56 = vsel %vm226_vm6, %v1324_v55, %v4836_v52  ;;  %v1329_v57 = vsel %vm226_vm6, %v1325_v44, %v4837_v49  ;;  %v4802_v29 = vunpack.i.h.bf16 %v6113_v31  ;;  %v4801_v50 = vunpack.i.l.bf16 %v6113_v31 }
 0x2fd   :  { %v1336_v58 = vpack.c.bf16 %v1328_v56, %v1328_v56  ;;  %v1337_v59 = vpack.c.bf16 %v1329_v57, %v1329_v57 }
 0x2fe   :  { %v1496_v56 = vsel %vm206_vm2, %v1492_v47, %v4801_v50  ;;  %v1497_v2 = vsel %vm206_vm2, %v1493_v48, %v4802_v29 }
 0x2ff   :  { %v1712_v61 = vunpack.c.l.b16 %v1336_v58  ;;  %v1713_v62 = vunpack.c.l.b16 %v1337_v59  ;;  %v4850_v63 = vpop.permute.xlu1 %4849 }
 0x300   :  { %v4845_v38 = vpop.permute.xlu0 %4844  ;;  %v4852_v10 = vunpack.i.h.bf16 %v4850_v63  ;;  %v4851_v11 = vunpack.i.l.bf16 %v4850_v63 }
 0x301   :  { %v4847_v0 = vunpack.i.h.bf16 %v4845_v38  ;;  %v4846_v6 = vunpack.i.l.bf16 %v4845_v38  ;;  %v1718_v7 = vpack.c.b16 %v1713_v62, %v1712_v61 }
 0x302   :  { %v6164_v14 = vpop.permute.xlu2 %4884 }
 0x303   :  { %v1311_v15 = vsel %vm201_vm1, %v1307_v9, %v4847_v0  ;;  %v1310_v16 = vsel %vm201_vm1, %v1306_v8, %v4846_v6  ;;  %1830 = vmatmul.bf16.gmra.mxu2 %v1718_v7  ;;  %v4887_v31 = vunpack.i.h.bf16 %v6164_v14  ;;  %v4886_v61 = vunpack.i.l.bf16 %v6164_v14 }
 0x304   :  { %v1315_v13 = vsel %vm206_vm2, %v1311_v15, %v4852_v10  ;;  %v1314_v18 = vsel %vm206_vm2, %v1310_v16, %v4851_v11 }
 0x305   :  { %v1318_v26 = vsel %vm211_vm3, %v1314_v18, %v4856_v21  ;;  %v1319_v27 = vsel %vm211_vm3, %v1315_v13, %v4857_v20 }
 0x307   :  { %v4870_v1 = vpop.permute.xlu1 %4869 }
 0x308   :  { %v4860_v22 = vpop.permute.xlu0 %4859  ;;  %v4872_v24 = vunpack.i.h.bf16 %v4870_v1  ;;  %v4871_v4 = vunpack.i.l.bf16 %v4870_v1 }
 0x309   :  { %v4862_v5 = vunpack.i.h.bf16 %v4860_v22  ;;  %v4861_v23 = vunpack.i.l.bf16 %v4860_v22 }
 0x30a   :  { %v4900_v51 = vpop.permute.xlu2 %4899 }
 0x30b   :  { %v1322_v34 = vsel %vm216_vm4, %v1318_v26, %v4861_v23  ;;  %v1323_v3 = vsel %vm216_vm4, %v1319_v27, %v4862_v5  ;;  %v4902_v1 = vunpack.i.h.bf16 %v4900_v51  ;;  %v4901_v22 = vunpack.i.l.bf16 %v4900_v51 }
 0x30c   :  { %v1326_v30 = vsel %vm221_vm5, %v1322_v34, %v4871_v4  ;;  %v1327_v37 = vsel %vm221_vm5, %v1323_v3, %v4872_v24 }
 0x30d   :  { %v1330_v41 = vsel %vm226_vm6, %v1326_v30, %v4881_v32  ;;  %v1331_v42 = vsel %vm226_vm6, %v1327_v37, %v4882_v28 }
 0x30e   :  { %v1338_v45 = vpack.c.bf16 %v1330_v41, %v1330_v41  ;;  %v1339_v46 = vpack.c.bf16 %v1331_v42, %v1331_v42 }
 0x30f   :  { %v4875_v52 = vpop.permute.xlu1 %4874 }
 0x310   :  { %v4865_v49 = vpop.permute.xlu0 %4864  ;;  %v1714_v36 = vunpack.c.l.b16 %v1338_v45  ;;  %v1715_v53 = vunpack.c.l.b16 %v1339_v46  ;;  %v4877_v57 = vunpack.i.h.bf16 %v4875_v52  ;;  %v4876_v58 = vunpack.i.l.bf16 %v4875_v52 }
 0x311   :  { %v4867_v54 = vunpack.i.h.bf16 %v4865_v49  ;;  %v4866_v55 = vunpack.i.l.bf16 %v4865_v49 }
 0x312   :  { %v1719_v44 = vpack.c.b16 %v1715_v53, %v1714_v36  ;;  %v4915_v38 = vpop.permute.xlu2 %4914 }
 0x313   :  { %v1500_v59 = vsel %vm211_vm3, %v1496_v56, %v4866_v55  ;;  %v1501_v60 = vsel %vm211_vm3, %v1497_v2, %v4867_v54  ;;  %v4917_v39 = vunpack.i.h.bf16 %v4915_v38  ;;  %v4916_v40 = vunpack.i.l.bf16 %v4915_v38  ;;  %v1521_v56 = vld [vmem:[#allocation2 + $0x3d] sm:$0xff] }
 0x314   :  { %1835 = vmatmul.bf16.gmra.mxu2 %v1719_v44  ;;  %v1504_v62 = vsel %vm216_vm4, %v1500_v59, %v4876_v58  ;;  %v1505_v63 = vsel %vm216_vm4, %v1501_v60, %v4877_v57  ;;  %v1520_v44 = vld [vmem:[#allocation2 + $0x35] sm:$0xff] }
 0x315   :  { %v1508_v8 = vsel %vm221_vm5, %v1504_v62, %v4886_v61  ;;  %v1509_v10 = vsel %vm221_vm5, %v1505_v63, %v4887_v31 }
 0x317   :  { %v4895_v6 = vpop.permute.xlu1 %4894 }
 0x318   :  { %v4890_v0 = vpop.permute.xlu0 %4889  ;;  %v4897_v14 = vunpack.i.h.bf16 %v4895_v6  ;;  %v4896_v16 = vunpack.i.l.bf16 %v4895_v6 }
 0x319   :  { %v4892_v7 = vunpack.i.h.bf16 %v4890_v0  ;;  %v4891_v9 = vunpack.i.l.bf16 %v4890_v0 }
 0x31a   :  { %v1491_v24 = vsel %vm36_vm0, %v1347_v17, %v4897_v14  ;;  %v1490_v4 = vsel %vm36_vm0, %v1346_v19, %v4896_v16  ;;  %v4930_v26 = vpop.permute.xlu2 %4929 }
 0x31b   :  { %v1512_v11 = vsel %vm226_vm6, %v1508_v8, %v4891_v9  ;;  %v1513_v15 = vsel %vm226_vm6, %v1509_v10, %v4892_v7  ;;  %v1494_v28 = vsel %vm201_vm1, %v1490_v4, %v4901_v22  ;;  %v1495_v32 = vsel %vm201_vm1, %v1491_v24, %v4902_v1 }
 0x31c   :  { %v1692_v13 = vpack.c.bf16 %v1512_v11, %v1512_v11  ;;  %v1693_v18 = vpack.c.bf16 %v1513_v15, %v1513_v15  ;;  %v4932_v29 = vunpack.i.h.bf16 %v4930_v26  ;;  %v4931_v50 = vunpack.i.l.bf16 %v4930_v26 }
 0x31e   :  { %v1732_v20 = vunpack.c.l.b16 %v1692_v13  ;;  %v1733_v21 = vunpack.c.l.b16 %v1693_v18  ;;  %v1665_v60 = vsel %vm36_vm0, %v1521_v56, %v4932_v29  ;;  %v1664_v12 = vsel %vm36_vm0, %v1520_v44, %v4931_v50 }
 0x31f   :  { %v4910_v23 = vpop.permute.xlu1 %4909 }
 0x320   :  { %v4905_v5 = vpop.permute.xlu0 %4904  ;;  %v1740_v27 = vpack.c.b16 %v1733_v21, %v1732_v20  ;;  %v4912_v34 = vunpack.i.h.bf16 %v4910_v23  ;;  %v4911_v3 = vunpack.i.l.bf16 %v4910_v23 }
 0x321   :  { %v4907_v25 = vunpack.i.h.bf16 %v4905_v5  ;;  %v4906_v33 = vunpack.i.l.bf16 %v4905_v5 }
 0x322   :  { %v4945_v52 = vpop.permute.xlu2 %4944 }
 0x323   :  { %v1499_v30 = vsel %vm206_vm2, %v1495_v32, %v4907_v25  ;;  %v1498_v37 = vsel %vm206_vm2, %v1494_v28, %v4906_v33  ;;  %v4947_v8 = vunpack.i.h.bf16 %v4945_v52  ;;  %v4946_v10 = vunpack.i.l.bf16 %v4945_v52  ;;  %v1522_v32 = vld [vmem:[#allocation2 + $0x45] sm:$0xff] }
 0x324   :  { %1840 = vmatmul.bf16.gmra.mxu2 %v1740_v27  ;;  %v1502_v41 = vsel %vm211_vm3, %v1498_v37, %v4911_v3  ;;  %v1503_v42 = vsel %vm211_vm3, %v1499_v30, %v4912_v34  ;;  %v1523_v34 = vld [vmem:[#allocation2 + $0x4d] sm:$0xff] }
 0x325   :  { %v1506_v48 = vsel %vm216_vm4, %v1502_v41, %v4916_v40  ;;  %v1507_v49 = vsel %vm216_vm4, %v1503_v42, %v4917_v39 }
 0x327   :  { %v4925_v43 = vpop.permute.xlu1 %4924 }
 0x328   :  { %v4920_v51 = vpop.permute.xlu0 %4919  ;;  %v4927_v46 = vunpack.i.h.bf16 %v4925_v43  ;;  %v4926_v47 = vunpack.i.l.bf16 %v4925_v43 }
 0x329   :  { %v4922_v35 = vunpack.i.h.bf16 %v4920_v51  ;;  %v4921_v45 = vunpack.i.l.bf16 %v4920_v51 }
 0x32a   :  { %v4960_v14 = vpop.permute.xlu2 %4959 }
 0x32b   :  { %v1510_v36 = vsel %vm221_vm5, %v1506_v48, %v4921_v45  ;;  %v1511_v53 = vsel %vm221_vm5, %v1507_v49, %v4922_v35  ;;  %v4962_v17 = vunpack.i.h.bf16 %v4960_v14  ;;  %v4961_v20 = vunpack.i.l.bf16 %v4960_v14 }
 0x32c   :  { %v1514_v54 = vsel %vm226_vm6, %v1510_v36, %v4926_v47  ;;  %v1515_v55 = vsel %vm226_vm6, %v1511_v53, %v4927_v46 }
 0x32d   :  { %v1694_v2 = vpack.c.bf16 %v1514_v54, %v1514_v54  ;;  %v1695_v57 = vpack.c.bf16 %v1515_v55, %v1515_v55 }
 0x32f   :  { %v1734_v58 = vunpack.c.l.b16 %v1694_v2  ;;  %v1735_v59 = vunpack.c.l.b16 %v1695_v57  ;;  %v4940_v61 = vpop.permute.xlu1 %4939 }
 0x330   :  { %v4935_v31 = vpop.permute.xlu0 %4934  ;;  %v4942_v38 = vunpack.i.h.bf16 %v4940_v61  ;;  %v4941_v0 = vunpack.i.l.bf16 %v4940_v61 }
 0x331   :  { %v4937_v62 = vunpack.i.h.bf16 %v4935_v31  ;;  %v4936_v63 = vunpack.i.l.bf16 %v4935_v31  ;;  %v1741_v6 = vpack.c.b16 %v1735_v59, %v1734_v58 }
 0x332   :  { %v4975_v42 = vpop.permute.xlu2 %4974 }
 0x333   :  { %v1669_v7 = vsel %vm201_vm1, %v1665_v60, %v4937_v62  ;;  %v1668_v9 = vsel %vm201_vm1, %v1664_v12, %v4936_v63  ;;  %v4977_v47 = vunpack.i.h.bf16 %v4975_v42  ;;  %v4976_v48 = vunpack.i.l.bf16 %v4975_v42 }
 0x334   :  { %1845 = vmatmul.bf16.gmra.mxu2 %v1741_v6  ;;  %v1672_v11 = vsel %vm206_vm2, %v1668_v9, %v4941_v0  ;;  %v1673_v15 = vsel %vm206_vm2, %v1669_v7, %v4942_v38 }
 0x335   :  { %v1676_v16 = vsel %vm211_vm3, %v1672_v11, %v4946_v10  ;;  %v1677_v13 = vsel %vm211_vm3, %v1673_v15, %v4947_v8 }
 0x337   :  { %v4955_v19 = vpop.permute.xlu1 %4954 }
 0x338   :  { %v4950_v18 = vpop.permute.xlu0 %4949  ;;  %v4957_v22 = vunpack.i.h.bf16 %v4955_v19  ;;  %v4956_v24 = vunpack.i.l.bf16 %v4955_v19 }
 0x339   :  { %v4952_v21 = vunpack.i.h.bf16 %v4950_v18  ;;  %v4951_v1 = vunpack.i.l.bf16 %v4950_v18 }
 0x33a   :  { %v4990_v2 = vpop.permute.xlu2 %4989 }
 0x33b   :  { %v1680_v4 = vsel %vm216_vm4, %v1676_v16, %v4951_v1  ;;  %v1681_v5 = vsel %vm216_vm4, %v1677_v13, %v4952_v21  ;;  %v4992_v59 = vunpack.i.h.bf16 %v4990_v2  ;;  %v4991_v60 = vunpack.i.l.bf16 %v4990_v2 }
 0x33c   :  { %v1684_v23 = vsel %vm221_vm5, %v1680_v4, %v4956_v24  ;;  %v1685_v25 = vsel %vm221_vm5, %v1681_v5, %v4957_v22 }
 0x33d   :  { %v1688_v33 = vsel %vm226_vm6, %v1684_v23, %v4961_v20  ;;  %v1689_v26 = vsel %vm226_vm6, %v1685_v25, %v4962_v17 }
 0x33e   :  { %v1696_v27 = vpack.c.bf16 %v1688_v33, %v1688_v33  ;;  %v1697_v28 = vpack.c.bf16 %v1689_v26, %v1689_v26 }
 0x33f   :  { %v4970_v30 = vpop.permute.xlu1 %4969 }
 0x340   :  { %v4965_v3 = vpop.permute.xlu0 %4964  ;;  %v1736_v37 = vunpack.c.l.b16 %v1696_v27  ;;  %v1737_v39 = vunpack.c.l.b16 %v1697_v28  ;;  %v4972_v51 = vunpack.i.h.bf16 %v4970_v30  ;;  %v4971_v43 = vunpack.i.l.bf16 %v4970_v30 }
 0x341   :  { %v4967_v40 = vunpack.i.h.bf16 %v4965_v3  ;;  %v4966_v41 = vunpack.i.l.bf16 %v4965_v3 }
 0x342   :  { %v1742_v35 = vpack.c.b16 %v1737_v39, %v1736_v37 }
 0x343   :  { %v1667_v45 = vsel %vm36_vm0, %v1523_v34, %v4967_v40  ;;  %v1666_v46 = vsel %vm36_vm0, %v1522_v32, %v4966_v41  ;;  %v6265_v40 = vld [vmem:[%s6974_s3 + $0x2] ss:$0 sm:$0xff] }
 0x344   :  { %1850 = vmatmul.bf16.gmra.mxu2 %v1742_v35  ;;  %v1670_v49 = vsel %vm201_vm1, %v1666_v46, %v4971_v43  ;;  %v1671_v52 = vsel %vm201_vm1, %v1667_v45, %v4972_v51 }
 0x345   :  { %v1674_v29 = vsel %vm206_vm2, %v1670_v49, %v4976_v48  ;;  %v1675_v50 = vsel %vm206_vm2, %v1671_v52, %v4977_v47 }
 0x347   :  { %v4985_v53 = vpop.permute.xlu1 %4984 }
 0x348   :  { %v4980_v36 = vpop.permute.xlu0 %4979  ;;  %v4987_v44 = vunpack.i.h.bf16 %v4985_v53  ;;  %v4986_v56 = vunpack.i.l.bf16 %v4985_v53 }
 0x349   :  { %v4982_v54 = vunpack.i.h.bf16 %v4980_v36  ;;  %v4981_v55 = vunpack.i.l.bf16 %v4980_v36 }
 0x34b   :  { %v1678_v57 = vsel %vm211_vm3, %v1674_v29, %v4981_v55  ;;  %v1679_v58 = vsel %vm211_vm3, %v1675_v50, %v4982_v54 }
 0x34c   :  { %v1682_v12 = vsel %vm216_vm4, %v1678_v57, %v4986_v56  ;;  %v1683_v31 = vsel %vm216_vm4, %v1679_v58, %v4987_v44 }
 0x34d   :  { %v1686_v38 = vsel %vm221_vm5, %v1682_v12, %v4991_v60  ;;  %v1687_v0 = vsel %vm221_vm5, %v1683_v31, %v4992_v59 }
 0x350   :  { %v4995_v61 = vpop.permute.xlu0 %4994 }
 0x351   :  { %v4997_v62 = vunpack.i.h.bf16 %v4995_v61  ;;  %v4996_v63 = vunpack.i.l.bf16 %v4995_v61 }
 0x353   :  { %v1690_v6 = vsel %vm226_vm6, %v1686_v38, %v4996_v63  ;;  %v1691_v7 = vsel %vm226_vm6, %v1687_v0, %v4997_v62 }
 0x354   :  { %v1698_v9 = vpack.c.bf16 %v1690_v6, %v1690_v6  ;;  %v1699_v8 = vpack.c.bf16 %v1691_v7, %v1691_v7 }
 0x356   :  { %v1738_v10 = vunpack.c.l.b16 %v1698_v9  ;;  %v1739_v11 = vunpack.c.l.b16 %v1699_v8 }
 0x357   :  { %v1821_v14 = vpop.f32.mrf.mxu2 }
 0x358   :  { %v1743_v15 = vpack.c.b16 %v1739_v11, %v1738_v10  ;;  %v1866_v41 = vadd.f32 %v6265_v40, %v1821_v14 }
 0x35a   :  { %1855 = vmatmul.bf16.gmra.mxu2 %v1743_v15  ;;  %v1874_v42 = vmax.f32 %v1866_v41, 0.0 }
 0x35f   :  { %v1823_v16 = vpop.f32.mrf.mxu2 }
 0x360   :  { %v1886_v1 = vpop.permute.xlu1 %1885  ;;  %v1867_v49 = vadd.f32 %v6265_v40, %v1823_v16 }
 0x362   :  { %v1875_v36 = vmax.f32 %v1867_v49, 0.0 }
 0x36d   :  { %v1826_v13 = vpop.f32.mrf.mxu2 }
 0x36e   :  { %v1868_v50 = vadd.f32 %v6265_v40, %v1826_v13 }
 0x370   :  { %v1876_v55 = vmax.f32 %v1868_v50, 0.0 }
 0x375   :  { %v1828_v18 = vpop.f32.mrf.mxu2 }
 0x376   :  { %v1869_v45 = vadd.f32 %v6265_v40, %v1828_v18 }
 0x378   :  { %v1877_v46 = vmax.f32 %v1869_v45, 0.0 }
 0x386   :  { %v6246_v19 = vpop.f32.mrf.mxu2 }
 0x387   :  { %v1870_v0 = vadd.f32 %v6265_v40, %v6246_v19 }
 0x38e   :  { %v6248_v17 = vpop.f32.mrf.mxu2 }
 0x397   :  { %v6250_v20 = vpop.f32.mrf.mxu2 }
 0x398   :  { %v1872_v38 = vadd.f32 %v6265_v40, %v6250_v20 }
 0x39a   :  { %v1880_v15 = vmax.f32 %v1872_v38, 0.0 }
 0x39f   :  { %v6252_v21 = vpop.f32.mrf.mxu2 }
 0x3a7   :  { %v1841_v22 = vpop.f32.mrf.mxu2 }
 0x3a8   :  { %v1888_v24 = vadd.f32 %v1886_v1, %v1841_v22 }
 0x3aa   :  { %1904 = vrot.lane.b32.xlu2 %v1888_v24, %s5604_s11 }
 0x3af   :  { %v1843_v4 = vpop.f32.mrf.mxu2 }
 0x3b0   :  { %v1889_v5 = vadd.f32 %v1886_v1, %v1843_v4 }
 0x3b2   :  { %1906 = vrot.lane.b32.xlu0 %v1889_v5, %s5604_s11 }
 0x3b7   :  { %v1846_v23 = vpop.f32.mrf.mxu2 }
 0x3b8   :  { %v1890_v25 = vadd.f32 %v1886_v1, %v1846_v23 }
 0x3ba   :  { %1908 = vrot.lane.b32.xlu1 %v1890_v25, %s5604_s11  ;;  %v1871_v25 = vadd.f32 %v6265_v40, %v6248_v17 }
 0x3bf   :  { %v1848_v33 = vpop.f32.mrf.mxu2 }
 0x3c0   :  { %v1891_v26 = vadd.f32 %v1886_v1, %v1848_v33 }
 0x3c2   :  { %1910 = vrot.lane.b32.xlu2 %v1891_v26, %s5604_s11 }
 0x3c7   :  { %v1851_v27 = vpop.f32.mrf.mxu2 }
 0x3c8   :  { %v1892_v28 = vadd.f32 %v1886_v1, %v1851_v27 }
 0x3ca   :  { %1912 = vrot.lane.b32.xlu0 %v1892_v28, %s5604_s11 }
 0x3cf   :  { %v1853_v32 = vpop.f32.mrf.mxu2 }
 0x3d0   :  { %v1893_v34 = vadd.f32 %v1886_v1, %v1853_v32 }
 0x3d2   :  { %1914 = vrot.lane.b32.xlu1 %v1893_v34, %s5604_s11 }
 0x3dd   :  { %v1856_v3 = vpop.f32.mrf.mxu2 }
 0x3de   :  { %v1894_v30 = vadd.f32 %v1886_v1, %v1856_v3 }
 0x3e0   :  { %1916 = vrot.lane.b32.xlu2 %v1894_v30, %s5604_s11  ;;  %v1879_v30 = vmax.f32 %v1871_v25, 0.0 }
 0x3e5   :  { %v1858_v37 = vpop.f32.mrf.mxu2 }
 0x3e6   :  { %v1895_v39 = vadd.f32 %v1886_v1, %v1858_v37  ;;  %v1878_v1 = vmax.f32 %v1870_v0, 0.0 }
 0x3e8   :  { %1918 = vrot.lane.b32.xlu0 %v1895_v39, %s5604_s11 }
 0x404   :  { %v1905_v51 = vpop.permute.xlu2 %1904 }
 0x405   :  { %v6268_v43 = vadd.f32 %v1905_v51, %v1874_v42 }
 0x407   :  { %v1936_v35 = vmax.f32 %v6268_v43, 0.0 }
 0x409   :  { %1944 = vst.msk [vmem:[#allocation2 + $0x8] sm:$0xff] %vm36_vm0, %v1936_v35 }
 0x410   :  { %v1952_v57 = vld [vmem:[#allocation2 + $0x6] sm:$0xff] }
 0x411   :  { %v1956_v58 = vld [vmem:[#allocation2 + $0x7] sm:$0xff] }
 0x412   :  { %v1960_v59 = vld [vmem:[#allocation2 + $0x8] sm:$0xff] }
 0x41c   :  { %v1911_v47 = vpop.permute.xlu2 %1910 }
 0x41d   :  { %v6275_v48 = vadd.f32 %v1911_v47, %v1877_v46 }
 0x41f   :  { %v1939_v52 = vmax.f32 %v6275_v48, 0.0 }
 0x421   :  { %1947 = vst.msk [vmem:[#allocation2 + $0x20] sm:$0xff] %vm36_vm0, %v1939_v52 }
 0x424   :  { %v1907_v53 = vpop.permute.xlu0 %1906 }
 0x425   :  { %v6282_v29 = vadd.f32 %v1907_v53, %v1875_v36 }
 0x427   :  { %v1937_v54 = vmax.f32 %v6282_v29, 0.0 }
 0x428   :  { %v1963_v45 = vld [vmem:[#allocation2 + $0x20] sm:$0xff] }
 0x429   :  { %1945 = vst.msk [vmem:[#allocation2 + $0x10] sm:$0xff] %vm36_vm0, %v1937_v54  ;;  %v1967_v46 = vld [vmem:[#allocation2 + $0x21] sm:$0xff] }
 0x42a   :  { %v1971_v36 = vld [vmem:[#allocation2 + $0x22] sm:$0xff] }
 0x42c   :  { %v1909_v44 = vpop.permute.xlu1 %1908 }
 0x42d   :  { %v6289_v56 = vadd.f32 %v1909_v44, %v1876_v55  ;;  %v1975_v44 = vld [vmem:[#allocation2 + $0x23] sm:$0xff] }
 0x42f   :  { %v1938_v2 = vmax.f32 %v6289_v56, 0.0 }
 0x430   :  { %v1953_v60 = vld [vmem:[#allocation2 + $0xe] sm:$0xff] }
 0x431   :  { %v1957_v12 = vld [vmem:[#allocation2 + $0xf] sm:$0xff]  ;;  %1946 = vst.msk [vmem:[#allocation2 + $0x18] sm:$0xff] %vm36_vm0, %v1938_v2  ;;  %v4998_v61 = vpack.i.bf16 %v1953_v60, %v1952_v57  ;;  %v1979_v57 = vld [vmem:[#allocation2 + $0x24] sm:$0xff] }
 0x432   :  { %v1961_v31 = vld [vmem:[#allocation2 + $0x10] sm:$0xff]  ;;  %v5003_v62 = vpack.i.bf16 %v1957_v12, %v1956_v58 }
 0x433   :  { %v5008_v63 = vpack.i.bf16 %v1961_v31, %v1960_v59  ;;  %4999 = vrot.lane.b32.xlu1 %v4998_v61, %s5598_s22  ;;  %v1964_v6 = vld [vmem:[#allocation2 + $0x9] sm:$0xff]  ;;  %v1873_v61 = vadd.f32 %v6265_v40, %v6252_v21 }
 0x434   :  { %5004 = vrot.lane.b32.xlu2 %v5003_v62, %s5601_s27  ;;  %v1968_v7 = vld [vmem:[#allocation2 + $0xa] sm:$0xff] }
 0x435   :  { %5009 = vrot.lane.b32.xlu0 %v5008_v63, %s5599_s23  ;;  %v1972_v9 = vld [vmem:[#allocation2 + $0xb] sm:$0xff] }
 0x436   :  { %v1976_v28 = vld [vmem:[#allocation2 + $0xc] sm:$0xff] }
 0x438   :  { %v1965_v8 = vld [vmem:[#allocation2 + $0x11] sm:$0xff]  ;;  %v1955_v23 = vld [vmem:[#allocation2 + $0x1e] sm:$0xff] }
 0x439   :  { %v1969_v10 = vld [vmem:[#allocation2 + $0x12] sm:$0xff]  ;;  %v5013_v14 = vpack.i.bf16 %v1965_v8, %v1964_v6  ;;  %v1959_v27 = vld [vmem:[#allocation2 + $0x1f] sm:$0xff] }
 0x43a   :  { %v1973_v11 = vld [vmem:[#allocation2 + $0x13] sm:$0xff]  ;;  %v5018_v16 = vpack.i.bf16 %v1969_v10, %v1968_v7  ;;  %v1917_v18 = vpop.permute.xlu2 %1916  ;;  %v1974_v50 = vld [vmem:[#allocation2 + $0x1b] sm:$0xff] }
 0x43b   :  { %v5023_v13 = vpack.i.bf16 %v1973_v11, %v1972_v9  ;;  %v6302_v22 = vadd.f32 %v1917_v18, %v1880_v15  ;;  %5014 = vrot.lane.b32.xlu1 %v5013_v14, %s5602_s28  ;;  %v1977_v4 = vld [vmem:[#allocation2 + $0x14] sm:$0xff]  ;;  %v1978_v55 = vld [vmem:[#allocation2 + $0x1c] sm:$0xff]  ;;  %v5058_v60 = vpack.i.bf16 %v1975_v44, %v1974_v50  ;;  %v1881_v9 = vmax.f32 %v1873_v61, 0.0  ;;  %v4380_v61 = vld [vmem:[%s6972_s1 + $0xc8] sm:$0xff] }
 0x43c   :  { %5019 = vrot.lane.b32.xlu2 %v5018_v16, %s5600_s26  ;;  %v1913_v19 = vpop.permute.xlu0 %1912  ;;  %v1954_v5 = vld [vmem:[#allocation2 + $0x16] sm:$0xff]  ;;  %v5028_v32 = vpack.i.bf16 %v1977_v4, %v1976_v28  ;;  %v5063_v12 = vpack.i.bf16 %v1979_v57, %v1978_v55 }
 0x43d   :  { %5024 = vrot.lane.b32.xlu0 %v5023_v13, %s5603_s10  ;;  %v1942_v20 = vmax.f32 %v6302_v22, 0.0  ;;  %v6308_v24 = vadd.f32 %v1913_v19, %v1878_v1  ;;  %v1958_v26 = vld [vmem:[#allocation2 + $0x17] sm:$0xff]  ;;  %v5033_v34 = vpack.i.bf16 %v1955_v23, %v1954_v5 }
 0x43e   :  { %v5038_v3 = vpack.i.bf16 %v1959_v27, %v1958_v26  ;;  %v1962_v39 = vld [vmem:[#allocation2 + $0x18] sm:$0xff] }
 0x43f   :  { %2122 = vst.msk [vmem:[#allocation2 + $0x48] sm:$0xff] %vm36_vm0, %v1942_v20  ;;  %v1940_v33 = vmax.f32 %v6308_v24, 0.0  ;;  %v1966_v41 = vld [vmem:[#allocation2 + $0x19] sm:$0xff]  ;;  %v5043_v47 = vpack.i.bf16 %v1963_v45, %v1962_v39 }
 0x440   :  { %v1970_v51 = vld [vmem:[#allocation2 + $0x1a] sm:$0xff]  ;;  %v5048_v49 = vpack.i.bf16 %v1967_v46, %v1966_v41 }
 0x441   :  { %2120 = vst.msk [vmem:[#allocation2 + $0x38] sm:$0xff] %vm36_vm0, %v1940_v33  ;;  %v5053_v53 = vpack.i.bf16 %v1971_v36, %v1970_v51  ;;  %v4386_v44 = vld [vmem:[%s6972_s1 + $0xf8] sm:$0xff] }
 0x442   :  { %2370 = vmatpush.bf16.msra.mxu3 %v4386_v44 }
 0x443   :  { %5029 = vrot.lane.b32.xlu1 %v5028_v32, %s5604_s11 }
 0x444   :  { %5034 = vrot.lane.b32.xlu2 %v5033_v34, %s5598_s22  ;;  %v1915_v17 = vpop.permute.xlu1 %1914 }
 0x445   :  { %5039 = vrot.lane.b32.xlu0 %v5038_v3, %s5601_s27  ;;  %v6322_v37 = vadd.f32 %v1915_v17, %v1879_v30 }
 0x446   :  { %v2138_v34 = vld [vmem:[#allocation2 + $0x48] sm:$0xff] }
 0x447   :  { %v1941_v42 = vmax.f32 %v6322_v37, 0.0 }
 0x448   :  { %v2128_v58 = vld [vmem:[#allocation2 + $0x36] sm:$0xff] }
 0x449   :  { %2121 = vst.msk [vmem:[#allocation2 + $0x40] sm:$0xff] %vm36_vm0, %v1941_v42  ;;  %v2132_v6 = vld [vmem:[#allocation2 + $0x37] sm:$0xff] }
 0x44a   :  { %v2136_v7 = vld [vmem:[#allocation2 + $0x38] sm:$0xff] }
 0x44b   :  { %5044 = vrot.lane.b32.xlu1 %v5043_v47, %s5599_s23 }
 0x44c   :  { %5049 = vrot.lane.b32.xlu2 %v5048_v49, %s5602_s28 }
 0x44d   :  { %5054 = vrot.lane.b32.xlu0 %v5053_v53, %s5600_s26 }
 0x450   :  { %v2129_v59 = vld [vmem:[#allocation2 + $0x3e] sm:$0xff]  ;;  %v2134_v28 = vld [vmem:[#allocation2 + $0x47] sm:$0xff] }
 0x451   :  { %v5068_v31 = vpack.i.bf16 %v2129_v59, %v2128_v58  ;;  %v2133_v62 = vld [vmem:[#allocation2 + $0x3f] sm:$0xff]  ;;  %v4385_v58 = vld [vmem:[%s6972_s1 + $0xf0] sm:$0xff]  ;;  %v4384_v59 = vld [vmem:[%s6972_s1 + $0xe8] sm:$0xff] }
 0x452   :  { %v2137_v63 = vld [vmem:[#allocation2 + $0x40] sm:$0xff]  ;;  %v5073_v8 = vpack.i.bf16 %v2133_v62, %v2132_v6  ;;  %2371 = vmatpush.bf16.msra.mxu3 %v4385_v58 }
 0x453   :  { %5059 = vrot.lane.b32.xlu1 %v5058_v60, %s5603_s10  ;;  %v2140_v38 = vld [vmem:[#allocation2 + $0x39] sm:$0xff]  ;;  %v2141_v0 = vld [vmem:[#allocation2 + $0x41] sm:$0xff]  ;;  %v5078_v10 = vpack.i.bf16 %v2137_v63, %v2136_v7 }
 0x454   :  { %5064 = vrot.lane.b32.xlu2 %v5063_v12, %s5604_s11  ;;  %v5083_v15 = vpack.i.bf16 %v2141_v0, %v2140_v38  ;;  %v2148_v40 = vld [vmem:[#allocation2 + $0x3b] sm:$0xff]  ;;  %v2149_v16 = vld [vmem:[#allocation2 + $0x43] sm:$0xff] }
 0x455   :  { %5069 = vrot.lane.b32.xlu0 %v5068_v31, %s5598_s22  ;;  %v2144_v13 = vld [vmem:[#allocation2 + $0x3a] sm:$0xff]  ;;  %v2145_v18 = vld [vmem:[#allocation2 + $0x42] sm:$0xff]  ;;  %v5093_v4 = vpack.i.bf16 %v2149_v16, %v2148_v40  ;;  %v4381_v31 = vld [vmem:[%s6972_s1 + $0xd0] sm:$0xff] }
 0x456   :  { %v2152_v1 = vld [vmem:[#allocation2 + $0x3c] sm:$0xff]  ;;  %v2153_v19 = vld [vmem:[#allocation2 + $0x44] sm:$0xff]  ;;  %v5088_v5 = vpack.i.bf16 %v2145_v18, %v2144_v13  ;;  %2372 = vmatpush.bf16.msra.mxu3 %v4384_v59 }
 0x457   :  { %v5098_v23 = vpack.i.bf16 %v2153_v19, %v2152_v1  ;;  %v2130_v32 = vld [vmem:[#allocation2 + $0x46] sm:$0xff]  ;;  %v4382_v12 = vld [vmem:[%s6972_s1 + $0xd8] sm:$0xff] }
 0x458   :  { %v4383_v60 = vld [vmem:[%s6972_s1 + $0xe0] sm:$0xff] }
 0x459   :  { %v4379_v63 = vld [vmem:[%s6972_s1 + $0xc0] sm:$0xff] }
 0x45a   :  { %v1919_v11 = vpop.permute.xlu0 %1918  ;;  %2373 = vmatpush.bf16.msra.mxu3 %v4383_v60 }
 0x45b   :  { %v6336_v14 = vadd.f32 %v1919_v11, %v1881_v9  ;;  %5074 = vrot.lane.b32.xlu1 %v5073_v8, %s5601_s27  ;;  %v1948_v8 = vld [vmem:[#allocation2 + $0x5] sm:$0xff] }
 0x45c   :  { %5079 = vrot.lane.b32.xlu2 %v5078_v10, %s5599_s23  ;;  %v1949_v10 = vld [vmem:[#allocation2 + $0xd] sm:$0xff] }
 0x45d   :  { %5084 = vrot.lane.b32.xlu0 %v5083_v15, %s5602_s28  ;;  %v1943_v21 = vmax.f32 %v6336_v14, 0.0 }
 0x45e   :  { %2374 = vmatpush.bf16.msra.mxu3 %v4382_v12 }
 0x45f   :  { %2123 = vst.msk [vmem:[#allocation2 + $0x50] sm:$0xff] %vm36_vm0, %v1943_v21 }
 0x462   :  { %2375 = vmatpush.bf16.msra.mxu3 %v4381_v31 }
 0x463   :  { %5089 = vrot.lane.b32.xlu1 %v5088_v5, %s5600_s26 }
 0x464   :  { %5094 = vrot.lane.b32.xlu2 %v5093_v4, %s5603_s10 }
 0x465   :  { %5099 = vrot.lane.b32.xlu0 %v5098_v23, %s5604_s11 }
 0x466   :  { %v2135_v25 = vld [vmem:[#allocation2 + $0x4f] sm:$0xff]  ;;  %2376 = vmatpush.bf16.msra.mxu3 %v4380_v61 }
 0x467   :  { %v2131_v26 = vld [vmem:[#allocation2 + $0x4e] sm:$0xff]  ;;  %v5108_v3 = vpack.i.bf16 %v2135_v25, %v2134_v28 }
 0x468   :  { %v2139_v27 = vld [vmem:[#allocation2 + $0x50] sm:$0xff]  ;;  %v5103_v30 = vpack.i.bf16 %v2131_v26, %v2130_v32 }
 0x469   :  { %v5113_v17 = vpack.i.bf16 %v2139_v27, %v2138_v34  ;;  %v2146_v39 = vld [vmem:[#allocation2 + $0x4a] sm:$0xff]  ;;  %v2147_v41 = vld [vmem:[#allocation2 + $0x52] sm:$0xff] }
 0x46a   :  { %v2142_v51 = vld [vmem:[#allocation2 + $0x49] sm:$0xff]  ;;  %v2143_v45 = vld [vmem:[#allocation2 + $0x51] sm:$0xff]  ;;  %v5123_v49 = vpack.i.bf16 %v2147_v41, %v2146_v39  ;;  %2377 = vmatpush.bf16.msra.mxu3 %v4379_v63 }
 0x46b   :  { %5104 = vrot.lane.b32.xlu1 %v5103_v30, %s5598_s22  ;;  %v2150_v46 = vld [vmem:[#allocation2 + $0x4b] sm:$0xff]  ;;  %v2151_v47 = vld [vmem:[#allocation2 + $0x53] sm:$0xff]  ;;  %v5118_v36 = vpack.i.bf16 %v2143_v45, %v2142_v51 }
 0x46c   :  { %5109 = vrot.lane.b32.xlu2 %v5108_v3, %s5601_s27  ;;  %v5128_v53 = vpack.i.bf16 %v2151_v47, %v2150_v46  ;;  %v2154_v50 = vld [vmem:[#allocation2 + $0x4c] sm:$0xff]  ;;  %v2155_v55 = vld [vmem:[#allocation2 + $0x54] sm:$0xff] }
 0x46d   :  { %5114 = vrot.lane.b32.xlu0 %v5113_v17, %s5599_s23  ;;  %v5133_v57 = vpack.i.bf16 %v2155_v55, %v2154_v50  ;;  %v1950_v61 = vld [vmem:[#allocation2 + $0x15] sm:$0xff] }
 0x473   :  { %5119 = vrot.lane.b32.xlu1 %v5118_v36, %s5602_s28 }
 0x474   :  { %5124 = vrot.lane.b32.xlu2 %v5123_v49, %s5600_s26 }
 0x475   :  { %5129 = vrot.lane.b32.xlu0 %v5128_v53, %s5603_s10 }
 0x47b   :  { %5134 = vrot.lane.b32.xlu1 %v5133_v57, %s5604_s11 }
 0x48e   :  { %v5005_v62 = vpop.permute.xlu2 %5004 }
 0x48f   :  { %v5007_v40 = vunpack.i.h.bf16 %v5005_v62  ;;  %v5006_v16 = vunpack.i.l.bf16 %v5005_v62  ;;  %v1951_v62 = vld [vmem:[#allocation2 + $0x1d] sm:$0xff] }
 0x496   :  { %v5020_v38 = vpop.permute.xlu2 %5019 }
 0x497   :  { %v5022_v3 = vunpack.i.h.bf16 %v5020_v38  ;;  %v5021_v30 = vunpack.i.l.bf16 %v5020_v38 }
 0x49e   :  { %v5035_v13 = vpop.permute.xlu2 %5034 }
 0x49f   :  { %v5037_v58 = vunpack.i.h.bf16 %v5035_v13  ;;  %v5036_v59 = vunpack.i.l.bf16 %v5035_v13 }
 0x4a5   :  { %v5000_v0 = vpop.permute.xlu1 %4999 }
 0x4a6   :  { %v5002_v6 = vunpack.i.h.bf16 %v5000_v0  ;;  %v5001_v7 = vunpack.i.l.bf16 %v5000_v0  ;;  %v5050_v41 = vpop.permute.xlu2 %5049 }
 0x4a7   :  { %v5010_v9 = vpop.permute.xlu0 %5009 }
 0x4a8   :  { %v2093_v11 = vsel %vm36_vm0, %v1949_v10, %v5002_v6  ;;  %v2092_v15 = vsel %vm36_vm0, %v1948_v8, %v5001_v7  ;;  %v5012_v4 = vunpack.i.h.bf16 %v5010_v9  ;;  %v5011_v5 = vunpack.i.l.bf16 %v5010_v9 }
 0x4a9   :  { %v2096_v18 = vsel %vm201_vm1, %v2092_v15, %v5006_v16  ;;  %v2097_v1 = vsel %vm201_vm1, %v2093_v11, %v5007_v40  ;;  %v2095_v6 = vsel %vm36_vm0, %v1951_v62, %v5037_v58  ;;  %v2094_v7 = vsel %vm36_vm0, %v1950_v61, %v5036_v59 }
 0x4aa   :  { %v2101_v27 = vsel %vm206_vm2, %v2097_v1, %v5012_v4  ;;  %v2100_v28 = vsel %vm206_vm2, %v2096_v18, %v5011_v5  ;;  %v5052_v40 = vunpack.i.h.bf16 %v5050_v41  ;;  %v5051_v16 = vunpack.i.l.bf16 %v5050_v41 }
 0x4ad   :  { %v5015_v19 = vpop.permute.xlu1 %5014 }
 0x4ae   :  { %v5017_v23 = vunpack.i.h.bf16 %v5015_v19  ;;  %v5016_v25 = vunpack.i.l.bf16 %v5015_v19  ;;  %v5065_v9 = vpop.permute.xlu2 %5064 }
 0x4af   :  { %v5025_v26 = vpop.permute.xlu0 %5024 }
 0x4b0   :  { %v2104_v32 = vsel %vm211_vm3, %v2100_v28, %v5016_v25  ;;  %v2105_v34 = vsel %vm211_vm3, %v2101_v27, %v5017_v23  ;;  %v5027_v51 = vunpack.i.h.bf16 %v5025_v26  ;;  %v5026_v45 = vunpack.i.l.bf16 %v5025_v26 }
 0x4b1   :  { %v2108_v17 = vsel %vm216_vm4, %v2104_v32, %v5021_v30  ;;  %v2109_v39 = vsel %vm216_vm4, %v2105_v34, %v5022_v3  ;;  %v5067_v26 = vunpack.i.h.bf16 %v5065_v9  ;;  %v5066_v27 = vunpack.i.l.bf16 %v5065_v9 }
 0x4b2   :  { %v2112_v53 = vsel %vm221_vm5, %v2108_v17, %v5026_v45  ;;  %v2113_v50 = vsel %vm221_vm5, %v2109_v39, %v5027_v51 }
 0x4b5   :  { %v5030_v46 = vpop.permute.xlu1 %5029 }
 0x4b6   :  { %v5032_v47 = vunpack.i.h.bf16 %v5030_v46  ;;  %v5031_v49 = vunpack.i.l.bf16 %v5030_v46  ;;  %v5080_v30 = vpop.permute.xlu2 %5079 }
 0x4b7   :  { %v5040_v36 = vpop.permute.xlu0 %5039  ;;  %v5082_v59 = vunpack.i.h.bf16 %v5080_v30 }
 0x4b8   :  { %v2116_v55 = vsel %vm226_vm6, %v2112_v53, %v5031_v49  ;;  %v2117_v44 = vsel %vm226_vm6, %v2113_v50, %v5032_v47  ;;  %v5042_v60 = vunpack.i.h.bf16 %v5040_v36  ;;  %v5041_v12 = vunpack.i.l.bf16 %v5040_v36  ;;  %v2124_v53 = vld [vmem:[#allocation2 + $0x35] sm:$0xff]  ;;  %v2125_v50 = vld [vmem:[#allocation2 + $0x3d] sm:$0xff] }
 0x4b9   :  { %v2296_v57 = vpack.c.bf16 %v2117_v44, %v2116_v55 }
 0x4ba   :  { %v2099_v8 = vsel %vm201_vm1, %v2095_v6, %v5042_v60  ;;  %v2098_v10 = vsel %vm201_vm1, %v2094_v7, %v5041_v12  ;;  %v5081_v60 = vunpack.i.l.bf16 %v5080_v30 }
 0x4bb   :  { %2378 = vmatmul.bf16.vlgmr.msra.gmra.mxu3 %v2296_v57 }
 0x4bd   :  { %v5045_v31 = vpop.permute.xlu1 %5044 }
 0x4be   :  { %v5047_v63 = vunpack.i.h.bf16 %v5045_v31  ;;  %v5046_v38 = vunpack.i.l.bf16 %v5045_v31  ;;  %v5095_v12 = vpop.permute.xlu2 %5094 }
 0x4bf   :  { %v5055_v0 = vpop.permute.xlu0 %5054  ;;  %v5097_v9 = vunpack.i.h.bf16 %v5095_v12 }
 0x4c0   :  { %v2102_v11 = vsel %vm206_vm2, %v2098_v10, %v5046_v38  ;;  %v2103_v15 = vsel %vm206_vm2, %v2099_v8, %v5047_v63  ;;  %v5057_v1 = vunpack.i.h.bf16 %v5055_v0  ;;  %v5056_v19 = vunpack.i.l.bf16 %v5055_v0 }
 0x4c1   :  { %v2106_v13 = vsel %vm211_vm3, %v2102_v11, %v5051_v16  ;;  %v2107_v18 = vsel %vm211_vm3, %v2103_v15, %v5052_v40  ;;  %v5096_v8 = vunpack.i.l.bf16 %v5095_v12 }
 0x4c2   :  { %v2110_v28 = vsel %vm216_vm4, %v2106_v13, %v5056_v19  ;;  %v2111_v32 = vsel %vm216_vm4, %v2107_v18, %v5057_v1 }
 0x4c5   :  { %v5060_v4 = vpop.permute.xlu1 %5059 }
 0x4c6   :  { %v5062_v5 = vunpack.i.h.bf16 %v5060_v4  ;;  %v5061_v23 = vunpack.i.l.bf16 %v5060_v4 }
 0x4c7   :  { %v5070_v25 = vpop.permute.xlu0 %5069 }
 0x4c8   :  { %v2114_v34 = vsel %vm221_vm5, %v2110_v28, %v5061_v23  ;;  %v2115_v3 = vsel %vm221_vm5, %v2111_v32, %v5062_v5  ;;  %v5072_v51 = vunpack.i.h.bf16 %v5070_v25  ;;  %v5071_v45 = vunpack.i.l.bf16 %v5070_v25  ;;  %v5110_v23 = vpop.permute.xlu2 %5109  ;;  %v2126_v32 = vld [vmem:[#allocation2 + $0x45] sm:$0xff] }
 0x4c9   :  { %v2118_v17 = vsel %vm226_vm6, %v2114_v34, %v5066_v27  ;;  %v2119_v39 = vsel %vm226_vm6, %v2115_v3, %v5067_v26  ;;  %v2127_v34 = vld [vmem:[#allocation2 + $0x4d] sm:$0xff] }
 0x4ca   :  { %v2297_v41 = vpack.c.bf16 %v2119_v39, %v2118_v17  ;;  %v2269_v55 = vsel %vm36_vm0, %v2125_v50, %v5072_v51  ;;  %v2268_v44 = vsel %vm36_vm0, %v2124_v53, %v5071_v45  ;;  %v5112_v17 = vunpack.i.h.bf16 %v5110_v23 }
 0x4cb   :  { %v5111_v39 = vunpack.i.l.bf16 %v5110_v23 }
 0x4cc   :  { %2383 = vmatmul.bf16.gmra.mxu3 %v2297_v41 }
 0x4cd   :  { %v5075_v46 = vpop.permute.xlu1 %5074 }
 0x4ce   :  { %v5077_v47 = vunpack.i.h.bf16 %v5075_v46  ;;  %v5076_v49 = vunpack.i.l.bf16 %v5075_v46 }
 0x4cf   :  { %v5085_v36 = vpop.permute.xlu0 %5084 }
 0x4d0   :  { %v2272_v57 = vsel %vm201_vm1, %v2268_v44, %v5076_v49  ;;  %v2273_v58 = vsel %vm201_vm1, %v2269_v55, %v5077_v47  ;;  %v5087_v62 = vunpack.i.h.bf16 %v5085_v36  ;;  %v5086_v63 = vunpack.i.l.bf16 %v5085_v36  ;;  %v5125_v53 = vpop.permute.xlu2 %5124 }
 0x4d1   :  { %v2276_v31 = vsel %vm206_vm2, %v2272_v57, %v5081_v60  ;;  %v2277_v61 = vsel %vm206_vm2, %v2273_v58, %v5082_v59  ;;  %v5127_v58 = vunpack.i.h.bf16 %v5125_v53  ;;  %v5126_v59 = vunpack.i.l.bf16 %v5125_v53 }
 0x4d2   :  { %v2280_v10 = vsel %vm211_vm3, %v2276_v31, %v5086_v63  ;;  %v2281_v11 = vsel %vm211_vm3, %v2277_v61, %v5087_v62 }
 0x4d5   :  { %v5090_v38 = vpop.permute.xlu1 %5089 }
 0x4d6   :  { %v5092_v0 = vunpack.i.h.bf16 %v5090_v38  ;;  %v5091_v6 = vunpack.i.l.bf16 %v5090_v38 }
 0x4d7   :  { %v5100_v7 = vpop.permute.xlu0 %5099 }
 0x4d8   :  { %v2284_v15 = vsel %vm216_vm4, %v2280_v10, %v5091_v6  ;;  %v2285_v40 = vsel %vm216_vm4, %v2281_v11, %v5092_v0  ;;  %v5102_v16 = vunpack.i.h.bf16 %v5100_v7  ;;  %v5101_v13 = vunpack.i.l.bf16 %v5100_v7  ;;  %v6438_v11 = vld [vmem:[%s6974_s3 + $0x3] ss:$0 sm:$0xff] }
 0x4d9   :  { %v2288_v18 = vsel %vm221_vm5, %v2284_v15, %v5096_v8  ;;  %v2289_v1 = vsel %vm221_vm5, %v2285_v40, %v5097_v9 }
 0x4da   :  { %v2292_v19 = vsel %vm226_vm6, %v2288_v18, %v5101_v13  ;;  %v2293_v4 = vsel %vm226_vm6, %v2289_v1, %v5102_v16 }
 0x4db   :  { %v2298_v5 = vpack.c.bf16 %v2293_v4, %v2292_v19 }
 0x4dd   :  { %v5105_v25 = vpop.permute.xlu1 %5104  ;;  %2388 = vmatmul.bf16.gmra.mxu3 %v2298_v5 }
 0x4de   :  { %v5107_v26 = vunpack.i.h.bf16 %v5105_v25  ;;  %v5106_v27 = vunpack.i.l.bf16 %v5105_v25 }
 0x4df   :  { %v5115_v28 = vpop.permute.xlu0 %5114 }
 0x4e0   :  { %v2270_v3 = vsel %vm36_vm0, %v2126_v32, %v5106_v27  ;;  %v2271_v30 = vsel %vm36_vm0, %v2127_v34, %v5107_v26  ;;  %v5117_v46 = vunpack.i.h.bf16 %v5115_v28  ;;  %v5116_v47 = vunpack.i.l.bf16 %v5115_v28 }
 0x4e1   :  { %v2274_v41 = vsel %vm201_vm1, %v2270_v3, %v5111_v39  ;;  %v2275_v51 = vsel %vm201_vm1, %v2271_v30, %v5112_v17 }
 0x4e2   :  { %v2279_v50 = vsel %vm206_vm2, %v2275_v51, %v5117_v46  ;;  %v2278_v55 = vsel %vm206_vm2, %v2274_v41, %v5116_v47 }
 0x4e5   :  { %v5120_v45 = vpop.permute.xlu1 %5119 }
 0x4e6   :  { %v5122_v49 = vunpack.i.h.bf16 %v5120_v45  ;;  %v5121_v36 = vunpack.i.l.bf16 %v5120_v45 }
 0x4e7   :  { %v5130_v60 = vpop.permute.xlu0 %5129 }
 0x4e8   :  { %v2282_v44 = vsel %vm211_vm3, %v2278_v55, %v5121_v36  ;;  %v2283_v57 = vsel %vm211_vm3, %v2279_v50, %v5122_v49  ;;  %v5132_v61 = vunpack.i.h.bf16 %v5130_v60  ;;  %v5131_v62 = vunpack.i.l.bf16 %v5130_v60 }
 0x4e9   :  { %v2286_v12 = vsel %vm216_vm4, %v2282_v44, %v5126_v59  ;;  %v2287_v31 = vsel %vm216_vm4, %v2283_v57, %v5127_v58 }
 0x4ea   :  { %v2290_v6 = vsel %vm221_vm5, %v2286_v12, %v5131_v62  ;;  %v2291_v7 = vsel %vm221_vm5, %v2287_v31, %v5132_v61 }
 0x4ed   :  { %v5135_v63 = vpop.permute.xlu1 %5134 }
 0x4ee   :  { %v5137_v38 = vunpack.i.h.bf16 %v5135_v63  ;;  %v5136_v0 = vunpack.i.l.bf16 %v5135_v63 }
 0x4f0   :  { %v2294_v9 = vsel %vm226_vm6, %v2290_v6, %v5136_v0  ;;  %v2295_v8 = vsel %vm226_vm6, %v2291_v7, %v5137_v38 }
 0x4f1   :  { %v2299_v10 = vpack.c.bf16 %v2295_v8, %v2294_v9 }
 0x4f3   :  { %2393 = vmatmul.bf16.gmra.mxu3 %v2299_v10 }
 0x53e   :  { %v2379_v15 = vpop.f32.mrf.mxu3 }
 0x53f   :  { %v2380_v40 = vadd.f32 %v6438_v11, %v2379_v15 }
 0x541   :  { %v2399_v16 = vmax.f32 %v2380_v40, 0.0 }
 0x543   :  { %2407 = vst.msk [vmem:[#allocation2 + $0x8] sm:$0xff] %vm36_vm0, %v2399_v16 }
 0x546   :  { %v2381_v13 = vpop.f32.mrf.mxu3 }
 0x547   :  { %v2382_v18 = vadd.f32 %v6438_v11, %v2381_v13 }
 0x549   :  { %v2400_v1 = vmax.f32 %v2382_v18, 0.0 }
 0x54a   :  { %v2423_v5 = vld [vmem:[#allocation2 + $0x8] sm:$0xff] }
 0x54b   :  { %2408 = vst.msk [vmem:[#allocation2 + $0x10] sm:$0xff] %vm36_vm0, %v2400_v1  ;;  %v2419_v23 = vld [vmem:[#allocation2 + $0x7] sm:$0xff] }
 0x54c   :  { %v2415_v25 = vld [vmem:[#allocation2 + $0x6] sm:$0xff] }
 0x54f   :  { %v2384_v19 = vpop.f32.mrf.mxu3 }
 0x550   :  { %v2385_v4 = vadd.f32 %v6438_v11, %v2384_v19 }
 0x552   :  { %v2401_v26 = vmax.f32 %v2385_v4, 0.0  ;;  %v2424_v27 = vld [vmem:[#allocation2 + $0x10] sm:$0xff] }
 0x553   :  { %v2420_v28 = vld [vmem:[#allocation2 + $0xf] sm:$0xff]  ;;  %v5148_v34 = vpack.i.bf16 %v2424_v27, %v2423_v5 }
 0x554   :  { %v2416_v32 = vld [vmem:[#allocation2 + $0xe] sm:$0xff]  ;;  %v5143_v3 = vpack.i.bf16 %v2420_v28, %v2419_v23  ;;  %2409 = vst.msk [vmem:[#allocation2 + $0x18] sm:$0xff] %vm36_vm0, %v2401_v26 }
 0x555   :  { %v5138_v30 = vpack.i.bf16 %v2416_v32, %v2415_v25  ;;  %5149 = vrot.lane.b32.xlu1 %v5148_v34, %s5599_s23  ;;  %v2435_v51 = vld [vmem:[#allocation2 + $0xb] sm:$0xff] }
 0x556   :  { %5144 = vrot.lane.b32.xlu0 %v5143_v3, %s5601_s27  ;;  %v2431_v45 = vld [vmem:[#allocation2 + $0xa] sm:$0xff] }
 0x557   :  { %5139 = vrot.lane.b32.xlu2 %v5138_v30, %s5598_s22  ;;  %v2386_v17 = vpop.f32.mrf.mxu3  ;;  %v2427_v46 = vld [vmem:[#allocation2 + $0x9] sm:$0xff] }
 0x558   :  { %v2387_v39 = vadd.f32 %v6438_v11, %v2386_v17  ;;  %v2439_v38 = vld [vmem:[#allocation2 + $0xc] sm:$0xff]  ;;  %v4394_v17 = vld [vmem:[%s6972_s1 + $0x138] sm:$0xff] }
 0x559   :  { %4412 = vmatpush.bf16.msrb.mxu2 %v4394_v17  ;;  %2833 = vmatpush.bf16.msra.mxu0 %v4394_v17  ;;  %v4389_v17 = vld [vmem:[%s6972_s1 + $0x110] sm:$0xff] }
 0x55a   :  { %v2402_v41 = vmax.f32 %v2387_v39, 0.0 }
 0x55b   :  { %v2436_v47 = vld [vmem:[#allocation2 + $0x13] sm:$0xff] }
 0x55c   :  { %v2432_v49 = vld [vmem:[#allocation2 + $0x12] sm:$0xff]  ;;  %2410 = vst.msk [vmem:[#allocation2 + $0x20] sm:$0xff] %vm36_vm0, %v2402_v41  ;;  %v5163_v53 = vpack.i.bf16 %v2436_v47, %v2435_v51 }
 0x55d   :  { %v2428_v36 = vld [vmem:[#allocation2 + $0x11] sm:$0xff]  ;;  %v5158_v50 = vpack.i.bf16 %v2432_v49, %v2431_v45 }
 0x55e   :  { %v5153_v55 = vpack.i.bf16 %v2428_v36, %v2427_v46  ;;  %5164 = vrot.lane.b32.xlu1 %v5163_v53, %s5603_s10  ;;  %v2421_v58 = vld [vmem:[#allocation2 + $0x17] sm:$0xff] }
 0x55f   :  { %5159 = vrot.lane.b32.xlu0 %v5158_v50, %s5600_s26  ;;  %v2440_v59 = vld [vmem:[#allocation2 + $0x14] sm:$0xff] }
 0x560   :  { %5154 = vrot.lane.b32.xlu2 %v5153_v55, %s5602_s28  ;;  %v2389_v44 = vpop.f32.mrf.mxu3  ;;  %v2417_v31 = vld [vmem:[#allocation2 + $0x16] sm:$0xff]  ;;  %v5168_v0 = vpack.i.bf16 %v2440_v59, %v2439_v38 }
 0x561   :  { %v2390_v57 = vadd.f32 %v6438_v11, %v2389_v44  ;;  %v2425_v1 = vld [vmem:[#allocation2 + $0x18] sm:$0xff]  ;;  %v4393_v50 = vld [vmem:[%s6972_s1 + $0x130] sm:$0xff] }
 0x562   :  { %4413 = vmatpush.bf16.msrb.mxu2 %v4393_v50  ;;  %2834 = vmatpush.bf16.msra.mxu0 %v4393_v50 }
 0x563   :  { %v2403_v60 = vmax.f32 %v2390_v57, 0.0  ;;  %v2422_v12 = vld [vmem:[#allocation2 + $0x1f] sm:$0xff] }
 0x564   :  { %v2418_v61 = vld [vmem:[#allocation2 + $0x1e] sm:$0xff]  ;;  %v5178_v62 = vpack.i.bf16 %v2422_v12, %v2421_v58 }
 0x565   :  { %v5173_v63 = vpack.i.bf16 %v2418_v61, %v2417_v31  ;;  %2583 = vst.msk [vmem:[#allocation2 + $0x38] sm:$0xff] %vm36_vm0, %v2403_v60  ;;  %v2433_v7 = vld [vmem:[#allocation2 + $0x1a] sm:$0xff]  ;;  %v2434_v8 = vld [vmem:[#allocation2 + $0x22] sm:$0xff] }
 0x566   :  { %5179 = vrot.lane.b32.xlu1 %v5178_v62, %s5601_s27  ;;  %v2429_v10 = vld [vmem:[#allocation2 + $0x19] sm:$0xff]  ;;  %v2430_v15 = vld [vmem:[#allocation2 + $0x21] sm:$0xff]  ;;  %v5193_v13 = vpack.i.bf16 %v2434_v8, %v2433_v7 }
 0x567   :  { %5174 = vrot.lane.b32.xlu0 %v5173_v63, %s5598_s22  ;;  %v2426_v40 = vld [vmem:[#allocation2 + $0x20] sm:$0xff]  ;;  %v5188_v18 = vpack.i.bf16 %v2430_v15, %v2429_v10 }
 0x568   :  { %5169 = vrot.lane.b32.xlu2 %v5168_v0, %s5604_s11  ;;  %v2391_v6 = vpop.f32.mrf.mxu3  ;;  %v5183_v19 = vpack.i.bf16 %v2426_v40, %v2425_v1  ;;  %v2441_v4 = vld [vmem:[#allocation2 + $0x1c] sm:$0xff]  ;;  %v2442_v5 = vld [vmem:[#allocation2 + $0x24] sm:$0xff] }
 0x569   :  { %v2392_v9 = vadd.f32 %v6438_v11, %v2391_v6  ;;  %v2437_v23 = vld [vmem:[#allocation2 + $0x1b] sm:$0xff]  ;;  %v2438_v25 = vld [vmem:[#allocation2 + $0x23] sm:$0xff]  ;;  %v5203_v26 = vpack.i.bf16 %v2442_v5, %v2441_v4 }
 0x56a   :  { %v5198_v32 = vpack.i.bf16 %v2438_v25, %v2437_v23  ;;  %v4392_v4 = vld [vmem:[%s6972_s1 + $0x128] sm:$0xff] }
 0x56b   :  { %v2404_v16 = vmax.f32 %v2392_v9, 0.0  ;;  %4414 = vmatpush.bf16.msrb.mxu2 %v4392_v4  ;;  %2835 = vmatpush.bf16.msra.mxu0 %v4392_v4 }
 0x56c   :  { %v2591_v27 = vld [vmem:[#allocation2 + $0x36] sm:$0xff] }
 0x56d   :  { %2584 = vst.msk [vmem:[#allocation2 + $0x40] sm:$0xff] %vm36_vm0, %v2404_v16  ;;  %v2599_v45 = vld [vmem:[#allocation2 + $0x38] sm:$0xff] }
 0x56e   :  { %5194 = vrot.lane.b32.xlu1 %v5193_v13, %s5600_s26  ;;  %v2595_v47 = vld [vmem:[#allocation2 + $0x37] sm:$0xff] }
 0x56f   :  { %5189 = vrot.lane.b32.xlu0 %v5188_v18, %s5602_s28 }
 0x570   :  { %5184 = vrot.lane.b32.xlu2 %v5183_v19, %s5599_s23 }
 0x574   :  { %v2592_v28 = vld [vmem:[#allocation2 + $0x3e] sm:$0xff] }
 0x575   :  { %v5208_v34 = vpack.i.bf16 %v2592_v28, %v2591_v27  ;;  %v2600_v41 = vld [vmem:[#allocation2 + $0x40] sm:$0xff] }
 0x576   :  { %v2394_v3 = vpop.f32.mrf.mxu3  ;;  %v2596_v51 = vld [vmem:[#allocation2 + $0x3f] sm:$0xff]  ;;  %v5218_v46 = vpack.i.bf16 %v2600_v41, %v2599_v45 }
 0x577   :  { %5204 = vrot.lane.b32.xlu0 %v5203_v26, %s5604_s11  ;;  %v2395_v30 = vadd.f32 %v6438_v11, %v2394_v3  ;;  %5209 = vrot.lane.b32.xlu1 %v5208_v34, %s5598_s22  ;;  %v5213_v49 = vpack.i.bf16 %v2596_v51, %v2595_v47  ;;  %v2603_v44 = vld [vmem:[#allocation2 + $0x39] sm:$0xff] }
 0x578   :  { %5199 = vrot.lane.b32.xlu2 %v5198_v32, %s5603_s10  ;;  %v2615_v57 = vld [vmem:[#allocation2 + $0x3c] sm:$0xff] }
 0x579   :  { %v2405_v39 = vmax.f32 %v2395_v30, 0.0  ;;  %v2607_v58 = vld [vmem:[#allocation2 + $0x3a] sm:$0xff] }
 0x57a   :  { %v2611_v63 = vld [vmem:[#allocation2 + $0x3b] sm:$0xff] }
 0x57b   :  { %2585 = vst.msk [vmem:[#allocation2 + $0x48] sm:$0xff] %vm36_vm0, %v2405_v39  ;;  %v4391_v3 = vld [vmem:[%s6972_s1 + $0x120] sm:$0xff]  ;;  %v4390_v30 = vld [vmem:[%s6972_s1 + $0x118] sm:$0xff]  ;;  %v4388_v39 = vld [vmem:[%s6972_s1 + $0x108] sm:$0xff] }
 0x57c   :  { %2836 = vmatpush.bf16.msra.mxu0 %v4391_v3  ;;  %4415 = vmatpush.bf16.msrb.mxu2 %v4391_v3  ;;  %v4387_v51 = vld [vmem:[%s6972_s1 + $0x100] sm:$0xff] }
 0x57e   :  { %v2396_v36 = vpop.f32.mrf.mxu3 }
 0x57f   :  { %5219 = vrot.lane.b32.xlu0 %v5218_v46, %s5599_s23  ;;  %v2397_v53 = vadd.f32 %v6438_v11, %v2396_v36 }
 0x580   :  { %5214 = vrot.lane.b32.xlu2 %v5213_v49, %s5601_s27  ;;  %2837 = vmatpush.bf16.msra.mxu0 %v4390_v30 }
 0x581   :  { %v2406_v55 = vmax.f32 %v2397_v53, 0.0  ;;  %4416 = vmatpush.bf16.msrb.mxu2 %v4390_v30 }
 0x582   :  { %v2604_v59 = vld [vmem:[#allocation2 + $0x41] sm:$0xff] }
 0x583   :  { %v2616_v60 = vld [vmem:[#allocation2 + $0x44] sm:$0xff]  ;;  %2586 = vst.msk [vmem:[#allocation2 + $0x50] sm:$0xff] %vm36_vm0, %v2406_v55  ;;  %v5223_v31 = vpack.i.bf16 %v2604_v59, %v2603_v44 }
 0x584   :  { %v2608_v12 = vld [vmem:[#allocation2 + $0x42] sm:$0xff]  ;;  %v5238_v61 = vpack.i.bf16 %v2616_v60, %v2615_v57  ;;  %2838 = vmatpush.bf16.msra.mxu0 %v4389_v17  ;;  %v2412_v57 = vld [vmem:[#allocation2 + $0xd] sm:$0xff] }
 0x585   :  { %v5228_v11 = vpack.i.bf16 %v2608_v12, %v2607_v58  ;;  %5224 = vrot.lane.b32.xlu1 %v5223_v31, %s5602_s28  ;;  %v2612_v62 = vld [vmem:[#allocation2 + $0x43] sm:$0xff]  ;;  %4417 = vmatpush.bf16.msrb.mxu2 %v4389_v17 }
 0x586   :  { %v2593_v38 = vld [vmem:[#allocation2 + $0x46] sm:$0xff]  ;;  %v5233_v9 = vpack.i.bf16 %v2612_v62, %v2611_v63 }
 0x587   :  { %5239 = vrot.lane.b32.xlu0 %v5238_v61, %s5604_s11  ;;  %v2597_v6 = vld [vmem:[#allocation2 + $0x47] sm:$0xff] }
 0x588   :  { %5229 = vrot.lane.b32.xlu2 %v5228_v11, %s5600_s26  ;;  %v2601_v13 = vld [vmem:[#allocation2 + $0x48] sm:$0xff]  ;;  %2839 = vmatpush.bf16.msra.mxu0 %v4388_v39 }
 0x589   :  { %4418 = vmatpush.bf16.msrb.mxu2 %v4388_v39  ;;  %v2411_v44 = vld [vmem:[#allocation2 + $0x5] sm:$0xff]  ;;  %v2413_v39 = vld [vmem:[#allocation2 + $0x15] sm:$0xff] }
 0x58a   :  { %v2594_v0 = vld [vmem:[#allocation2 + $0x4e] sm:$0xff] }
 0x58b   :  { %v2598_v7 = vld [vmem:[#allocation2 + $0x4f] sm:$0xff]  ;;  %v5243_v8 = vpack.i.bf16 %v2594_v0, %v2593_v38 }
 0x58c   :  { %v5248_v10 = vpack.i.bf16 %v2598_v7, %v2597_v6  ;;  %v2602_v15 = vld [vmem:[#allocation2 + $0x50] sm:$0xff]  ;;  %2840 = vmatpush.bf16.msra.mxu0 %v4387_v51 }
 0x58d   :  { %5234 = vrot.lane.b32.xlu1 %v5233_v9, %s5603_s10  ;;  %v2609_v40 = vld [vmem:[#allocation2 + $0x4a] sm:$0xff]  ;;  %v2610_v16 = vld [vmem:[#allocation2 + $0x52] sm:$0xff]  ;;  %v5253_v19 = vpack.i.bf16 %v2602_v15, %v2601_v13  ;;  %4419 = vmatpush.bf16.msrb.mxu2 %v4387_v51 }
 0x58e   :  { %v2605_v18 = vld [vmem:[#allocation2 + $0x49] sm:$0xff]  ;;  %v2606_v1 = vld [vmem:[#allocation2 + $0x51] sm:$0xff]  ;;  %v5263_v5 = vpack.i.bf16 %v2610_v16, %v2609_v40 }
 0x58f   :  { %5244 = vrot.lane.b32.xlu0 %v5243_v8, %s5598_s22  ;;  %v5258_v23 = vpack.i.bf16 %v2606_v1, %v2605_v18  ;;  %v2613_v25 = vld [vmem:[#allocation2 + $0x4b] sm:$0xff]  ;;  %v2614_v26 = vld [vmem:[#allocation2 + $0x53] sm:$0xff] }
 0x590   :  { %5249 = vrot.lane.b32.xlu2 %v5248_v10, %s5601_s27  ;;  %v2617_v27 = vld [vmem:[#allocation2 + $0x4c] sm:$0xff]  ;;  %v2618_v28 = vld [vmem:[#allocation2 + $0x54] sm:$0xff]  ;;  %v5268_v32 = vpack.i.bf16 %v2614_v26, %v2613_v25 }
 0x591   :  { %v5273_v34 = vpack.i.bf16 %v2618_v28, %v2617_v27 }
 0x595   :  { %5254 = vrot.lane.b32.xlu1 %v5253_v19, %s5599_s23 }
 0x597   :  { %5264 = vrot.lane.b32.xlu0 %v5263_v5, %s5600_s26 }
 0x598   :  { %5259 = vrot.lane.b32.xlu2 %v5258_v23, %s5602_s28 }
 0x59d   :  { %5269 = vrot.lane.b32.xlu1 %v5268_v32, %s5603_s10 }
 0x5a0   :  { %5274 = vrot.lane.b32.xlu2 %v5273_v34, %s5604_s11 }
 0x5b1   :  { %v5140_v41 = vpop.permute.xlu2 %5139 }
 0x5b2   :  { %v5142_v46 = vunpack.i.h.bf16 %v5140_v41  ;;  %v5141_v47 = vunpack.i.l.bf16 %v5140_v41  ;;  %v2414_v41 = vld [vmem:[#allocation2 + $0x1d] sm:$0xff] }
 0x5b4   :  { %v2555_v58 = vsel %vm36_vm0, %v2411_v44, %v5141_v47  ;;  %v2556_v59 = vsel %vm36_vm0, %v2412_v57, %v5142_v46 }
 0x5ba   :  { %v5155_v45 = vpop.permute.xlu2 %5154 }
 0x5bb   :  { %v5157_v63 = vunpack.i.h.bf16 %v5155_v45  ;;  %v5156_v38 = vunpack.i.l.bf16 %v5155_v45 }
 0x5c2   :  { %v5170_v53 = vpop.permute.xlu2 %5169 }
 0x5c3   :  { %v5172_v13 = vunpack.i.h.bf16 %v5170_v53  ;;  %v5171_v18 = vunpack.i.l.bf16 %v5170_v53 }
 0x5c7   :  { %v5150_v49 = vpop.permute.xlu1 %5149 }
 0x5c8   :  { %v5145_v36 = vpop.permute.xlu0 %5144  ;;  %v5152_v60 = vunpack.i.h.bf16 %v5150_v49  ;;  %v5151_v12 = vunpack.i.l.bf16 %v5150_v49 }
 0x5c9   :  { %v5147_v50 = vunpack.i.h.bf16 %v5145_v36  ;;  %v5146_v55 = vunpack.i.l.bf16 %v5145_v36 }
 0x5ca   :  { %v5185_v15 = vpop.permute.xlu2 %5184 }
 0x5cb   :  { %v2559_v31 = vsel %vm201_vm1, %v2555_v58, %v5146_v55  ;;  %v2560_v61 = vsel %vm201_vm1, %v2556_v59, %v5147_v50  ;;  %v5187_v53 = vunpack.i.h.bf16 %v5185_v15  ;;  %v5186_v50 = vunpack.i.l.bf16 %v5185_v15 }
 0x5cc   :  { %v2563_v11 = vsel %vm206_vm2, %v2559_v31, %v5151_v12  ;;  %v2564_v62 = vsel %vm206_vm2, %v2560_v61, %v5152_v60 }
 0x5cd   :  { %v2567_v40 = vsel %vm211_vm3, %v2563_v11, %v5156_v38  ;;  %v2568_v16 = vsel %vm211_vm3, %v2564_v62, %v5157_v63 }
 0x5d0   :  { %v5165_v0 = vpop.permute.xlu1 %5164 }
 0x5d1   :  { %v5160_v6 = vpop.permute.xlu0 %5159  ;;  %v5167_v7 = vunpack.i.h.bf16 %v5165_v0  ;;  %v5166_v9 = vunpack.i.l.bf16 %v5165_v0 }
 0x5d2   :  { %v5162_v8 = vunpack.i.h.bf16 %v5160_v6  ;;  %v5161_v10 = vunpack.i.l.bf16 %v5160_v6  ;;  %v5200_v3 = vpop.permute.xlu2 %5199 }
 0x5d3   :  { %v5202_v63 = vunpack.i.h.bf16 %v5200_v3  ;;  %v5201_v38 = vunpack.i.l.bf16 %v5200_v3 }
 0x5d4   :  { %v2571_v1 = vsel %vm216_vm4, %v2567_v40, %v5161_v10  ;;  %v2572_v19 = vsel %vm216_vm4, %v2568_v16, %v5162_v8 }
 0x5d5   :  { %v2575_v4 = vsel %vm221_vm5, %v2571_v1, %v5166_v9  ;;  %v2576_v5 = vsel %vm221_vm5, %v2572_v19, %v5167_v7 }
 0x5d6   :  { %v2579_v23 = vsel %vm226_vm6, %v2575_v4, %v5171_v18  ;;  %v2580_v25 = vsel %vm226_vm6, %v2576_v5, %v5172_v13  ;;  %v2587_v5 = vld [vmem:[#allocation2 + $0x35] sm:$0xff] }
 0x5d7   :  { %v2759_v26 = vpack.c.bf16 %v2580_v25, %v2579_v23  ;;  %v2588_v23 = vld [vmem:[#allocation2 + $0x3d] sm:$0xff] }
 0x5d8   :  { %v5180_v27 = vpop.permute.xlu1 %5179 }
 0x5d9   :  { %v5175_v28 = vpop.permute.xlu0 %5174  ;;  %2841 = vmatmul.bf16.vlgmr.msra.gmra.mxu0 %v2759_v26  ;;  %v5182_v30 = vunpack.i.h.bf16 %v5180_v27  ;;  %v5181_v17 = vunpack.i.l.bf16 %v5180_v27 }
 0x5da   :  { %v5177_v32 = vunpack.i.h.bf16 %v5175_v28  ;;  %v5176_v34 = vunpack.i.l.bf16 %v5175_v28  ;;  %v5215_v61 = vpop.permute.xlu2 %5214 }
 0x5db   :  { %v5216_v3 = vunpack.i.l.bf16 %v5215_v61 }
 0x5dc   :  { %v2558_v51 = vsel %vm36_vm0, %v2414_v41, %v5177_v32  ;;  %v2557_v45 = vsel %vm36_vm0, %v2413_v39, %v5176_v34  ;;  %v5217_v34 = vunpack.i.h.bf16 %v5215_v61 }
 0x5dd   :  { %v2562_v46 = vsel %vm201_vm1, %v2558_v51, %v5182_v30  ;;  %v2561_v47 = vsel %vm201_vm1, %v2557_v45, %v5181_v17 }
 0x5de   :  { %v2565_v59 = vsel %vm206_vm2, %v2561_v47, %v5186_v50  ;;  %v2566_v60 = vsel %vm206_vm2, %v2562_v46, %v5187_v53 }
 0x5e0   :  { %v5195_v49 = vpop.permute.xlu1 %5194 }
 0x5e1   :  { %v5190_v36 = vpop.permute.xlu0 %5189  ;;  %v5197_v57 = vunpack.i.h.bf16 %v5195_v49  ;;  %v5196_v58 = vunpack.i.l.bf16 %v5195_v49 }
 0x5e2   :  { %v5192_v55 = vunpack.i.h.bf16 %v5190_v36  ;;  %v5191_v44 = vunpack.i.l.bf16 %v5190_v36  ;;  %v5230_v13 = vpop.permute.xlu2 %5229 }
 0x5e3   :  { %v5232_v36 = vunpack.i.h.bf16 %v5230_v13  ;;  %v5231_v53 = vunpack.i.l.bf16 %v5230_v13 }
 0x5e4   :  { %v2569_v12 = vsel %vm211_vm3, %v2565_v59, %v5191_v44  ;;  %v2570_v31 = vsel %vm211_vm3, %v2566_v60, %v5192_v55 }
 0x5e5   :  { %v2573_v11 = vsel %vm216_vm4, %v2569_v12, %v5196_v58  ;;  %v2574_v62 = vsel %vm216_vm4, %v2570_v31, %v5197_v57 }
 0x5e6   :  { %v2577_v9 = vsel %vm221_vm5, %v2573_v11, %v5201_v38  ;;  %v2578_v8 = vsel %vm221_vm5, %v2574_v62, %v5202_v63 }
 0x5e9   :  { %v5205_v0 = vpop.permute.xlu0 %5204  ;;  %v5210_v16 = vpop.permute.xlu1 %5209 }
 0x5ea   :  { %v5207_v6 = vunpack.i.h.bf16 %v5205_v0  ;;  %v5206_v7 = vunpack.i.l.bf16 %v5205_v0  ;;  %v5212_v1 = vunpack.i.h.bf16 %v5210_v16  ;;  %v5211_v19 = vunpack.i.l.bf16 %v5210_v16  ;;  %v5250_v30 = vpop.permute.xlu2 %5249 }
 0x5eb   :  { %v5251_v16 = vunpack.i.l.bf16 %v5250_v30 }
 0x5ec   :  { %v2581_v10 = vsel %vm226_vm6, %v2577_v9, %v5206_v7  ;;  %v2582_v15 = vsel %vm226_vm6, %v2578_v8, %v5207_v6  ;;  %v2732_v26 = vsel %vm36_vm0, %v2588_v23, %v5212_v1  ;;  %v2731_v27 = vsel %vm36_vm0, %v2587_v5, %v5211_v19  ;;  %v2589_v7 = vld [vmem:[#allocation2 + $0x45] sm:$0xff]  ;;  %v2590_v9 = vld [vmem:[#allocation2 + $0x4d] sm:$0xff] }
 0x5ed   :  { %v2760_v40 = vpack.c.bf16 %v2582_v15, %v2581_v10  ;;  %v2735_v41 = vsel %vm201_vm1, %v2731_v27, %v5216_v3  ;;  %v2736_v51 = vsel %vm201_vm1, %v2732_v26, %v5217_v34 }
 0x5ef   :  { %2846 = vmatmul.bf16.gmra.mxu0 %v2760_v40  ;;  %v5252_v40 = vunpack.i.h.bf16 %v5250_v30 }
 0x5f1   :  { %v5220_v18 = vpop.permute.xlu0 %5219 }
 0x5f2   :  { %v5222_v28 = vunpack.i.h.bf16 %v5220_v18  ;;  %v5221_v32 = vunpack.i.l.bf16 %v5220_v18  ;;  %v5260_v0 = vpop.permute.xlu2 %5259 }
 0x5f3   :  { %v5261_v26 = vunpack.i.l.bf16 %v5260_v0 }
 0x5f4   :  { %v2739_v45 = vsel %vm206_vm2, %v2735_v41, %v5221_v32  ;;  %v2740_v46 = vsel %vm206_vm2, %v2736_v51, %v5222_v28 }
 0x5f7   :  { %v5225_v4 = vpop.permute.xlu1 %5224 }
 0x5f8   :  { %v5227_v17 = vunpack.i.h.bf16 %v5225_v4  ;;  %v5226_v39 = vunpack.i.l.bf16 %v5225_v4 }
 0x5f9   :  { %v5240_v25 = vpop.permute.xlu0 %5239 }
 0x5fa   :  { %v2743_v47 = vsel %vm211_vm3, %v2739_v45, %v5226_v39  ;;  %v2744_v49 = vsel %vm211_vm3, %v2740_v46, %v5227_v17  ;;  %v5242_v58 = vunpack.i.h.bf16 %v5240_v25  ;;  %v5241_v59 = vunpack.i.l.bf16 %v5240_v25  ;;  %v5275_v32 = vpop.permute.xlu2 %5274 }
 0x5fb   :  { %v2747_v60 = vsel %vm216_vm4, %v2743_v47, %v5231_v53  ;;  %v2748_v12 = vsel %vm216_vm4, %v2744_v49, %v5232_v36  ;;  %v5262_v25 = vunpack.i.h.bf16 %v5260_v0  ;;  %v5277_v41 = vunpack.i.h.bf16 %v5275_v32 }
 0x5fc   :  { %v5276_v51 = vunpack.i.l.bf16 %v5275_v32 }
 0x5ff   :  { %v5235_v50 = vpop.permute.xlu1 %5234 }
 0x600   :  { %v5237_v55 = vunpack.i.h.bf16 %v5235_v50  ;;  %v5236_v44 = vunpack.i.l.bf16 %v5235_v50 }
 0x601   :  { %v5245_v57 = vpop.permute.xlu0 %5244 }
 0x602   :  { %v2751_v31 = vsel %vm221_vm5, %v2747_v60, %v5236_v44  ;;  %v2752_v61 = vsel %vm221_vm5, %v2748_v12, %v5237_v55  ;;  %v5247_v11 = vunpack.i.h.bf16 %v5245_v57  ;;  %v5246_v62 = vunpack.i.l.bf16 %v5245_v57  ;;  %v6567_v55 = vld [vmem:[%s6974_s3 + $0x4] ss:$0 sm:$0xff] }
 0x603   :  { %v2755_v63 = vsel %vm226_vm6, %v2751_v31, %v5241_v59  ;;  %v2756_v38 = vsel %vm226_vm6, %v2752_v61, %v5242_v58 }
 0x604   :  { %v2761_v6 = vpack.c.bf16 %v2756_v38, %v2755_v63  ;;  %v2734_v8 = vsel %vm36_vm0, %v2590_v9, %v5247_v11  ;;  %v2733_v10 = vsel %vm36_vm0, %v2589_v7, %v5246_v62 }
 0x605   :  { %v2737_v1 = vsel %vm201_vm1, %v2733_v10, %v5251_v16  ;;  %v2738_v19 = vsel %vm201_vm1, %v2734_v8, %v5252_v40 }
 0x606   :  { %2851 = vmatmul.bf16.gmra.mxu0 %v2761_v6 }
 0x607   :  { %v5255_v15 = vpop.permute.xlu1 %5254 }
 0x608   :  { %v5257_v13 = vunpack.i.h.bf16 %v5255_v15  ;;  %v5256_v18 = vunpack.i.l.bf16 %v5255_v15 }
 0x609   :  { %v5265_v4 = vpop.permute.xlu0 %5264 }
 0x60a   :  { %v2741_v5 = vsel %vm206_vm2, %v2737_v1, %v5256_v18  ;;  %v2742_v23 = vsel %vm206_vm2, %v2738_v19, %v5257_v13  ;;  %v5267_v27 = vunpack.i.h.bf16 %v5265_v4  ;;  %v5266_v28 = vunpack.i.l.bf16 %v5265_v4 }
 0x60b   :  { %v2745_v34 = vsel %vm211_vm3, %v2741_v5, %v5261_v26  ;;  %v2746_v3 = vsel %vm211_vm3, %v2742_v23, %v5262_v25 }
 0x60c   :  { %v2749_v45 = vsel %vm216_vm4, %v2745_v34, %v5266_v28  ;;  %v2750_v46 = vsel %vm216_vm4, %v2746_v3, %v5267_v27 }
 0x60f   :  { %v5270_v30 = vpop.permute.xlu1 %5269 }
 0x610   :  { %v5272_v17 = vunpack.i.h.bf16 %v5270_v30  ;;  %v5271_v39 = vunpack.i.l.bf16 %v5270_v30 }
 0x612   :  { %v2753_v47 = vsel %vm221_vm5, %v2749_v45, %v5271_v39  ;;  %v2754_v49 = vsel %vm221_vm5, %v2750_v46, %v5272_v17 }
 0x613   :  { %v2757_v36 = vsel %vm226_vm6, %v2753_v47, %v5276_v51  ;;  %v2758_v53 = vsel %vm226_vm6, %v2754_v49, %v5277_v41 }
 0x614   :  { %v2762_v50 = vpack.c.bf16 %v2758_v53, %v2757_v36 }
 0x616   :  { %2856 = vmatmul.bf16.vlgmr.msrb.gmra.mxu2 %v2762_v50 }
 0x656   :  { %v2842_v44 = vpop.f32.mrf.mxu0 }
 0x657   :  { %v2843_v57 = vadd.f32 %v6567_v55, %v2842_v44 }
 0x659   :  { %v2862_v58 = vmax.f32 %v2843_v57, 0.0 }
 0x65b   :  { %2870 = vst.msk [vmem:[#allocation2 + $0x8] sm:$0xff] %vm36_vm0, %v2862_v58 }
 0x65e   :  { %v2844_v59 = vpop.f32.mrf.mxu0 }
 0x65f   :  { %v2845_v60 = vadd.f32 %v6567_v55, %v2844_v59 }
 0x661   :  { %v2863_v12 = vmax.f32 %v2845_v60, 0.0 }
 0x662   :  { %v2886_v31 = vld [vmem:[#allocation2 + $0x8] sm:$0xff] }
 0x663   :  { %2871 = vst.msk [vmem:[#allocation2 + $0x10] sm:$0xff] %vm36_vm0, %v2863_v12  ;;  %v2882_v61 = vld [vmem:[#allocation2 + $0x7] sm:$0xff] }
 0x664   :  { %v2878_v11 = vld [vmem:[#allocation2 + $0x6] sm:$0xff] }
 0x665   :  { %v6573_v16 = vld [vmem:[#allocation2 + $0x5] sm:$0xff] }
 0x66a   :  { %v2887_v62 = vld [vmem:[#allocation2 + $0x10] sm:$0xff] }
 0x66b   :  { %v2883_v63 = vld [vmem:[#allocation2 + $0xf] sm:$0xff]  ;;  %v5288_v0 = vpack.i.bf16 %v2887_v62, %v2886_v31 }
 0x66c   :  { %v2879_v38 = vld [vmem:[#allocation2 + $0xe] sm:$0xff]  ;;  %v5283_v6 = vpack.i.bf16 %v2883_v63, %v2882_v61  ;;  %v2847_v15 = vpop.f32.mrf.mxu0 }
 0x66d   :  { %v5278_v7 = vpack.i.bf16 %v2879_v38, %v2878_v11  ;;  %v2898_v9 = vld [vmem:[#allocation2 + $0xb] sm:$0xff]  ;;  %v2848_v18 = vadd.f32 %v6567_v55, %v2847_v15  ;;  %5289 = vrot.lane.b32.xlu2 %v5288_v0, %s5599_s23 }
 0x66e   :  { %v2894_v8 = vld [vmem:[#allocation2 + $0xa] sm:$0xff]  ;;  %5284 = vrot.lane.b32.xlu1 %v5283_v6, %s5601_s27 }
 0x66f   :  { %v2890_v10 = vld [vmem:[#allocation2 + $0x9] sm:$0xff]  ;;  %5279 = vrot.lane.b32.xlu0 %v5278_v7, %s5598_s22  ;;  %v2864_v1 = vmax.f32 %v2848_v18, 0.0 }
 0x670   :  { %v2902_v40 = vld [vmem:[#allocation2 + $0xc] sm:$0xff] }
 0x671   :  { %v6575_v13 = vld [vmem:[#allocation2 + $0xd] sm:$0xff]  ;;  %2872 = vst.msk [vmem:[#allocation2 + $0x18] sm:$0xff] %vm36_vm0, %v2864_v1 }
 0x672   :  { %3230 = vst.msk [vmem:[#allocation2 + $0x8] sm:$0xff] %vm36_vm0, %v1936_v35 }
 0x674   :  { %v2849_v19 = vpop.f32.mrf.mxu0 }
 0x675   :  { %v2850_v4 = vadd.f32 %v6567_v55, %v2849_v19 }
 0x677   :  { %v2865_v5 = vmax.f32 %v2850_v4, 0.0 }
 0x678   :  { %v2899_v23 = vld [vmem:[#allocation2 + $0x13] sm:$0xff] }
 0x679   :  { %v2895_v25 = vld [vmem:[#allocation2 + $0x12] sm:$0xff]  ;;  %2873 = vst.msk [vmem:[#allocation2 + $0x20] sm:$0xff] %vm36_vm0, %v2865_v5  ;;  %v5303_v27 = vpack.i.bf16 %v2899_v23, %v2898_v9  ;;  %v3242_v56 = vld [vmem:[#allocation2 + $0x7] sm:$0xff] }
 0x67a   :  { %v2891_v26 = vld [vmem:[#allocation2 + $0x11] sm:$0xff]  ;;  %v5298_v28 = vpack.i.bf16 %v2895_v25, %v2894_v8  ;;  %v3246_v6 = vld [vmem:[#allocation2 + $0x8] sm:$0xff] }
 0x67b   :  { %v5293_v32 = vpack.i.bf16 %v2891_v26, %v2890_v10  ;;  %v2884_v43 = vld [vmem:[#allocation2 + $0x17] sm:$0xff]  ;;  %5304 = vrot.lane.b32.xlu2 %v5303_v27, %s5603_s10  ;;  %v3238_v8 = vld [vmem:[#allocation2 + $0x6] sm:$0xff] }
 0x67c   :  { %v2880_v34 = vld [vmem:[#allocation2 + $0x16] sm:$0xff]  ;;  %5299 = vrot.lane.b32.xlu1 %v5298_v28, %s5600_s26 }
 0x67d   :  { %v2903_v35 = vld [vmem:[#allocation2 + $0x14] sm:$0xff]  ;;  %5294 = vrot.lane.b32.xlu0 %v5293_v32, %s5602_s28 }
 0x67e   :  { %v6587_v3 = vld [vmem:[#allocation2 + $0x15] sm:$0xff]  ;;  %v5308_v49 = vpack.i.bf16 %v2903_v35, %v2902_v40 }
 0x67f   :  { %3231 = vst.msk [vmem:[#allocation2 + $0x10] sm:$0xff] %vm36_vm0, %v1937_v54  ;;  %v2888_v58 = vld [vmem:[#allocation2 + $0x18] sm:$0xff] }
 0x680   :  { %v6595_v30 = vld [vmem:[#allocation2 + $0x1d] sm:$0xff] }
 0x681   :  { %v2885_v17 = vld [vmem:[#allocation2 + $0x1f] sm:$0xff] }
 0x682   :  { %v2881_v39 = vld [vmem:[#allocation2 + $0x1e] sm:$0xff]  ;;  %v5318_v41 = vpack.i.bf16 %v2885_v17, %v2884_v43 }
 0x683   :  { %v5313_v51 = vpack.i.bf16 %v2881_v39, %v2880_v34  ;;  %v2896_v45 = vld [vmem:[#allocation2 + $0x1a] sm:$0xff]  ;;  %v2897_v46 = vld [vmem:[#allocation2 + $0x22] sm:$0xff]  ;;  %v2852_v57 = vpop.f32.mrf.mxu0 }
 0x684   :  { %v2892_v47 = vld [vmem:[#allocation2 + $0x19] sm:$0xff]  ;;  %v2893_v36 = vld [vmem:[#allocation2 + $0x21] sm:$0xff]  ;;  %5319 = vrot.lane.b32.xlu2 %v5318_v41, %s5601_s27  ;;  %v2853_v59 = vadd.f32 %v6567_v55, %v2852_v57  ;;  %v5333_v12 = vpack.i.bf16 %v2897_v46, %v2896_v45 }
 0x685   :  { %v2889_v53 = vld [vmem:[#allocation2 + $0x20] sm:$0xff]  ;;  %5314 = vrot.lane.b32.xlu1 %v5313_v51, %s5598_s22  ;;  %5309 = vrot.lane.b32.xlu0 %v5308_v49, %s5604_s11  ;;  %v5328_v31 = vpack.i.bf16 %v2893_v36, %v2892_v47 }
 0x686   :  { %v2904_v50 = vld [vmem:[#allocation2 + $0x1c] sm:$0xff]  ;;  %v2905_v29 = vld [vmem:[#allocation2 + $0x24] sm:$0xff]  ;;  %v2866_v60 = vmax.f32 %v2853_v59, 0.0  ;;  %v5323_v61 = vpack.i.bf16 %v2889_v53, %v2888_v58  ;;  %v3243_v11 = vld [vmem:[#allocation2 + $0xf] sm:$0xff] }
 0x687   :  { %v2900_v54 = vld [vmem:[#allocation2 + $0x1b] sm:$0xff]  ;;  %v2901_v44 = vld [vmem:[#allocation2 + $0x23] sm:$0xff]  ;;  %v5353_v63 = vpack.i.bf16 %v3243_v11, %v3242_v56  ;;  %v3239_v0 = vld [vmem:[#allocation2 + $0xe] sm:$0xff] }
 0x688   :  { %3233 = vst.msk [vmem:[#allocation2 + $0x20] sm:$0xff] %vm36_vm0, %v1939_v52  ;;  %v5338_v38 = vpack.i.bf16 %v2901_v44, %v2900_v54  ;;  %v3247_v7 = vld [vmem:[#allocation2 + $0x10] sm:$0xff]  ;;  %v5348_v19 = vpack.i.bf16 %v3239_v0, %v3238_v8 }
 0x689   :  { %3232 = vst.msk [vmem:[#allocation2 + $0x18] sm:$0xff] %vm36_vm0, %v1938_v2  ;;  %v5343_v2 = vpack.i.bf16 %v2905_v29, %v2904_v50  ;;  %v5358_v26 = vpack.i.bf16 %v3247_v7, %v3246_v6  ;;  %v3250_v17 = vld [vmem:[#allocation2 + $0x9] sm:$0xff] }
 0x68a   :  { %3046 = vst.msk [vmem:[#allocation2 + $0x38] sm:$0xff] %vm36_vm0, %v2866_v60 }
 0x68b   :  { %v2854_v48 = vpop.f32.mrf.mxu0 }
 0x68c   :  { %5334 = vrot.lane.b32.xlu2 %v5333_v12, %s5600_s26  ;;  %v2855_v52 = vadd.f32 %v6567_v55, %v2854_v48 }
 0x68d   :  { %5329 = vrot.lane.b32.xlu1 %v5328_v31, %s5602_s28  ;;  %5324 = vrot.lane.b32.xlu0 %v5323_v61, %s5599_s23 }
 0x68e   :  { %v2867_v62 = vmax.f32 %v2855_v52, 0.0 }
 0x690   :  { %3047 = vst.msk [vmem:[#allocation2 + $0x40] sm:$0xff] %vm36_vm0, %v2867_v62  ;;  %v3251_v35 = vld [vmem:[#allocation2 + $0x11] sm:$0xff] }
 0x691   :  { %v3054_v9 = vld [vmem:[#allocation2 + $0x36] sm:$0xff]  ;;  %v5363_v39 = vpack.i.bf16 %v3251_v35, %v3250_v17 }
 0x692   :  { %v3058_v15 = vld [vmem:[#allocation2 + $0x37] sm:$0xff] }
 0x693   :  { %v3062_v5 = vld [vmem:[#allocation2 + $0x38] sm:$0xff] }
 0x694   :  { %5354 = vrot.lane.b32.xlu2 %v5353_v63, %s5601_s27  ;;  %v6616_v28 = vld [vmem:[#allocation2 + $0x35] sm:$0xff] }
 0x695   :  { %5344 = vrot.lane.b32.xlu1 %v5343_v2, %s5604_s11  ;;  %5339 = vrot.lane.b32.xlu0 %v5338_v38, %s5603_s10  ;;  %v3255_v14 = vld [vmem:[#allocation2 + $0x12] sm:$0xff] }
 0x696   :  { %v3263_v8 = vld [vmem:[#allocation2 + $0x14] sm:$0xff] }
 0x697   :  { %v3055_v10 = vld [vmem:[#allocation2 + $0x3e] sm:$0xff] }
 0x698   :  { %v3059_v40 = vld [vmem:[#allocation2 + $0x3f] sm:$0xff]  ;;  %v5368_v1 = vpack.i.bf16 %v3055_v10, %v3054_v9  ;;  %v3254_v9 = vld [vmem:[#allocation2 + $0xa] sm:$0xff]  ;;  %v3244_v17 = vld [vmem:[#allocation2 + $0x17] sm:$0xff] }
 0x699   :  { %v3066_v18 = vld [vmem:[#allocation2 + $0x39] sm:$0xff]  ;;  %v2857_v25 = vpop.f32.mrf.mxu2  ;;  %v5373_v51 = vpack.i.bf16 %v3059_v40, %v3058_v15  ;;  %v4401_v10 = vld [vmem:[%s6973_s2 + $0x70] sm:$0xff]  ;;  %v5433_v15 = vpack.i.bf16 %v3255_v14, %v3254_v9 }
 0x69a   :  { %v3070_v4 = vld [vmem:[#allocation2 + $0x3a] sm:$0xff]  ;;  %v2858_v43 = vadd.f32 %v6567_v55, %v2857_v25 }
 0x69b   :  { %v3078_v23 = vld [vmem:[#allocation2 + $0x3c] sm:$0xff]  ;;  %v3259_v40 = vld [vmem:[#allocation2 + $0x13] sm:$0xff] }
 0x69c   :  { %v3074_v27 = vld [vmem:[#allocation2 + $0x3b] sm:$0xff]  ;;  %5369 = vrot.lane.b32.xlu2 %v5368_v1, %s5598_s22  ;;  %v2868_v34 = vmax.f32 %v2858_v43, 0.0  ;;  %v3258_v1 = vld [vmem:[#allocation2 + $0xb] sm:$0xff] }
 0x69d   :  { %v6618_v32 = vld [vmem:[#allocation2 + $0x3d] sm:$0xff]  ;;  %5349 = vrot.lane.b32.xlu1 %v5348_v19, %s5598_s22  ;;  %5359 = vrot.lane.b32.xlu0 %v5358_v26, %s5599_s23 }
 0x69e   :  { %3406 = vst.msk [vmem:[#allocation2 + $0x38] sm:$0xff] %vm36_vm0, %v1940_v33  ;;  %v3063_v24 = vld [vmem:[#allocation2 + $0x40] sm:$0xff] }
 0x69f   :  { %3048 = vst.msk [vmem:[#allocation2 + $0x48] sm:$0xff] %vm36_vm0, %v2868_v34  ;;  %v3241_v25 = vld [vmem:[#allocation2 + $0x1e] sm:$0xff] }
 0x6a0   :  { %v3249_v43 = vld [vmem:[#allocation2 + $0x20] sm:$0xff] }
 0x6a1   :  { %v2859_v41 = vpop.f32.mrf.mxu2  ;;  %v4399_v34 = vld [vmem:[%s6973_s2 + $0x60] sm:$0xff] }
 0x6a2   :  { %v2860_v45 = vadd.f32 %v6567_v55, %v2859_v41  ;;  %v5378_v55 = vpack.i.bf16 %v3063_v24, %v3062_v5  ;;  %v4400_v5 = vld [vmem:[%s6973_s2 + $0x68] sm:$0xff] }
 0x6a3   :  { %v3253_v24 = vld [vmem:[#allocation2 + $0x21] sm:$0xff] }
 0x6a4   :  { %v2869_v46 = vmax.f32 %v2860_v45, 0.0  ;;  %v4398_v45 = vld [vmem:[%s6973_s2 + $0x58] sm:$0xff] }
 0x6a5   :  { %5364 = vrot.lane.b32.xlu1 %v5363_v39, %s5602_s28  ;;  %5374 = vrot.lane.b32.xlu0 %v5373_v51, %s5601_s27  ;;  %v3245_v39 = vld [vmem:[#allocation2 + $0x1f] sm:$0xff] }
 0x6a6   :  { %v3067_v47 = vld [vmem:[#allocation2 + $0x41] sm:$0xff]  ;;  %3049 = vst.msk [vmem:[#allocation2 + $0x50] sm:$0xff] %vm36_vm0, %v2869_v46  ;;  %v5458_v51 = vpack.i.bf16 %v3245_v39, %v3244_v17  ;;  %v3252_v46 = vld [vmem:[#allocation2 + $0x19] sm:$0xff] }
 0x6a7   :  { %v3071_v33 = vld [vmem:[#allocation2 + $0x42] sm:$0xff]  ;;  %v5383_v36 = vpack.i.bf16 %v3067_v47, %v3066_v18  ;;  %v3262_v18 = vld [vmem:[#allocation2 + $0xc] sm:$0xff]  ;;  %v3422_v9 = vld [vmem:[#allocation2 + $0x38] sm:$0xff] }
 0x6a8   :  { %v3079_v49 = vld [vmem:[#allocation2 + $0x44] sm:$0xff]  ;;  %v5388_v44 = vpack.i.bf16 %v3071_v33, %v3070_v4  ;;  %v5448_v19 = vpack.i.bf16 %v3263_v8, %v3262_v18  ;;  %v5443_v4 = vpack.i.bf16 %v3259_v40, %v3258_v1  ;;  %v3260_v33 = vld [vmem:[#allocation2 + $0x1b] sm:$0xff] }
 0x6a9   :  { %v3056_v53 = vld [vmem:[#allocation2 + $0x46] sm:$0xff]  ;;  %5384 = vrot.lane.b32.xlu2 %v5383_v36, %s5602_s28  ;;  %v5398_v58 = vpack.i.bf16 %v3079_v49, %v3078_v23  ;;  %v3240_v23 = vld [vmem:[#allocation2 + $0x16] sm:$0xff] }
 0x6aa   :  { %v3075_v50 = vld [vmem:[#allocation2 + $0x43] sm:$0xff]  ;;  %v5453_v35 = vpack.i.bf16 %v3241_v25, %v3240_v23  ;;  %v4397_v36 = vld [vmem:[%s6973_s2 + $0x50] sm:$0xff] }
 0x6ab   :  { %v3060_v29 = vld [vmem:[#allocation2 + $0x47] sm:$0xff]  ;;  %v5393_v11 = vpack.i.bf16 %v3075_v50, %v3074_v27  ;;  %v3248_v27 = vld [vmem:[#allocation2 + $0x18] sm:$0xff] }
 0x6ac   :  { %v6632_v54 = vld [vmem:[#allocation2 + $0x45] sm:$0xff]  ;;  %v5463_v41 = vpack.i.bf16 %v3249_v43, %v3248_v27  ;;  %v3256_v50 = vld [vmem:[#allocation2 + $0x1a] sm:$0xff] }
 0x6ad   :  { %3407 = vst.msk [vmem:[#allocation2 + $0x40] sm:$0xff] %vm36_vm0, %v1941_v42  ;;  %5379 = vrot.lane.b32.xlu1 %v5378_v55, %s5599_s23  ;;  %5389 = vrot.lane.b32.xlu0 %v5388_v44, %s5600_s26  ;;  %v3057_v57 = vld [vmem:[#allocation2 + $0x4e] sm:$0xff]  ;;  %v3261_v49 = vld [vmem:[#allocation2 + $0x23] sm:$0xff] }
 0x6ae   :  { %v3065_v59 = vld [vmem:[#allocation2 + $0x50] sm:$0xff]  ;;  %v5403_v56 = vpack.i.bf16 %v3057_v57, %v3056_v53  ;;  %v3064_v2 = vld [vmem:[#allocation2 + $0x48] sm:$0xff]  ;;  %v5468_v53 = vpack.i.bf16 %v3253_v24, %v3252_v46  ;;  %v5478_v55 = vpack.i.bf16 %v3261_v49, %v3260_v33 }
 0x6af   :  { %v3068_v60 = vld [vmem:[#allocation2 + $0x49] sm:$0xff]  ;;  %v3069_v12 = vld [vmem:[#allocation2 + $0x51] sm:$0xff]  ;;  %v5413_v38 = vpack.i.bf16 %v3065_v59, %v3064_v2 }
 0x6b0   :  { %v3061_v31 = vld [vmem:[#allocation2 + $0x4f] sm:$0xff]  ;;  %v5418_v6 = vpack.i.bf16 %v3069_v12, %v3068_v60  ;;  %v3265_v59 = vld [vmem:[#allocation2 + $0x24] sm:$0xff] }
 0x6b1   :  { %v3076_v61 = vld [vmem:[#allocation2 + $0x4b] sm:$0xff]  ;;  %v3077_v48 = vld [vmem:[#allocation2 + $0x53] sm:$0xff]  ;;  %5399 = vrot.lane.b32.xlu2 %v5398_v58, %s5604_s11  ;;  %v5408_v0 = vpack.i.bf16 %v3061_v31, %v3060_v29  ;;  %v3257_v29 = vld [vmem:[#allocation2 + $0x22] sm:$0xff] }
 0x6b2   :  { %v3080_v52 = vld [vmem:[#allocation2 + $0x4c] sm:$0xff]  ;;  %v3081_v37 = vld [vmem:[#allocation2 + $0x54] sm:$0xff]  ;;  %v5428_v7 = vpack.i.bf16 %v3077_v48, %v3076_v61  ;;  %v5473_v44 = vpack.i.bf16 %v3257_v29, %v3256_v50  ;;  %v3264_v58 = vld [vmem:[#allocation2 + $0x1c] sm:$0xff] }
 0x6b3   :  { %v3072_v62 = vld [vmem:[#allocation2 + $0x4a] sm:$0xff]  ;;  %v3073_v42 = vld [vmem:[#allocation2 + $0x52] sm:$0xff]  ;;  %v4395_v31 = vld [vmem:[%s6973_s2 + $0x40] sm:$0xff]  ;;  %v5483_v61 = vpack.i.bf16 %v3265_v59, %v3264_v58 }
 0x6b4   :  { %v6641_v63 = vld [vmem:[#allocation2 + $0x4d] sm:$0xff]  ;;  %v5423_v22 = vpack.i.bf16 %v3073_v42, %v3072_v62  ;;  %v3419_v12 = vld [vmem:[#allocation2 + $0x3f] sm:$0xff] }
 0x6b5   :  { %5394 = vrot.lane.b32.xlu1 %v5393_v11, %s5603_s10  ;;  %3408 = vst.msk [vmem:[#allocation2 + $0x48] sm:$0xff] %vm36_vm0, %v1942_v20  ;;  %5404 = vrot.lane.b32.xlu0 %v5403_v56, %s5598_s22  ;;  %v5438_v20 = vpack.i.bf16 %v3081_v37, %v3080_v52  ;;  %v4396_v57 = vld [vmem:[%s6973_s2 + $0x48] sm:$0xff]  ;;  %v3415_v48 = vld [vmem:[#allocation2 + $0x3e] sm:$0xff]  ;;  %v3414_v11 = vld [vmem:[#allocation2 + $0x36] sm:$0xff] }
 0x6b6   :  { %3409 = vst.msk [vmem:[#allocation2 + $0x50] sm:$0xff] %vm36_vm0, %v1943_v21  ;;  %v4402_v21 = vld [vmem:[%s6973_s2 + $0x78] sm:$0xff]  ;;  %v5488_v62 = vpack.i.bf16 %v3415_v48, %v3414_v11 }
 0x6b7   :  { %3703 = vmatpush.bf16.msrb.mxu1 %v4402_v21  ;;  %4420 = vmatpush.bf16.msrb.mxu3 %v4402_v21  ;;  %v3418_v52 = vld [vmem:[#allocation2 + $0x37] sm:$0xff]  ;;  %v3423_v21 = vld [vmem:[#allocation2 + $0x40] sm:$0xff] }
 0x6b8   :  { %v5493_v37 = vpack.i.bf16 %v3419_v12, %v3418_v52  ;;  %v5498_v40 = vpack.i.bf16 %v3423_v21, %v3422_v9 }
 0x6b9   :  { %5414 = vrot.lane.b32.xlu2 %v5413_v38, %s5599_s23 }
 0x6bb   :  { %3704 = vmatpush.bf16.msrb.mxu1 %v4401_v10  ;;  %4421 = vmatpush.bf16.msrb.mxu3 %v4401_v10 }
 0x6bc   :  { %v3416_v56 = vld [vmem:[#allocation2 + $0x46] sm:$0xff] }
 0x6bd   :  { %5409 = vrot.lane.b32.xlu1 %v5408_v0, %s5601_s27  ;;  %5419 = vrot.lane.b32.xlu0 %v5418_v6, %s5602_s28  ;;  %v3417_v2 = vld [vmem:[#allocation2 + $0x4e] sm:$0xff]  ;;  %v3431_v23 = vld [vmem:[#allocation2 + $0x42] sm:$0xff] }
 0x6be   :  { %v3420_v0 = vld [vmem:[#allocation2 + $0x47] sm:$0xff]  ;;  %v3421_v6 = vld [vmem:[#allocation2 + $0x4f] sm:$0xff]  ;;  %v5503_v14 = vpack.i.bf16 %v3417_v2, %v3416_v56  ;;  %v3434_v2 = vld [vmem:[#allocation2 + $0x3b] sm:$0xff] }
 0x6bf   :  { %3705 = vmatpush.bf16.msrb.mxu1 %v4400_v5  ;;  %4422 = vmatpush.bf16.msrb.mxu3 %v4400_v5  ;;  %v5508_v8 = vpack.i.bf16 %v3421_v6, %v3420_v0  ;;  %v3426_v5 = vld [vmem:[#allocation2 + $0x39] sm:$0xff]  ;;  %v3424_v39 = vld [vmem:[#allocation2 + $0x48] sm:$0xff] }
 0x6c0   :  { %v3428_v29 = vld [vmem:[#allocation2 + $0x49] sm:$0xff]  ;;  %v3433_v52 = vld [vmem:[#allocation2 + $0x52] sm:$0xff] }
 0x6c1   :  { %5429 = vrot.lane.b32.xlu2 %v5428_v7, %s5603_s10  ;;  %v3432_v48 = vld [vmem:[#allocation2 + $0x4a] sm:$0xff] }
 0x6c3   :  { %3706 = vmatpush.bf16.msrb.mxu1 %v4399_v34  ;;  %4423 = vmatpush.bf16.msrb.mxu3 %v4399_v34 }
 0x6c5   :  { %5424 = vrot.lane.b32.xlu1 %v5423_v22, %s5600_s26  ;;  %5439 = vrot.lane.b32.xlu0 %v5438_v20, %s5604_s11 }
 0x6c7   :  { %v6669_v26 = vpop.permute.xlu2 %5289  ;;  %3707 = vmatpush.bf16.msrb.mxu1 %v4398_v45  ;;  %4424 = vmatpush.bf16.msrb.mxu3 %v4398_v45 }
 0x6c9   :  { %5434 = vrot.lane.b32.xlu2 %v5433_v15, %s5600_s26 }
 0x6cb   :  { %3708 = vmatpush.bf16.msrb.mxu1 %v4397_v36  ;;  %4425 = vmatpush.bf16.msrb.mxu3 %v4397_v36 }
 0x6cd   :  { %5449 = vrot.lane.b32.xlu1 %v5448_v19, %s5604_s11  ;;  %5444 = vrot.lane.b32.xlu0 %v5443_v4, %s5603_s10  ;;  %v3427_v19 = vld [vmem:[#allocation2 + $0x41] sm:$0xff] }
 0x6ce   :  { %v5513_v34 = vpack.i.bf16 %v3427_v19, %v3426_v5  ;;  %v3441_v19 = vld [vmem:[#allocation2 + $0x54] sm:$0xff] }
 0x6cf   :  { %3709 = vmatpush.bf16.msrb.mxu1 %v4396_v57  ;;  %4426 = vmatpush.bf16.msrb.mxu3 %v4396_v57 }
 0x6d1   :  { %5454 = vrot.lane.b32.xlu2 %v5453_v35, %s5598_s22  ;;  %v5292_v35 = vunpack.i.h.bf16 %v6669_v26 }
 0x6d3   :  { %3710 = vmatpush.bf16.msrb.mxu1 %v4395_v31  ;;  %4427 = vmatpush.bf16.msrb.mxu3 %v4395_v31 }
 0x6d5   :  { %5464 = vrot.lane.b32.xlu1 %v5463_v41, %s5599_s23  ;;  %5459 = vrot.lane.b32.xlu0 %v5458_v51, %s5601_s27  ;;  %v6680_v47 = vpop.permute.xlu2 %5304  ;;  %v3425_v41 = vld [vmem:[#allocation2 + $0x50] sm:$0xff]  ;;  %v3430_v51 = vld [vmem:[#allocation2 + $0x3a] sm:$0xff] }
 0x6d6   :  { %v5523_v45 = vpack.i.bf16 %v3431_v23, %v3430_v51  ;;  %v5518_v50 = vpack.i.bf16 %v3425_v41, %v3424_v39  ;;  %v5307_v59 = vunpack.i.h.bf16 %v6680_v47  ;;  %v5306_v12 = vunpack.i.l.bf16 %v6680_v47 }
 0x6d7   :  { %v5538_v47 = vpack.i.bf16 %v3433_v52, %v3432_v48 }
 0x6d9   :  { %5469 = vrot.lane.b32.xlu2 %v5468_v53, %s5602_s28 }
 0x6dd   :  { %5479 = vrot.lane.b32.xlu1 %v5478_v55, %s5603_s10  ;;  %5474 = vrot.lane.b32.xlu0 %v5473_v44, %s5600_s26  ;;  %v3429_v55 = vld [vmem:[#allocation2 + $0x51] sm:$0xff] }
 0x6de   :  { %v6691_v60 = vpop.permute.xlu2 %5319 }
 0x6e0   :  { %v5285_v38 = vpop.permute.xlu1 %5284 }
 0x6e1   :  { %5484 = vrot.lane.b32.xlu2 %v5483_v61, %s5604_s11  ;;  %v5280_v42 = vpop.permute.xlu0 %5279  ;;  %v5287_v10 = vunpack.i.h.bf16 %v5285_v38  ;;  %v5286_v15 = vunpack.i.l.bf16 %v5285_v38  ;;  %v3435_v61 = vld [vmem:[#allocation2 + $0x43] sm:$0xff] }
 0x6e2   :  { %v5282_v7 = vunpack.i.h.bf16 %v5280_v42  ;;  %v5281_v22 = vunpack.i.l.bf16 %v5280_v42  ;;  %v5533_v6 = vpack.i.bf16 %v3435_v61, %v3434_v2 }
 0x6e4   :  { %v3018_v18 = vsel %vm36_vm0, %v6573_v16, %v5281_v22  ;;  %v3019_v1 = vsel %vm36_vm0, %v6575_v13, %v5282_v7  ;;  %v5291_v16 = vunpack.i.l.bf16 %v6669_v26 }
 0x6e5   :  { %5494 = vrot.lane.b32.xlu1 %v5493_v37, %s5601_s27  ;;  %5489 = vrot.lane.b32.xlu0 %v5488_v62, %s5598_s22  ;;  %v3022_v25 = vsel %vm201_vm1, %v3018_v18, %v5286_v15  ;;  %v3023_v27 = vsel %vm201_vm1, %v3019_v1, %v5287_v10  ;;  %v5528_v62 = vpack.i.bf16 %v3429_v55, %v3428_v29  ;;  %v3438_v18 = vld [vmem:[#allocation2 + $0x3c] sm:$0xff]  ;;  %v3440_v1 = vld [vmem:[#allocation2 + $0x4c] sm:$0xff] }
 0x6e6   :  { %v6699_v20 = vpop.permute.xlu2 %5334  ;;  %v3026_v33 = vsel %vm206_vm2, %v3022_v25, %v5291_v16  ;;  %v3027_v49 = vsel %vm206_vm2, %v3023_v27, %v5292_v35  ;;  %v5553_v39 = vpack.i.bf16 %v3441_v19, %v3440_v1 }
 0x6e9   :  { %5504 = vrot.lane.b32.xlu2 %v5503_v14, %s5598_s22 }
 0x6ed   :  { %5509 = vrot.lane.b32.xlu1 %v5508_v8, %s5601_s27  ;;  %5499 = vrot.lane.b32.xlu0 %v5498_v40, %s5599_s23  ;;  %v3439_v8 = vld [vmem:[#allocation2 + $0x44] sm:$0xff] }
 0x6ee   :  { %v5300_v4 = vpop.permute.xlu1 %5299  ;;  %v6714_v36 = vpop.permute.xlu2 %5354  ;;  %v5543_v27 = vpack.i.bf16 %v3439_v8, %v3438_v18 }
 0x6ef   :  { %v5295_v43 = vpop.permute.xlu0 %5294  ;;  %v5302_v46 = vunpack.i.h.bf16 %v5300_v4  ;;  %v5301_v24 = vunpack.i.l.bf16 %v5300_v4 }
 0x6f0   :  { %v5297_v17 = vunpack.i.h.bf16 %v5295_v43  ;;  %v5296_v13 = vunpack.i.l.bf16 %v5295_v43  ;;  %v5322_v43 = vunpack.i.h.bf16 %v6691_v60 }
 0x6f1   :  { %5514 = vrot.lane.b32.xlu2 %v5513_v34, %s5602_s28  ;;  %v5321_v34 = vunpack.i.l.bf16 %v6691_v60 }
 0x6f2   :  { %v3030_v53 = vsel %vm211_vm3, %v3026_v33, %v5296_v13  ;;  %v3031_v26 = vsel %vm211_vm3, %v3027_v49, %v5297_v17  ;;  %v3436_v17 = vld [vmem:[#allocation2 + $0x4b] sm:$0xff]  ;;  %v3437_v13 = vld [vmem:[#allocation2 + $0x53] sm:$0xff] }
 0x6f3   :  { %v3034_v44 = vsel %vm216_vm4, %v3030_v53, %v5301_v24  ;;  %v3035_v57 = vsel %vm216_vm4, %v3031_v26, %v5302_v46  ;;  %v5548_v24 = vpack.i.bf16 %v3437_v13, %v3436_v17  ;;  %v5337_v26 = vunpack.i.h.bf16 %v6699_v20 }
 0x6f4   :  { %v3038_v42 = vsel %vm221_vm5, %v3034_v44, %v5306_v12  ;;  %v3039_v56 = vsel %vm221_vm5, %v3035_v57, %v5307_v59 }
 0x6f5   :  { %5524 = vrot.lane.b32.xlu1 %v5523_v45, %s5600_s26  ;;  %5519 = vrot.lane.b32.xlu0 %v5518_v50, %s5599_s23  ;;  %v5336_v50 = vunpack.i.l.bf16 %v6699_v20 }
 0x6f6   :  { %v6730_v9 = vpop.permute.xlu2 %5369 }
 0x6f7   :  { %v5315_v58 = vpop.permute.xlu1 %5314  ;;  %v5310_v31 = vpop.permute.xlu0 %5309 }
 0x6f8   :  { %v5312_v11 = vunpack.i.h.bf16 %v5310_v31  ;;  %v5311_v37 = vunpack.i.l.bf16 %v5310_v31  ;;  %v5317_v7 = vunpack.i.h.bf16 %v5315_v58  ;;  %v5316_v22 = vunpack.i.l.bf16 %v5315_v58 }
 0x6f9   :  { %5529 = vrot.lane.b32.xlu2 %v5528_v62, %s5602_s28 }
 0x6fa   :  { %v3042_v38 = vsel %vm226_vm6, %v3038_v42, %v5311_v37  ;;  %v3043_v0 = vsel %vm226_vm6, %v3039_v56, %v5312_v11  ;;  %v3021_v4 = vsel %vm36_vm0, %v6595_v30, %v5317_v7  ;;  %v3020_v5 = vsel %vm36_vm0, %v6587_v3, %v5316_v22 }
 0x6fb   :  { %v3222_v14 = vpack.c.bf16 %v3042_v38, %v3042_v38  ;;  %v3223_v21 = vpack.c.bf16 %v3043_v0, %v3043_v0  ;;  %v3024_v30 = vsel %vm201_vm1, %v3020_v5, %v5321_v34  ;;  %v3025_v45 = vsel %vm201_vm1, %v3021_v4, %v5322_v43 }
 0x6fc   :  { %v5372_v7 = vunpack.i.h.bf16 %v6730_v9  ;;  %v5371_v22 = vunpack.i.l.bf16 %v6730_v9 }
 0x6fd   :  { %5539 = vrot.lane.b32.xlu1 %v5538_v47, %s5600_s26  ;;  %5534 = vrot.lane.b32.xlu0 %v5533_v6, %s5603_s10  ;;  %v3598_v10 = vunpack.c.l.b16 %v3222_v14  ;;  %v3599_v15 = vunpack.c.l.b16 %v3223_v21 }
 0x6fe   :  { %v3195_v1 = vsel %vm36_vm0, %v6618_v32, %v5372_v7  ;;  %v3194_v19 = vsel %vm36_vm0, %v6616_v28, %v5371_v22  ;;  %v3235_v7 = vld [vmem:[#allocation2 + $0xd] sm:$0xff] }
 0x6ff   :  { %v5330_v40 = vpop.permute.xlu1 %5329  ;;  %v5325_v23 = vpop.permute.xlu0 %5324  ;;  %v3606_v25 = vpack.c.b16 %v3599_v15, %v3598_v10 }
 0x700   :  { %v5327_v35 = vunpack.i.h.bf16 %v5325_v23  ;;  %v5326_v16 = vunpack.i.l.bf16 %v5325_v23  ;;  %v5332_v41 = vunpack.i.h.bf16 %v5330_v40  ;;  %v5331_v51 = vunpack.i.l.bf16 %v5330_v40 }
 0x701   :  { %3711 = vmatmul.bf16.vlgmr.msrb.gmra.mxu1 %v3606_v25  ;;  %5544 = vrot.lane.b32.xlu2 %v5543_v27, %s5604_s11 }
 0x702   :  { %v3029_v3 = vsel %vm206_vm2, %v3025_v45, %v5327_v35  ;;  %v3028_v46 = vsel %vm206_vm2, %v3024_v30, %v5326_v16 }
 0x703   :  { %v5385_v60 = vpop.permute.xlu2 %5384  ;;  %v3033_v33 = vsel %vm211_vm3, %v3029_v3, %v5332_v41  ;;  %v3032_v49 = vsel %vm211_vm3, %v3028_v46, %v5331_v51 }
 0x704   :  { %v3036_v59 = vsel %vm216_vm4, %v3032_v49, %v5336_v50  ;;  %v3037_v12 = vsel %vm216_vm4, %v3033_v33, %v5337_v26  ;;  %v5387_v25 = vunpack.i.h.bf16 %v5385_v60  ;;  %v5386_v27 = vunpack.i.l.bf16 %v5385_v60 }
 0x705   :  { %5554 = vrot.lane.b32.xlu1 %v5553_v39, %s5604_s11  ;;  %5549 = vrot.lane.b32.xlu0 %v5548_v24, %s5603_s10 }
 0x707   :  { %v5345_v53 = vpop.permute.xlu1 %5344  ;;  %v5340_v44 = vpop.permute.xlu0 %5339 }
 0x708   :  { %v5347_v29 = vunpack.i.h.bf16 %v5345_v53  ;;  %v5346_v55 = vunpack.i.l.bf16 %v5345_v53  ;;  %v5342_v57 = vunpack.i.h.bf16 %v5340_v44  ;;  %v5341_v58 = vunpack.i.l.bf16 %v5340_v44 }
 0x70a   :  { %v3040_v31 = vsel %vm221_vm5, %v3036_v59, %v5341_v58  ;;  %v3041_v61 = vsel %vm221_vm5, %v3037_v12, %v5342_v57 }
 0x70b   :  { %v3044_v48 = vsel %vm226_vm6, %v3040_v31, %v5346_v55  ;;  %v3045_v52 = vsel %vm226_vm6, %v3041_v61, %v5347_v29  ;;  %v5400_v11 = vpop.permute.xlu2 %5399 }
 0x70c   :  { %v3224_v37 = vpack.c.bf16 %v3044_v48, %v3044_v48  ;;  %v3225_v20 = vpack.c.bf16 %v3045_v52, %v3045_v52  ;;  %v5402_v41 = vunpack.i.h.bf16 %v5400_v11  ;;  %v5401_v51 = vunpack.i.l.bf16 %v5400_v11 }
 0x70e   :  { %v3600_v42 = vunpack.c.l.b16 %v3224_v37  ;;  %v3601_v56 = vunpack.c.l.b16 %v3225_v20 }
 0x70f   :  { %v6757_v62 = vpop.permute.xlu1 %5349  ;;  %v6759_v2 = vpop.permute.xlu0 %5359 }
 0x710   :  { %v3607_v38 = vpack.c.b16 %v3601_v56, %v3600_v42  ;;  %v5352_v11 = vunpack.i.h.bf16 %v6757_v62  ;;  %v5351_v37 = vunpack.i.l.bf16 %v6757_v62 }
 0x712   :  { %3716 = vmatmul.bf16.gmra.mxu1 %v3607_v38 }
 0x713   :  { %v5415_v0 = vpop.permute.xlu2 %5414 }
 0x714   :  { %v5417_v20 = vunpack.i.h.bf16 %v5415_v0  ;;  %v5416_v42 = vunpack.i.l.bf16 %v5415_v0 }
 0x717   :  { %v6761_v6 = vpop.permute.xlu1 %5364  ;;  %v5375_v47 = vpop.permute.xlu0 %5374 }
 0x718   :  { %v5377_v21 = vunpack.i.h.bf16 %v5375_v47  ;;  %v5376_v8 = vunpack.i.l.bf16 %v5375_v47  ;;  %v3234_v47 = vld [vmem:[#allocation2 + $0x5] sm:$0xff] }
 0x71a   :  { %v3198_v4 = vsel %vm201_vm1, %v3194_v19, %v5376_v8  ;;  %v3199_v5 = vsel %vm201_vm1, %v3195_v1, %v5377_v21  ;;  %v3378_v8 = vsel %vm36_vm0, %v3234_v47, %v5351_v37  ;;  %v3237_v47 = vld [vmem:[#allocation2 + $0x1d] sm:$0xff] }
 0x71b   :  { %v6765_v14 = vpop.permute.xlu2 %5429 }
 0x71c   :  { %v5432_v0 = vunpack.i.h.bf16 %v6765_v14 }
 0x71f   :  { %v5380_v10 = vpop.permute.xlu1 %5379  ;;  %v5390_v15 = vpop.permute.xlu0 %5389 }
 0x720   :  { %v5382_v40 = vunpack.i.h.bf16 %v5380_v10  ;;  %v5381_v18 = vunpack.i.l.bf16 %v5380_v10  ;;  %v5392_v35 = vunpack.i.h.bf16 %v5390_v15  ;;  %v5391_v16 = vunpack.i.l.bf16 %v5390_v15 }
 0x721   :  { %v3379_v10 = vsel %vm36_vm0, %v3235_v7, %v5352_v11 }
 0x722   :  { %v3203_v9 = vsel %vm206_vm2, %v3199_v5, %v5382_v40  ;;  %v3202_v23 = vsel %vm206_vm2, %v3198_v4, %v5381_v18  ;;  %v5431_v18 = vunpack.i.l.bf16 %v6765_v14 }
 0x723   :  { %v3207_v43 = vsel %vm211_vm3, %v3203_v9, %v5387_v25  ;;  %v3206_v34 = vsel %vm211_vm3, %v3202_v23, %v5386_v27  ;;  %v6777_v32 = vpop.permute.xlu2 %5434  ;;  %v5357_v25 = vunpack.i.h.bf16 %v6714_v36  ;;  %v5361_v27 = vunpack.i.l.bf16 %v6759_v2 }
 0x724   :  { %v3210_v30 = vsel %vm216_vm4, %v3206_v34, %v5391_v16  ;;  %v3211_v45 = vsel %vm216_vm4, %v3207_v43, %v5392_v35  ;;  %v5366_v16 = vunpack.i.l.bf16 %v6761_v6 }
 0x727   :  { %v5395_v17 = vpop.permute.xlu1 %5394  ;;  %v5405_v28 = vpop.permute.xlu0 %5404 }
 0x728   :  { %v5397_v13 = vunpack.i.h.bf16 %v5395_v17  ;;  %v5396_v39 = vunpack.i.l.bf16 %v5395_v17  ;;  %v5407_v53 = vunpack.i.h.bf16 %v5405_v28  ;;  %v5406_v26 = vunpack.i.l.bf16 %v5405_v28 }
 0x72a   :  { %v3214_v3 = vsel %vm221_vm5, %v3210_v30, %v5396_v39  ;;  %v3215_v46 = vsel %vm221_vm5, %v3211_v45, %v5397_v13  ;;  %v3197_v31 = vsel %vm36_vm0, %v6641_v63, %v5407_v53  ;;  %v3196_v61 = vsel %vm36_vm0, %v6632_v54, %v5406_v26 }
 0x72b   :  { %v3218_v24 = vsel %vm226_vm6, %v3214_v3, %v5401_v51  ;;  %v3219_v60 = vsel %vm226_vm6, %v3215_v46, %v5402_v41  ;;  %v6785_v59 = vpop.permute.xlu2 %5454  ;;  %v5356_v63 = vunpack.i.l.bf16 %v6714_v36  ;;  %v3383_v13 = vsel %vm201_vm1, %v3379_v10, %v5357_v25 }
 0x72c   :  { %v3226_v33 = vpack.c.bf16 %v3218_v24, %v3218_v24  ;;  %v3227_v49 = vpack.c.bf16 %v3219_v60, %v3219_v60  ;;  %v5367_v36 = vunpack.i.h.bf16 %v6761_v6  ;;  %v5362_v51 = vunpack.i.h.bf16 %v6759_v2 }
 0x72d   :  { %v3382_v35 = vsel %vm201_vm1, %v3378_v8, %v5356_v63  ;;  %v5437_v30 = vunpack.i.h.bf16 %v6777_v32  ;;  %v5436_v45 = vunpack.i.l.bf16 %v6777_v32  ;;  %v3236_v63 = vld [vmem:[#allocation2 + $0x15] sm:$0xff] }
 0x72e   :  { %v3602_v50 = vunpack.c.l.b16 %v3226_v33  ;;  %v3603_v29 = vunpack.c.l.b16 %v3227_v49  ;;  %v3386_v3 = vsel %vm206_vm2, %v3382_v35, %v5361_v27  ;;  %v3387_v33 = vsel %vm206_vm2, %v3383_v13, %v5362_v51 }
 0x72f   :  { %v5410_v55 = vpop.permute.xlu1 %5409  ;;  %v5420_v44 = vpop.permute.xlu0 %5419  ;;  %v3390_v49 = vsel %vm211_vm3, %v3386_v3, %v5366_v16  ;;  %v3391_v6 = vsel %vm211_vm3, %v3387_v33, %v5367_v36 }
 0x730   :  { %v5412_v57 = vunpack.i.h.bf16 %v5410_v55  ;;  %v5411_v58 = vunpack.i.l.bf16 %v5410_v55  ;;  %v3608_v12 = vpack.c.b16 %v3603_v29, %v3602_v50  ;;  %v5422_v54 = vunpack.i.h.bf16 %v5420_v44 }
 0x731   :  { %v5421_v22 = vunpack.i.l.bf16 %v5420_v44  ;;  %v3394_v2 = vsel %vm216_vm4, %v3390_v49, %v5436_v45  ;;  %v3395_v55 = vsel %vm216_vm4, %v3391_v6, %v5437_v30 }
 0x732   :  { %v3201_v48 = vsel %vm201_vm1, %v3197_v31, %v5412_v57  ;;  %v3200_v52 = vsel %vm201_vm1, %v3196_v61, %v5411_v58  ;;  %3721 = vmatmul.bf16.gmra.mxu1 %v3608_v12 }
 0x733   :  { %v3205_v56 = vsel %vm206_vm2, %v3201_v48, %v5417_v20  ;;  %v3204_v38 = vsel %vm206_vm2, %v3200_v52, %v5416_v42  ;;  %v6808_v43 = vpop.permute.xlu2 %5469  ;;  %v5457_v48 = vunpack.i.h.bf16 %v6785_v59  ;;  %v5456_v52 = vunpack.i.l.bf16 %v6785_v59 }
 0x734   :  { %v3208_v1 = vsel %vm211_vm3, %v3204_v38, %v5421_v22  ;;  %v3209_v19 = vsel %vm211_vm3, %v3205_v56, %v5422_v54 }
 0x735   :  { %v3381_v7 = vsel %vm36_vm0, %v3237_v47, %v5457_v48  ;;  %v3380_v54 = vsel %vm36_vm0, %v3236_v63, %v5456_v52 }
 0x737   :  { %v5425_v21 = vpop.permute.xlu1 %5424  ;;  %v5440_v15 = vpop.permute.xlu0 %5439 }
 0x738   :  { %v5427_v40 = vunpack.i.h.bf16 %v5425_v21  ;;  %v5426_v62 = vunpack.i.l.bf16 %v5425_v21  ;;  %v5442_v4 = vunpack.i.h.bf16 %v5440_v15  ;;  %v5441_v5 = vunpack.i.l.bf16 %v5440_v15 }
 0x73a   :  { %v3212_v9 = vsel %vm216_vm4, %v3208_v1, %v5426_v62  ;;  %v3213_v23 = vsel %vm216_vm4, %v3209_v19, %v5427_v40  ;;  %v5472_v1 = vunpack.i.h.bf16 %v6808_v43  ;;  %v5471_v19 = vunpack.i.l.bf16 %v6808_v43 }
 0x73b   :  { %v3216_v34 = vsel %vm221_vm5, %v3212_v9, %v5431_v18  ;;  %v3217_v14 = vsel %vm221_vm5, %v3213_v23, %v5432_v0  ;;  %v5485_v12 = vpop.permute.xlu2 %5484 }
 0x73c   :  { %v3220_v17 = vsel %vm226_vm6, %v3216_v34, %v5441_v5  ;;  %v3221_v28 = vsel %vm226_vm6, %v3217_v14, %v5442_v4  ;;  %v5487_v43 = vunpack.i.h.bf16 %v5485_v12 }
 0x73d   :  { %v3228_v39 = vpack.c.bf16 %v3220_v17, %v3220_v17  ;;  %v3229_v41 = vpack.c.bf16 %v3221_v28, %v3221_v28  ;;  %v5567_v17 = vld [vmem:[%s6975_s4 + $0x1] ss:$0 sm:$0xff]  ;;  %v5486_v28 = vunpack.i.l.bf16 %v5485_v12 }
 0x73e   :  { %3777 = vrot.lane.b32.xlu2 %v5567_v17, %s5598_s22 }
 0x73f   :  { %v5450_v46 = vpop.permute.xlu1 %5449  ;;  %v3604_v24 = vunpack.c.l.b16 %v3228_v39  ;;  %v3605_v60 = vunpack.c.l.b16 %v3229_v41  ;;  %v5445_v53 = vpop.permute.xlu0 %5444 }
 0x740   :  { %v5447_v26 = vunpack.i.h.bf16 %v5445_v53  ;;  %v5446_v50 = vunpack.i.l.bf16 %v5445_v53  ;;  %v5452_v32 = vunpack.i.h.bf16 %v5450_v46  ;;  %v5451_v44 = vunpack.i.l.bf16 %v5450_v46 }
 0x741   :  { %v3609_v29 = vpack.c.b16 %v3605_v60, %v3604_v24 }
 0x742   :  { %v3398_v57 = vsel %vm221_vm5, %v3394_v2, %v5446_v50  ;;  %v3399_v58 = vsel %vm221_vm5, %v3395_v55, %v5447_v26  ;;  %v3410_v2 = vld [vmem:[#allocation2 + $0x35] sm:$0xff] }
 0x743   :  { %3726 = vmatmul.bf16.gmra.mxu1 %v3609_v29  ;;  %v3402_v31 = vsel %vm226_vm6, %v3398_v57, %v5451_v44  ;;  %v3403_v61 = vsel %vm226_vm6, %v3399_v58, %v5452_v32  ;;  %v6837_v40 = vpop.permute.xlu2 %5504  ;;  %v3411_v44 = vld [vmem:[#allocation2 + $0x3d] sm:$0xff] }
 0x744   :  { %v3582_v56 = vpack.c.bf16 %v3402_v31, %v3402_v31  ;;  %v3583_v38 = vpack.c.bf16 %v3403_v61, %v3403_v61  ;;  %v5507_v63 = vunpack.i.h.bf16 %v6837_v40  ;;  %v5506_v47 = vunpack.i.l.bf16 %v6837_v40 }
 0x746   :  { %v3622_v15 = vunpack.c.l.b16 %v3582_v56  ;;  %v3623_v59 = vunpack.c.l.b16 %v3583_v38 }
 0x747   :  { %v5465_v11 = vpop.permute.xlu1 %5464  ;;  %v5460_v37 = vpop.permute.xlu0 %5459 }
 0x748   :  { %v5462_v20 = vunpack.i.h.bf16 %v5460_v37  ;;  %v5461_v42 = vunpack.i.l.bf16 %v5460_v37  ;;  %v5467_v22 = vunpack.i.h.bf16 %v5465_v11  ;;  %v5466_v21 = vunpack.i.l.bf16 %v5465_v11 }
 0x749   :  { %v3630_v27 = vpack.c.b16 %v3623_v59, %v3622_v15 }
 0x74a   :  { %v3384_v8 = vsel %vm201_vm1, %v3380_v54, %v5461_v42  ;;  %v3385_v10 = vsel %vm201_vm1, %v3381_v7, %v5462_v20 }
 0x74b   :  { %v3389_v62 = vsel %vm206_vm2, %v3385_v10, %v5467_v22  ;;  %v3388_v0 = vsel %vm206_vm2, %v3384_v8, %v5466_v21  ;;  %v5515_v45 = vpop.permute.xlu2 %5514 }
 0x74c   :  { %v3392_v34 = vsel %vm211_vm3, %v3388_v0, %v5471_v19  ;;  %v3393_v14 = vsel %vm211_vm3, %v3389_v62, %v5472_v1  ;;  %v5516_v20 = vunpack.i.l.bf16 %v5515_v45  ;;  %v5517_v7 = vunpack.i.h.bf16 %v5515_v45  ;;  %v3412_v1 = vld [vmem:[#allocation2 + $0x45] sm:$0xff] }
 0x74f   :  { %v5480_v18 = vpop.permute.xlu1 %5479  ;;  %v5475_v4 = vpop.permute.xlu0 %5474 }
 0x750   :  { %v5482_v5 = vunpack.i.h.bf16 %v5480_v18  ;;  %v5481_v9 = vunpack.i.l.bf16 %v5480_v18  ;;  %v5477_v23 = vunpack.i.h.bf16 %v5475_v4  ;;  %v5476_v25 = vunpack.i.l.bf16 %v5475_v4 }
 0x752   :  { %v3396_v35 = vsel %vm216_vm4, %v3392_v34, %v5476_v25  ;;  %v3397_v16 = vsel %vm216_vm4, %v3393_v14, %v5477_v23  ;;  %v3556_v23 = vsel %vm36_vm0, %v3412_v1, %v5506_v47 }
 0x753   :  { %3731 = vmatmul.bf16.gmra.mxu1 %v3630_v27  ;;  %v3400_v13 = vsel %vm221_vm5, %v3396_v35, %v5481_v9  ;;  %v3401_v36 = vsel %vm221_vm5, %v3397_v16, %v5482_v5  ;;  %v6855_v6 = vpop.permute.xlu2 %5529  ;;  %v3413_v9 = vld [vmem:[#allocation2 + $0x4d] sm:$0xff] }
 0x754   :  { %v3404_v39 = vsel %vm226_vm6, %v3400_v13, %v5486_v28  ;;  %v3405_v41 = vsel %vm226_vm6, %v3401_v36, %v5487_v43  ;;  %v3557_v34 = vsel %vm36_vm0, %v3413_v9, %v5507_v63  ;;  %v5531_v36 = vunpack.i.l.bf16 %v6855_v6  ;;  %v4403_v9 = vld [vmem:[%s6976_s5] sm:$0xff] }
 0x755   :  { %v3584_v3 = vpack.c.bf16 %v3404_v39, %v3404_v39  ;;  %v3585_v46 = vpack.c.bf16 %v3405_v41, %v3405_v41  ;;  %3892 = vmatpush.bf16.msra.mxu3 %v4403_v9 }
 0x757   :  { %v5495_v51 = vpop.permute.xlu1 %5494  ;;  %v5490_v30 = vpop.permute.xlu0 %5489  ;;  %v3624_v24 = vunpack.c.l.b16 %v3584_v3  ;;  %v3625_v60 = vunpack.c.l.b16 %v3585_v46 }
 0x758   :  { %v5491_v26 = vunpack.i.l.bf16 %v5490_v30  ;;  %v5492_v50 = vunpack.i.h.bf16 %v5490_v30  ;;  %v5496_v55 = vunpack.i.l.bf16 %v5495_v51  ;;  %v5497_v58 = vunpack.i.h.bf16 %v5495_v51 }
 0x759   :  { %v3631_v53 = vpack.c.b16 %v3625_v60, %v3624_v24  ;;  %v5532_v30 = vunpack.i.h.bf16 %v6855_v6 }
 0x75a   :  { %v3554_v57 = vsel %vm36_vm0, %v3410_v2, %v5491_v26  ;;  %v3555_v31 = vsel %vm36_vm0, %v3411_v44, %v5492_v50 }
 0x75b   :  { %v3558_v48 = vsel %vm201_vm1, %v3554_v57, %v5496_v55  ;;  %v3559_v52 = vsel %vm201_vm1, %v3555_v31, %v5497_v58  ;;  %v5545_v11 = vpop.permute.xlu2 %5544 }
 0x75c   :  { %v5547_v22 = vunpack.i.h.bf16 %v5545_v11  ;;  %v5546_v19 = vunpack.i.l.bf16 %v5545_v11 }
 0x75f   :  { %v5510_v33 = vpop.permute.xlu1 %5509  ;;  %v5500_v49 = vpop.permute.xlu0 %5499 }
 0x760   :  { %v5501_v12 = vunpack.i.l.bf16 %v5500_v49  ;;  %v5502_v61 = vunpack.i.h.bf16 %v5500_v49  ;;  %v5512_v21 = vunpack.i.h.bf16 %v5510_v33  ;;  %v5511_v8 = vunpack.i.l.bf16 %v5510_v33 }
 0x762   :  { %v3562_v37 = vsel %vm206_vm2, %v3558_v48, %v5501_v12  ;;  %v3563_v42 = vsel %vm206_vm2, %v3559_v52, %v5502_v61  ;;  %v3560_v14 = vsel %vm201_vm1, %v3556_v23, %v5511_v8  ;;  %v3561_v17 = vsel %vm201_vm1, %v3557_v34, %v5512_v21  ;;  %v6911_v23 = vld [vmem:[%s6974_s3 + $0x5] ss:$0 sm:$0xff] }
 0x763   :  { %3736 = vmatmul.bf16.gmra.mxu1 %v3631_v53  ;;  %v3566_v10 = vsel %vm211_vm3, %v3562_v37, %v5516_v20  ;;  %v3567_v62 = vsel %vm211_vm3, %v3563_v42, %v5517_v7 }
 0x767   :  { %v5525_v29 = vpop.permute.xlu1 %5524  ;;  %v5520_v32 = vpop.permute.xlu0 %5519 }
 0x768   :  { %v5527_v56 = vunpack.i.h.bf16 %v5525_v29  ;;  %v5526_v38 = vunpack.i.l.bf16 %v5525_v29  ;;  %v5521_v59 = vunpack.i.l.bf16 %v5520_v32  ;;  %v5522_v4 = vunpack.i.h.bf16 %v5520_v32 }
 0x76a   :  { %v3570_v5 = vsel %vm216_vm4, %v3566_v10, %v5526_v38  ;;  %v3571_v40 = vsel %vm216_vm4, %v3567_v62, %v5527_v56  ;;  %v3564_v43 = vsel %vm206_vm2, %v3560_v14, %v5521_v59  ;;  %v3565_v39 = vsel %vm206_vm2, %v3561_v17, %v5522_v4 }
 0x76b   :  { %v3568_v24 = vsel %vm211_vm3, %v3564_v43, %v5531_v36  ;;  %v3569_v53 = vsel %vm211_vm3, %v3565_v39, %v5532_v30 }
 0x76f   :  { %v5540_v54 = vpop.permute.xlu1 %5539  ;;  %v5535_v15 = vpop.permute.xlu0 %5534 }
 0x770   :  { %v5537_v0 = vunpack.i.h.bf16 %v5535_v15  ;;  %v5536_v18 = vunpack.i.l.bf16 %v5535_v15  ;;  %v5542_v41 = vunpack.i.h.bf16 %v5540_v54  ;;  %v5541_v51 = vunpack.i.l.bf16 %v5540_v54 }
 0x772   :  { %v3574_v25 = vsel %vm221_vm5, %v3570_v5, %v5536_v18  ;;  %v3575_v27 = vsel %vm221_vm5, %v3571_v40, %v5537_v0  ;;  %v3572_v2 = vsel %vm216_vm4, %v3568_v24, %v5541_v51  ;;  %v3573_v55 = vsel %vm216_vm4, %v3569_v53, %v5542_v41 }
 0x773   :  { %v3578_v35 = vsel %vm226_vm6, %v3574_v25, %v5546_v19  ;;  %v3579_v16 = vsel %vm226_vm6, %v3575_v27, %v5547_v22 }
 0x774   :  { %v3586_v28 = vpack.c.bf16 %v3578_v35, %v3578_v35  ;;  %v3587_v13 = vpack.c.bf16 %v3579_v16, %v3579_v16 }
 0x776   :  { %v3626_v3 = vunpack.c.l.b16 %v3586_v28  ;;  %v3627_v46 = vunpack.c.l.b16 %v3587_v13 }
 0x777   :  { %v5555_v45 = vpop.permute.xlu1 %5554  ;;  %v5550_v60 = vpop.permute.xlu0 %5549 }
 0x778   :  { %v5557_v33 = vunpack.i.h.bf16 %v5555_v45  ;;  %v5556_v49 = vunpack.i.l.bf16 %v5555_v45  ;;  %v5552_v26 = vunpack.i.h.bf16 %v5550_v60  ;;  %v5551_v50 = vunpack.i.l.bf16 %v5550_v60 }
 0x779   :  { %v3632_v29 = vpack.c.b16 %v3627_v46, %v3626_v3 }
 0x77a   :  { %v3576_v32 = vsel %vm221_vm5, %v3572_v2, %v5551_v50  ;;  %v3577_v6 = vsel %vm221_vm5, %v3573_v55, %v5552_v26 }
 0x77b   :  { %3741 = vmatmul.bf16.gmra.mxu1 %v3632_v29  ;;  %v3580_v44 = vsel %vm226_vm6, %v3576_v32, %v5556_v49  ;;  %v3581_v57 = vsel %vm226_vm6, %v3577_v6, %v5557_v33 }
 0x77c   :  { %v3588_v58 = vpack.c.bf16 %v3580_v44, %v3580_v44  ;;  %v3589_v12 = vpack.c.bf16 %v3581_v57, %v3581_v57 }
 0x77e   :  { %v3628_v31 = vunpack.c.l.b16 %v3588_v58  ;;  %v3629_v61 = vunpack.c.l.b16 %v3589_v12  ;;  %v3712_v52 = vpop.f32.mrf.mxu1 }
 0x77f   :  { %v3757_v25 = vadd.f32 %v6911_v23, %v3712_v52 }
 0x780   :  { %v3633_v48 = vpack.c.b16 %v3629_v61, %v3628_v31 }
 0x781   :  { %v3765_v35 = vmax.f32 %v3757_v25, 0.0 }
 0x782   :  { %3746 = vmatmul.bf16.vlgmr.msrb.gmra.mxu3 %v3633_v48 }
 0x783   :  { %4004 = vmatpush.bf16.msrb.mxu3 %v4403_v9 }
 0x786   :  { %v3714_v11 = vpop.f32.mrf.mxu1 }
 0x787   :  { %v3758_v16 = vadd.f32 %v6911_v23, %v3714_v11 }
 0x789   :  { %v3766_v13 = vmax.f32 %v3758_v16, 0.0 }
 0x78f   :  { %v3717_v37 = vpop.f32.mrf.mxu1 }
 0x790   :  { %v3759_v27 = vadd.f32 %v6911_v23, %v3717_v37 }
 0x792   :  { %v3767_v17 = vmax.f32 %v3759_v27, 0.0 }
 0x797   :  { %v3719_v20 = vpop.f32.mrf.mxu1 }
 0x798   :  { %v3778_v47 = vpop.permute.xlu2 %3777  ;;  %v3760_v50 = vadd.f32 %v6911_v23, %v3719_v20 }
 0x79a   :  { %v3768_v2 = vmax.f32 %v3760_v50, 0.0 }
 0x7af   :  { %v6889_v42 = vpop.f32.mrf.mxu1 }
 0x7b0   :  { %v3761_v37 = vadd.f32 %v6911_v23, %v6889_v42  ;;  %v3838_v42 = vld [vmem:[%s6978_s7] sm:$0xff] }
 0x7b7   :  { %v6891_v56 = vpop.f32.mrf.mxu1 }
 0x7b8   :  { %v3762_v57 = vadd.f32 %v6911_v23, %v6891_v56  ;;  %v3839_v56 = vld [vmem:[%s6978_s7 + $0x8] sm:$0xff] }
 0x7ba   :  { %v3770_v20 = vmax.f32 %v3762_v57, 0.0 }
 0x7c0   :  { %v6893_v38 = vpop.f32.mrf.mxu1 }
 0x7c8   :  { %v6895_v63 = vpop.f32.mrf.mxu1 }
 0x7c9   :  { %v3764_v27 = vadd.f32 %v6911_v23, %v6895_v63 }
 0x7d0   :  { %v3732_v7 = vpop.f32.mrf.mxu1 }
 0x7d1   :  { %v3780_v54 = vadd.f32 %v3778_v47, %v3732_v7 }
 0x7d3   :  { %3796 = vrot.lane.b32.xlu0 %v3780_v54, %s5604_s11  ;;  %v3769_v54 = vmax.f32 %v3761_v37, 0.0 }
 0x7d8   :  { %v3734_v22 = vpop.f32.mrf.mxu1 }
 0x7d9   :  { %v3781_v21 = vadd.f32 %v3778_v47, %v3734_v22 }
 0x7db   :  { %3798 = vrot.lane.b32.xlu1 %v3781_v21, %s5604_s11  ;;  %v3840_v21 = vld [vmem:[%s6978_s7 + $0x10] sm:$0xff] }
 0x7e0   :  { %v3737_v8 = vpop.f32.mrf.mxu1 }
 0x7e1   :  { %v3782_v10 = vadd.f32 %v3778_v47, %v3737_v8 }
 0x7e3   :  { %3800 = vrot.lane.b32.xlu2 %v3782_v10, %s5604_s11 }
 0x7e8   :  { %v3739_v15 = vpop.f32.mrf.mxu1 }
 0x7e9   :  { %v3783_v59 = vadd.f32 %v3778_v47, %v3739_v15  ;;  %v5605_v15 = vmov 0  }
 0x7ea   :  { %5559 = vset.pattern.permute.xlu0 %v5605_v15  ;;  %5560 = vset.pattern.permute.xlu1 %v5605_v15 }
 0x7eb   :  { %3802 = vrot.lane.b32.xlu0 %v3783_v59, %s5604_s11  ;;  %5558 = vset.pattern.permute.xlu2 %v5605_v15 }
 0x7f8   :  { %v3742_v62 = vpop.f32.mrf.mxu1 }
 0x7f9   :  { %v3784_v0 = vadd.f32 %v3778_v47, %v3742_v62 }
 0x7fb   :  { %3804 = vrot.lane.b32.xlu1 %v3784_v0, %s5604_s11 }
 0x800   :  { %v3744_v18 = vpop.f32.mrf.mxu1 }
 0x801   :  { %v3785_v1 = vadd.f32 %v3778_v47, %v3744_v18 }
 0x803   :  { %3806 = vrot.lane.b32.xlu2 %v3785_v1, %s5604_s11 }
 0x805   :  { %v3747_v19 = vpop.f32.mrf.mxu3 }
 0x806   :  { %v3786_v4 = vadd.f32 %v3778_v47, %v3747_v19  ;;  %v3763_v19 = vadd.f32 %v6911_v23, %v6893_v38 }
 0x808   :  { %3808 = vrot.lane.b32.xlu0 %v3786_v4, %s5604_s11  ;;  %v3841_v4 = vld [vmem:[%s6978_s7 + $0x18] sm:$0xff] }
 0x80b   :  { %3930 = vperm.xlu2 %5558, %v3838_v42  }
 0x80d   :  { %v3749_v5 = vpop.f32.mrf.mxu3 }
 0x80e   :  { %v3787_v40 = vadd.f32 %v3778_v47, %v3749_v5  ;;  %v5569_v5 = vld [vmem:[#allocation3] ss:$0 sm:$0xff] }
 0x810   :  { %3810 = vrot.lane.b32.xlu1 %v3787_v40, %s5604_s11  ;;  %3935 = vperm.xlu0 %5559, %v3839_v56   ;;  %v3771_v40 = vmax.f32 %v3763_v19, 0.0 }
 0x813   :  { %3945 = vperm.xlu2 %5558, %v3841_v4  }
 0x818   :  { %3940 = vperm.xlu1 %5560, %v3840_v21  }
 0x820   :  { %4063 = vperm.xlu1 %5560, %v5569_v5  }
 0x83d   :  { %v3801_v34 = vpop.permute.xlu2 %3800 }
 0x83e   :  { %v3822_v43 = vadd.f32 %v3801_v34, %v3767_v17 }
 0x840   :  { %v3830_v39 = vmax.f32 %v3822_v43, 0.0 }
 0x842   :  { %v3850_v45 = vrot.slane %v3830_v39, 1 }
 0x845   :  { %v3797_v14 = vpop.permute.xlu0 %3796 }
 0x846   :  { %v3820_v28 = vadd.f32 %v3797_v14, %v3765_v35  ;;  %v3772_v35 = vmax.f32 %v3764_v27, 0.0 }
 0x848   :  { %v3828_v41 = vmax.f32 %v3820_v28, 0.0 }
 0x84a   :  { %v3847_v3 = vrot.slane %v3828_v41, 1 }
 0x84d   :  { %v3799_v36 = vpop.permute.xlu1 %3798 }
 0x84e   :  { %v3821_v51 = vadd.f32 %v3799_v36, %v3766_v13 }
 0x850   :  { %v3829_v30 = vmax.f32 %v3821_v51, 0.0 }
 0x852   :  { %v3848_v46 = vrot.slane %v3829_v30, 1 }
 0x854   :  { %v3849_v24 = vsel %vm3846_vm7, %v3847_v3, %v3848_v46  ;;  %v3851_v60 = vsel %vm3846_vm7, %v3848_v46, %v3850_v45 }
 0x855   :  { %v3859_v33 = vadd.f32 %v3849_v24, %v3828_v41  ;;  %v3860_v49 = vadd.f32 %v3851_v60, %v3829_v30 }
 0x857   :  { %v3863_v53 = vmul.f32 0.5, %v3859_v33  ;;  %v3864_v26 = vmul.f32 0.5, %v3860_v49 }
 0x859   :  { %v3867_v29 = vpack.c.bf16 %v3864_v26, %v3863_v53  ;;  %v5570_v53 = vld [vmem:[%s6977_s6] ss:$0 sm:$0xff]  ;;  %s5606_s6 = smov [#allocation4]  }
 0x85a   :  { %s4074_s29 = sshll.u32 %s5606_s6, 4  ;;  %s4075_s29 = int_to_ptr.vmem [resolvable:$true] %s4074_s29 }
 0x85b   :  { %4351 = vmatmul.msk.bf16.vlgmr.msra.gmra.mxu3 %vm36_vm0, %v3867_v29 }
 0x85d   :  { %v3803_v55 = vpop.permute.xlu0 %3802  ;;  %v3807_v48 = vpop.permute.xlu2 %3806 }
 0x85e   :  { %v3823_v32 = vadd.f32 %v3803_v55, %v3768_v2  ;;  %v3825_v7 = vadd.f32 %v3807_v48, %v3770_v20 }
 0x860   :  { %v3831_v6 = vmax.f32 %v3823_v32, 0.0  ;;  %v3833_v8 = vmax.f32 %v3825_v7, 0.0 }
 0x862   :  { %v3852_v44 = vrot.slane %v3831_v6, 1  ;;  %v3970_v62 = vrot.slane %v3833_v8, 1 }
 0x864   :  { %v3858_v58 = vsel %vm3846_vm7, %v3852_v44, 0.0  ;;  %v3853_v12 = vsel %vm3846_vm7, %v3850_v45, %v3852_v44 }
 0x865   :  { %v3862_v31 = vadd.f32 %v3858_v58, %v3831_v6  ;;  %v3861_v61 = vadd.f32 %v3853_v12, %v3830_v39 }
 0x867   :  { %v3866_v52 = vmul.f32 0.5, %v3862_v31  ;;  %v3865_v11 = vmul.f32 0.5, %v3861_v61 }
 0x869   :  { %v3868_v47 = vpack.c.bf16 %v3866_v52, %v3865_v11 }
 0x86b   :  { %4352 = vmatmul.msk.bf16.gmra.mxu3 %vm36_vm0, %v3868_v47  ;;  %v3931_v47 = vpop.permute.xlu2 %3930 }
 0x86d   :  { %v3805_v22 = vpop.permute.xlu1 %3804 }
 0x86e   :  { %v3824_v10 = vadd.f32 %v3805_v22, %v3769_v54 }
 0x870   :  { %v3832_v59 = vmax.f32 %v3824_v10, 0.0 }
 0x872   :  { %v3969_v0 = vrot.slane %v3832_v59, 1 }
 0x873   :  { %v3946_v5 = vpop.permute.xlu2 %3945 }
 0x874   :  { %v3971_v18 = vsel %vm3846_vm7, %v3969_v0, %v3970_v62 }
 0x875   :  { %v3981_v1 = vadd.f32 %v3971_v18, %v3832_v59 }
 0x877   :  { %v3985_v28 = vmul.f32 0.5, %v3981_v1 }
 0x87a   :  { %v3809_v9 = vpop.permute.xlu0 %3808 }
 0x87b   :  { %v3826_v25 = vadd.f32 %v3809_v9, %v3771_v40 }
 0x87d   :  { %v3834_v34 = vmax.f32 %v3826_v25, 0.0 }
 0x87f   :  { %v3972_v14 = vrot.slane %v3834_v34, 1 }
 0x881   :  { %v3973_v16 = vsel %vm3846_vm7, %v3970_v62, %v3972_v14 }
 0x882   :  { %v3982_v17 = vadd.f32 %v3973_v16, %v3833_v8  ;;  %v3811_v38 = vpop.permute.xlu1 %3810  ;;  %v3936_v7 = vpop.permute.xlu0 %3935 }
 0x883   :  { %v3827_v43 = vadd.f32 %v3811_v38, %v3772_v35 }
 0x884   :  { %v3986_v13 = vmul.f32 0.5, %v3982_v17 }
 0x885   :  { %v3835_v36 = vmax.f32 %v3827_v43, 0.0 }
 0x886   :  { %v3989_v39 = vpack.c.bf16 %v3986_v13, %v3985_v28 }
 0x887   :  { %v3974_v41 = vrot.slane %v3835_v36, 1 }
 0x888   :  { %4353 = vmatmul.msk.bf16.vlgmr.msrb.gmra.mxu3 %vm36_vm0, %v3989_v39 }
 0x889   :  { %v3980_v51 = vsel %vm3846_vm7, %v3974_v41, 0.0  ;;  %v3975_v30 = vsel %vm3846_vm7, %v3972_v14, %v3974_v41 }
 0x88a   :  { %v3984_v63 = vadd.f32 %v3980_v51, %v3835_v36  ;;  %v3983_v23 = vadd.f32 %v3975_v30, %v3834_v34  ;;  %v3941_v21 = vpop.permute.xlu1 %3940 }
 0x88c   :  { %v3988_v45 = vmul.f32 0.5, %v3984_v63  ;;  %v3987_v3 = vmul.f32 0.5, %v3983_v23 }
 0x88e   :  { %v3990_v46 = vpack.c.bf16 %v3988_v45, %v3987_v3 }
 0x898   :  { %4354 = vmatmul.msk.bf16.gmra.mxu3 %vm36_vm0, %v3990_v46 }
 0x8de   :  { %v3894_v24 = vpop.f32.mrf.mxu3 }
 0x8df   :  { %v3895_v2 = vadd.f32 %v5570_v53, %v3894_v24 }
 0x8e1   :  { %v3904_v57 = vmax.f32 %v3895_v2, 0.0 }
 0x8e3   :  { %v3912_v61 = vrot.slane %v3904_v57, 1 }
 0x8e6   :  { %v3896_v60 = vpop.f32.mrf.mxu3 }
 0x8e7   :  { %v3897_v50 = vadd.f32 %v5570_v53, %v3896_v60 }
 0x8e9   :  { %v3905_v6 = vmax.f32 %v3897_v50, 0.0 }
 0x8eb   :  { %v3913_v12 = vrot.slane %v3905_v6, 1 }
 0x8ed   :  { %v3914_v11 = vsel %vm3846_vm7, %v3912_v61, %v3913_v12 }
 0x8ee   :  { %v3899_v33 = vpop.f32.mrf.mxu3  ;;  %v3924_v22 = vmax.f32 %v3904_v57, %v3914_v11 }
 0x8ef   :  { %v3900_v26 = vadd.f32 %v5570_v53, %v3899_v33 }
 0x8f0   :  { %v3948_v59 = vmul.f32 %v3931_v47, %v3924_v22 }
 0x8f1   :  { %v3906_v55 = vmax.f32 %v3900_v26, 0.0 }
 0x8f2   :  { %v3952_v25 = vsel %vm36_vm0, %v3948_v59, 0.0 }
 0x8f3   :  { %v3915_v58 = vrot.slane %v3906_v55, 1 }
 0x8f5   :  { %v3916_v48 = vsel %vm3846_vm7, %v3913_v12, %v3915_v58 }
 0x8f6   :  { %v3901_v49 = vpop.f32.mrf.mxu3  ;;  %v3925_v20 = vmax.f32 %v3905_v6, %v3916_v48 }
 0x8f7   :  { %v3902_v29 = vadd.f32 %v5570_v53, %v3901_v49 }
 0x8f8   :  { %v3949_v10 = vmul.f32 %v3936_v7, %v3925_v20 }
 0x8f9   :  { %v3907_v44 = vmax.f32 %v3902_v29, 0.0 }
 0x8fa   :  { %v3953_v19 = vsel %vm36_vm0, %v3949_v10, 0.0 }
 0x8fb   :  { %v3917_v31 = vrot.slane %v3907_v44, 1  ;;  %v3954_v34 = vadd.f32 %v3953_v19, %v3952_v25 }
 0x8fd   :  { %v3918_v37 = vsel %vm3846_vm7, %v3915_v58, %v3917_v31  ;;  %v3923_v15 = vsel %vm3846_vm7, %v3917_v31, 0.0 }
 0x8fe   :  { %v3926_v56 = vmax.f32 %v3906_v55, %v3918_v37  ;;  %v3927_v4 = vmax.f32 %v3907_v44, %v3923_v15 }
 0x900   :  { %v3950_v62 = vmul.f32 %v3941_v21, %v3926_v56  ;;  %v3951_v16 = vmul.f32 %v3946_v5, %v3927_v4 }
 0x902   :  { %v3955_v27 = vsel %vm36_vm0, %v3950_v62, 0.0  ;;  %v3957_v39 = vsel %vm36_vm0, %v3951_v16, 0.0 }
 0x903   :  { %v3956_v17 = vadd.f32 %v3955_v27, %v3954_v34 }
 0x905   :  { %v3958_v51 = vadd.f32 %v3957_v39, %v3956_v17 }
 0x907   :  { %v3959_v3 = vrot.slane %v3958_v51, 4 }
 0x909   :  { %v3960_v29 = vadd.f32 %v3959_v3, %v3958_v51 }
 0x90b   :  { %v4006_v32 = vpop.f32.mrf.mxu3  ;;  %v3961_v44 = vrot.slane %v3960_v29, 2 }
 0x90c   :  { %v4007_v8 = vadd.f32 %v5570_v53, %v4006_v32 }
 0x90d   :  { %v3962_v12 = vadd.f32 %v3961_v44, %v3960_v29 }
 0x90e   :  { %v4016_v18 = vmax.f32 %v4007_v8, 0.0 }
 0x90f   :  { %v3963_v48 = vrot.slane %v3962_v12, 1 }
 0x910   :  { %v4024_v14 = vrot.slane %v4016_v18, 1 }
 0x911   :  { %v3964_v37 = vadd.f32 %v3963_v48, %v3962_v12 }
 0x913   :  { %v4008_v52 = vpop.f32.mrf.mxu3 }
 0x914   :  { %v4009_v54 = vadd.f32 %v5570_v53, %v4008_v52 }
 0x916   :  { %v4017_v42 = vmax.f32 %v4009_v54, 0.0 }
 0x918   :  { %v4025_v40 = vrot.slane %v4017_v42, 1 }
 0x91a   :  { %v4026_v38 = vsel %vm3846_vm7, %v4024_v14, %v4025_v40 }
 0x91b   :  { %v4011_v0 = vpop.f32.mrf.mxu3  ;;  %v4036_v41 = vmax.f32 %v4016_v18, %v4026_v38 }
 0x91c   :  { %v4012_v1 = vadd.f32 %v5570_v53, %v4011_v0 }
 0x91d   :  { %v4040_v45 = vmul.f32 %v4036_v41, %v3931_v47  ;;  %v4064_v47 = vpop.permute.xlu1 %4063 }
 0x91e   :  { %v4018_v9 = vmax.f32 %v4012_v1, 0.0 }
 0x91f   :  { %v4044_v26 = vsel %vm36_vm0, %v4040_v45, 0.0 }
 0x920   :  { %v4027_v35 = vrot.slane %v4018_v9, 1 }
 0x922   :  { %v4028_v43 = vsel %vm3846_vm7, %v4025_v40, %v4027_v35 }
 0x923   :  { %v4037_v28 = vmax.f32 %v4017_v42, %v4028_v43  ;;  %v4013_v13 = vpop.f32.mrf.mxu3 }
 0x924   :  { %v4014_v36 = vadd.f32 %v5570_v53, %v4013_v13 }
 0x925   :  { %v4041_v63 = vmul.f32 %v4037_v28, %v3936_v7 }
 0x926   :  { %v4019_v30 = vmax.f32 %v4014_v36, 0.0 }
 0x927   :  { %v4045_v60 = vsel %vm36_vm0, %v4041_v63, 0.0 }
 0x928   :  { %v4029_v23 = vrot.slane %v4019_v30, 1  ;;  %v4046_v2 = vadd.f32 %v4045_v60, %v4044_v26 }
 0x92a   :  { %v4030_v46 = vsel %vm3846_vm7, %v4027_v35, %v4029_v23  ;;  %v4035_v24 = vsel %vm3846_vm7, %v4029_v23, 0.0 }
 0x92b   :  { %v4038_v33 = vmax.f32 %v4018_v9, %v4030_v46  ;;  %v4039_v49 = vmax.f32 %v4019_v30, %v4035_v24 }
 0x92d   :  { %v4042_v53 = vmul.f32 %v4038_v33, %v3941_v21  ;;  %v4043_v50 = vmul.f32 %v4039_v49, %v3946_v5 }
 0x92f   :  { %v4047_v55 = vsel %vm36_vm0, %v4042_v53, 0.0  ;;  %v4049_v6 = vsel %vm36_vm0, %v4043_v50, 0.0 }
 0x930   :  { %v4048_v32 = vadd.f32 %v4047_v55, %v4046_v2 }
 0x932   :  { %v4050_v57 = vadd.f32 %v4049_v6, %v4048_v32 }
 0x934   :  { %v4051_v58 = vrot.slane %v4050_v57, 4 }
 0x936   :  { %v4052_v31 = vadd.f32 %v4051_v58, %v4050_v57 }
 0x938   :  { %v4053_v61 = vrot.slane %v4052_v31, 2 }
 0x93a   :  { %v4054_v52 = vadd.f32 %v4053_v61, %v4052_v31 }
 0x93c   :  { %v4055_v11 = vrot.slane %v4054_v52, 1 }
 0x93e   :  { %v4056_v20 = vadd.f32 %v4055_v11, %v4054_v52 }
 0x940   :  { %v4058_v7 = vsel %vm4057_vm8, %v3964_v37, %v4056_v20 }
 0x941   :  { %v4066_v54 = vadd.f32 %v4064_v47, %v4058_v7 }
 0x943   :  { %4068 = vst.msk [vmem:[#allocation4] sm:$0x3] %vm4067_vm9, %v4066_v54 }
 0x944   :  { %4079 = dma.vmem_to_hbm [thread:$0]  %s4075_s29, 32, %s4077_s12, [#allocation5]  }
 0x945   :  { %5595 = dma.done.wait [#allocation5], 32  }
 0x946   :  { %5596 = vsyncadd [#allocation5], 4294967264 }
 0x947   :  { %4084 = vsyncpa [#allocation5], 1 }

</bundles_post_ra>
